<compile_context>
chip_gen: v6e
topology: v6e:2x2x1
jax: 0.10.0
libtpu: 0.0.40
codegen_flags: <defaults>
</compile_context>

<pallas_src>
import jax
import jax.numpy as jnp
from jax.experimental import pallas as pl
from jax.experimental.pallas import tpu as pltpu


def _voxelize_kernel(x_ref, expand_ref, wt_ref, bt_ref, ze_ref, out_ref):
    # x_ref     : (C, TP)        NCHW pixel tile (pixels in lanes)
    # expand_ref: (TP, TP*Z)     constant 0/1 lane-expansion matrix, R[q, q*Z+z] = 1
    # wt_ref    : (C, TP*Z)      lane-tiled attention weights, wt[c, k] = W[k%Z, c]
    # bt_ref    : (1, TP*Z)      lane-tiled attention bias,    bt[k]    = b[k%Z]
    # ze_ref    : (C, TP*Z)      lane-tiled sigmoid(z-embedding), ze[c,k] = zemb[c, k%Z]
    # out_ref   : (C, TP*Z)      fused (pixel, Z) output, out[c, p*Z+z]
    x = x_ref[...]                                                # (C, TP)

    # MXU lane-expansion: xe[c, p*Z + z] = x[c, p]   (exact: 0/1 matrix)
    xe = jnp.dot(x, expand_ref[...], preferred_element_type=jnp.float32)

    # Per-pixel attention linear in the expanded layout:
    #   pre[p*Z+z] = sum_c x[c, p] * W[z, c] + b[z]
    pre = jnp.sum(xe * wt_ref[...], axis=0, keepdims=True) + bt_ref[...]
    attn = jax.nn.sigmoid(pre)                                    # (1, TP*Z)

    # out[c, p*Z+z] = x[c,p] * attn[p,z] * zemb[c,z]  -- all lane-dense.
    out_ref[...] = (xe * attn * ze_ref[...]).astype(out_ref.dtype)


def _choose_pixel_tile(P, C, Z, max_out_tile_bytes=2 << 20, max_expand_bytes=4 << 20):
    """Pick the pixel-tile size TP (must divide P)."""

    def fits(tp):
        return (C * tp * Z * 4 <= max_out_tile_bytes
                and tp * tp * Z * 4 <= max_expand_bytes)

    if fits(P):
        return P  # whole image per batch element in one block (test shapes)
    best = 0
    tp = 128
    while tp < P:
        if P % tp == 0 and fits(tp):
            best = tp
        tp += 128
    if best:
        return best
    # TODO(synk): spatial sizes with no 128-multiple divisor (e.g. 200x200 BEV
    # grids) need pixel-axis padding or an in-kernel dynamic-slice path; fall
    # back to one block per batch element.
    return P


def voxelize_scale(x_nchw, w_lin, b_lin, w_zemb, b_zemb, bev_z, *, out_dtype=None):
    """One scale of voxelize_module. Returns (B, C, H, W, Z) like PyTorch."""
    B, C, H, W = x_nchw.shape
    Z = bev_z
    P = H * W
    # out_dtype=jnp.bfloat16 halves output HBM writes if downstream allows it.
    out_dtype = x_nchw.dtype if out_dtype is None else out_dtype
    itemsize = jnp.dtype(x_nchw.dtype).itemsize

    # --- tiny pooled-feature path (plain-JAX glue) ---
    pooled = jnp.mean(x_nchw, axis=(2, 3))                        # (B, C)
    zemb = jax.nn.sigmoid(
        (pooled @ w_zemb.T + b_zemb).reshape(B, C, Z)             # matches .reshape(bs,-1,Z)
    )

    TP = _choose_pixel_tile(P, C, Z)
    TPZ = TP * Z

    # --- kernel operands (all cheap / metadata-only relative to the output) ---
    x_flat = x_nchw.reshape(B, C, P)                              # free reshape (stay NCHW)

    q = jnp.arange(TP, dtype=jnp.int32)[:, None]                  # (TP, 1)
    k = jnp.arange(TPZ, dtype=jnp.int32)[None, :]                 # (1, TPZ)
    expand = (k // Z == q).astype(x_nchw.dtype)                   # (TP, TPZ) 0/1

    wT_tiled = jnp.tile(jnp.transpose(w_lin), (1, TP))            # (C, TPZ)
    b_tiled = jnp.tile(b_lin, (TP,)).reshape(1, TPZ)              # (1, TPZ)
    ze_tiled = jnp.tile(zemb, (1, 1, TP))                         # (B, C, TPZ)

    grid = (B, P // TP)

    # VMEM budget (double-buffered blocks), capped for v7x's 64 MiB VMEM.
    block_bytes = itemsize * (C * TP + TP * TPZ + C * TPZ + TPZ + C * TPZ) \
        + jnp.dtype(out_dtype).itemsize * C * TPZ
    vmem_limit = int(min(max(2 * block_bytes + (4 << 20), 32 << 20), 48 << 20))

    n_blocks = B * (P // TP)
    flops = int(n_blocks * (2 * C * TP * TPZ + 4 * C * TPZ))
    transcendentals = int(B * P * Z)
    bytes_accessed = int(
        itemsize * (x_flat.size + expand.size + wT_tiled.size
                    + b_tiled.size + ze_tiled.size)
        + jnp.dtype(out_dtype).itemsize * B * C * P * Z
    )

    out = pl.pallas_call(
        _voxelize_kernel,
        out_shape=jax.ShapeDtypeStruct((B, C, P * Z), out_dtype),
        grid=grid,
        in_specs=[
            pl.BlockSpec((None, C, TP), lambda b, p: (b, 0, p)),
            pl.BlockSpec((TP, TPZ), lambda b, p: (0, 0)),
            pl.BlockSpec((C, TPZ), lambda b, p: (0, 0)),
            pl.BlockSpec((1, TPZ), lambda b, p: (0, 0)),
            pl.BlockSpec((None, C, TPZ), lambda b, p: (b, 0, 0)),
        ],
        out_specs=pl.BlockSpec((None, C, TPZ), lambda b, p: (b, 0, p)),
        compiler_params=pltpu.CompilerParams(
            dimension_semantics=("parallel", "parallel"),
            vmem_limit_bytes=vmem_limit,
        ),
        cost_estimate=pl.CostEstimate(
            flops=flops,
            transcendentals=transcendentals,
            bytes_accessed=bytes_accessed,
        ),
    )(x_flat, expand, wT_tiled, b_tiled, ze_tiled)                # (B, C, P*Z)

    # Free metadata reshape back to the PyTorch output layout (no transpose).
    return out.reshape(B, C, H, W, Z)


def voxelize_scale_ref(x_nchw, w_lin, b_lin, w_zemb, b_zemb, bev_z):
    """Pure-JAX reference mirroring the PyTorch forward."""
    B, C, H, W = x_nchw.shape
    Z = bev_z
    attn = jax.nn.sigmoid(
        jnp.einsum("bchw,zc->bhwz", x_nchw, w_lin) + b_lin
    )                                                             # (B, H, W, Z)
    pooled = jnp.mean(x_nchw, axis=(2, 3))                        # (B, C)
    zemb = jax.nn.sigmoid((pooled @ w_zemb.T + b_zemb).reshape(B, C, Z))
    out = attn[:, None] * x_nchw[..., None]                       # (B, C, H, W, Z)
    out = out * zemb[:, :, None, None, :]
    return out


class VoxelizeModule:
    """JAX/Pallas port of voxelize_module (default flags)."""

    def __init__(self, key, bev_z_list, bev_h_list, bev_w_list, num_scale, in_dim):
        self.bev_z_list = bev_z_list
        self.bev_h_list = bev_h_list
        self.bev_w_list = bev_w_list
        self.num_scale = num_scale
        self.in_dim = in_dim
        self.params = []
        for i in range(num_scale):
            key, k1, k2, k3, k4 = jax.random.split(key, 5)
            Z = bev_z_list[i]
            w_lin = 0.1 * jax.random.normal(k1, (Z, in_dim), jnp.float32)
            b_lin = 0.1 * jax.random.normal(k2, (Z,), jnp.float32)
            w_zemb = 0.1 * jax.random.normal(k3, (Z * in_dim, in_dim), jnp.float32)
            b_zemb = 0.1 * jax.random.normal(k4, (Z * in_dim,), jnp.float32)
            self.params.append((w_lin, b_lin, w_zemb, b_zemb))

    def __call__(self, xs):
        outs = []
        for i in range(self.num_scale):
            w_lin, b_lin, w_zemb, b_zemb = self.params[i]
            outs.append(
                voxelize_scale(xs[i], w_lin, b_lin, w_zemb, b_zemb, self.bev_z_list[i])
            )
        return outs

    def reference(self, xs):
        outs = []
        for i in range(self.num_scale):
            w_lin, b_lin, w_zemb, b_zemb = self.params[i]
            outs.append(
                voxelize_scale_ref(
                    xs[i], w_lin, b_lin, w_zemb, b_zemb, self.bev_z_list[i]
                )
            )
        return outs


if __name__ == "__main__":
    key = jax.random.PRNGKey(0)

    # small shapes consistent with the module's structure
    B = 2
    in_dim = 32
    num_scale = 4
    bev_h_list = [16, 8, 4, 2]
    bev_w_list = [16, 8, 4, 2]
    bev_z_list = [8, 4, 2, 2]

    key, pkey = jax.random.split(key)
    mod = VoxelizeModule(pkey, bev_z_list, bev_h_list, bev_w_list, num_scale, in_dim)

    xs = []
    for i in range(num_scale):
        key, xk = jax.random.split(key)
        xs.append(
            jax.random.normal(
                xk, (B, in_dim, bev_h_list[i], bev_w_list[i]), jnp.float32
            )
        )

    outs = mod(xs)
    outs = [jax.block_until_ready(o) for o in outs]

    refs = mod.reference(xs)
    for i in range(num_scale):
        assert outs[i].shape == (B, in_dim, bev_h_list[i], bev_w_list[i], bev_z_list[i])
        assert jnp.allclose(outs[i], refs[i], rtol=1e-5, atol=1e-5), f"scale {i} mismatch"

    print("KERNEL_OK")
</pallas_src>

<mosaic_0001>
module attributes {stable_mosaic.version = 11 : i64} {
  func.func @_voxelize_kernel(%arg0: i32, %arg1: i32, %arg2: memref<1x32x256xf32, #tpu.memory_space<vmem>>, %arg3: memref<256x2048xf32, #tpu.memory_space<vmem>>, %arg4: memref<32x2048xf32, #tpu.memory_space<vmem>>, %arg5: memref<1x2048xf32, #tpu.memory_space<vmem>>, %arg6: memref<1x32x2048xf32, #tpu.memory_space<vmem>>, %arg7: memref<1x32x2048xf32, #tpu.memory_space<vmem>>) attributes {dimension_semantics = [#tpu.dimension_semantics<parallel>, #tpu.dimension_semantics<parallel>], iteration_bounds = array<i64: 2, 1>, scalar_prefetch = 0 : i64, scratch_operands = 0 : i64, tpu.core_type = #tpu.core_type<tc>, window_params = [{transform_indices = @transform_0, window_bounds = array<i64: 1, 32, 256>}, {pipeline_mode = #tpu.pipeline_mode<synchronous>, transform_indices = @transform_1, window_bounds = array<i64: 256, 2048>}, {pipeline_mode = #tpu.pipeline_mode<synchronous>, transform_indices = @transform_2, window_bounds = array<i64: 32, 2048>}, {pipeline_mode = #tpu.pipeline_mode<synchronous>, transform_indices = @transform_3, window_bounds = array<i64: 1, 2048>}, {transform_indices = @transform_4, window_bounds = array<i64: 1, 32, 2048>}, {transform_indices = @transform_5, window_bounds = array<i64: 1, 32, 2048>}]} {
    %c0 = arith.constant 0 : index
    %c0_0 = arith.constant 0 : index
    %c0_1 = arith.constant 0 : index
    %0 = vector.load %arg2[%c0, %c0_0, %c0_1] : memref<1x32x256xf32, #tpu.memory_space<vmem>>, vector<1x32x256xf32>
    %1 = vector.shape_cast %0 : vector<1x32x256xf32> to vector<32x256xf32>
    %c0_2 = arith.constant 0 : index
    %c0_3 = arith.constant 0 : index
    %2 = vector.load %arg3[%c0_2, %c0_3] : memref<256x2048xf32, #tpu.memory_space<vmem>>, vector<256x2048xf32>
    %cst = arith.constant dense<0.000000e+00> : vector<32x2048xf32>
    %3 = tpu.matmul %1, %2, %cst {dimension_numbers = #tpu.dot_dimension_numbers<[1], [0], [0], [1], [0, 0, 1, 1], [], []>} : vector<32x256xf32>, vector<256x2048xf32>, vector<32x2048xf32> -> vector<32x2048xf32>
    %c0_4 = arith.constant 0 : index
    %c0_5 = arith.constant 0 : index
    %4 = vector.load %arg4[%c0_4, %c0_5] : memref<32x2048xf32, #tpu.memory_space<vmem>>, vector<32x2048xf32>
    %5 = arith.mulf %3, %4 : vector<32x2048xf32>
    %cst_6 = arith.constant dense<0.000000e+00> : vector<2048xf32>
    %6 = vector.multi_reduction <add>, %5, %cst_6 [0] : vector<32x2048xf32> to vector<2048xf32>
    %7 = vector.shape_cast %6 : vector<2048xf32> to vector<1x2048xf32>
    %c0_7 = arith.constant 0 : index
    %c0_8 = arith.constant 0 : index
    %8 = vector.load %arg5[%c0_7, %c0_8] : memref<1x2048xf32, #tpu.memory_space<vmem>>, vector<1x2048xf32>
    %9 = arith.addf %7, %8 : vector<1x2048xf32>
    %10 = arith.negf %9 : vector<1x2048xf32>
    %11 = math.exp %10 : vector<1x2048xf32>
    %cst_9 = arith.constant 1.000000e+00 : f32
    %12 = vector.broadcast %cst_9 : f32 to vector<1x2048xf32>
    %13 = arith.addf %12, %11 : vector<1x2048xf32>
    %14 = arith.divf %12, %13 : vector<1x2048xf32>
    %15 = vector.broadcast %14 : vector<1x2048xf32> to vector<32x2048xf32>
    %16 = arith.mulf %3, %15 : vector<32x2048xf32>
    %c0_10 = arith.constant 0 : index
    %c0_11 = arith.constant 0 : index
    %c0_12 = arith.constant 0 : index
    %17 = vector.load %arg6[%c0_10, %c0_11, %c0_12] : memref<1x32x2048xf32, #tpu.memory_space<vmem>>, vector<1x32x2048xf32>
    %18 = vector.shape_cast %17 : vector<1x32x2048xf32> to vector<32x2048xf32>
    %19 = arith.mulf %16, %18 : vector<32x2048xf32>
    %c0_13 = arith.constant 0 : index
    %c0_14 = arith.constant 0 : index
    %c0_15 = arith.constant 0 : index
    %20 = vector.load %arg7[%c0_13, %c0_14, %c0_15] : memref<1x32x2048xf32, #tpu.memory_space<vmem>>, vector<1x32x2048xf32>
    %21 = vector.shape_cast %20 : vector<1x32x2048xf32> to vector<32x2048xf32>
    %22 = vector.shape_cast %19 : vector<32x2048xf32> to vector<1x32x2048xf32>
    tpu.vector_store %arg7[%c0_13, %c0_14, %c0_15], %22 {strides = array<i32>} : memref<1x32x2048xf32, #tpu.memory_space<vmem>>, vector<1x32x2048xf32>,
    return
  }
  func.func @transform_0(%arg0: i32, %arg1: i32) -> (i32, i32, i32) {
    %c0_i32 = arith.constant 0 : i32
    %c0_i32_0 = arith.constant 0 : i32
    return %arg0, %c0_i32, %arg1 : i32, i32, i32
  }
  func.func @transform_1(%arg0: i32, %arg1: i32) -> (i32, i32) {
    %c0_i32 = arith.constant 0 : i32
    %c0_i32_0 = arith.constant 0 : i32
    %c0_i32_1 = arith.constant 0 : i32
    return %c0_i32, %c0_i32_0 : i32, i32
  }
  func.func @transform_2(%arg0: i32, %arg1: i32) -> (i32, i32) {
    %c0_i32 = arith.constant 0 : i32
    %c0_i32_0 = arith.constant 0 : i32
    %c0_i32_1 = arith.constant 0 : i32
    return %c0_i32, %c0_i32_0 : i32, i32
  }
  func.func @transform_3(%arg0: i32, %arg1: i32) -> (i32, i32) {
    %c0_i32 = arith.constant 0 : i32
    %c0_i32_0 = arith.constant 0 : i32
    %c0_i32_1 = arith.constant 0 : i32
    return %c0_i32, %c0_i32_0 : i32, i32
  }
  func.func @transform_4(%arg0: i32, %arg1: i32) -> (i32, i32, i32) {
    %c0_i32 = arith.constant 0 : i32
    %c0_i32_0 = arith.constant 0 : i32
    %c0_i32_1 = arith.constant 0 : i32
    return %arg0, %c0_i32, %c0_i32_0 : i32, i32, i32
  }
  func.func @transform_5(%arg0: i32, %arg1: i32) -> (i32, i32, i32) {
    %c0_i32 = arith.constant 0 : i32
    %c0_i32_0 = arith.constant 0 : i32
    return %arg0, %c0_i32, %arg1 : i32, i32, i32
  }
}

</mosaic_0001>

<bundles_post_ra>
// kernel: tpu_custom_call.1
= control target key start
LH: loop header
LB: loop body
LE: loop exit
PB: predicated region body
PF: predicated region fallthrough
CT: control target
= control target key end

     0   :  { %s3827_s0 = inlined_call_operand.hbm [shape: f32[2,32,256], index: 0, kind: input, shape index: {}]   ;;  %s3828_s1 = inlined_call_operand.hbm [shape: f32[256,2048], index: 1, kind: input, shape index: {}]   ;;  %s3829_s2 = inlined_call_operand.hbm [shape: f32[32,2048], index: 2, kind: input, shape index: {}]   ;;  %s3830_s3 = inlined_call_operand.hbm [shape: f32[1,2048], index: 3, kind: input, shape index: {}]   ;;  %s3831_s4 = inlined_call_operand.hbm [shape: f32[2,32,2048], index: 4, kind: input, shape index: {}]   ;;  %s3832_s5 = inlined_call_operand.hbm [shape: f32[2,32,2048], index: 5, kind: output, shape index: {}]  }
   0x1   :  { %3845 = sst [smem:[#allocation19_spill]] %s3827_s0 }
   0x2   :  { %3846 = sst [smem:[#allocation20_spill]] %s3828_s1 }
   0x3   :  { %10 = vsyncpa [#allocation3], 0 }
   0x4   :  { %12 = vsyncpa [#allocation3 + $0x1], 0 }
   0x5   :  { %13 = vsyncpa [#allocation6], 0 }
   0x6   :  { %14 = vsyncpa [#allocation9], 0 }
   0x7   :  { %15 = vsyncpa [#allocation4], 0 }
   0x8   :  { %17 = vsyncpa [#allocation4 + $0x1], 0  ;;  %s3004_s18 = smov 0   ;;  %s3006_s19 = smov 0  }
   0x9   :  { %s3008_s20 = smov 0   ;;  %s3010_s21 = smov 0  }
   0xa   :  { %s3012_s22 = smov 0   ;;  %s3014_s23 = smov 0  }
   0xb LB: > { %s3035_s24 = sadd.s32 4294967295, %s2960_s23   ;;  %s2515_s25 = sadd.s32 4294967294, %s2960_s23   ;;  %s2960_s23 = sphi %s3014_s23, %s23_s23   ;;  %s2956_s22 = sphi %s3012_s22, %s3879_s22   ;;  %s2952_s21 = sphi %s3010_s21, %s3878_s21   ;;  %s2948_s20 = sphi %s3008_s20, %s3877_s20   ;;  %s2944_s19 = sphi %s3006_s19, %s3876_s19   ;;  %s2940_s18 = sphi %s3004_s18, %s3875_s18  }
   0xc   : > { %p57_p0 = scmp.ne.s32.totalorder %s2944_s19, %s2940_s18  ;;  %p3838_p1 = scmp.eq.s32.totalorder %s3035_s24, 0 }
   0xd   : > { %p178_p3 = scmp.eq.s32.totalorder %s2515_s25, 1  ;;  %p2516_p5 = scmp.ge.s32.totalorder %s2960_s23, 1 }
   0xe   : > { %p3044_p4 = por %p3838_p1, %p57_p0  ;;  %p185_p7 = scmp.lt.s32.totalorder %s2960_s23, 3 }
   0xf   : > { %p3049_p6 = por %p178_p3, %p57_p0  ;;  %s2962_s29 = smov [#allocation5]  }
  0x10   : > { %s3847_s26 = scalar_select %p3044_p4, 1, 0 }
  0x11   : > { %s3848_s27 = scalar_select %p3049_p6, 1, 0 }
  0x12   : > { %p3054_p8 = pnand %p2516_p5, %p185_p7  ;;  %s197_s30 = sshll.u32 %s2962_s29, 4  ;;  %s198_s30 = int_to_ptr.vmem [resolvable:$true] %s197_s30 }
  0x13   : > { %3849 = sst [smem:[#allocation17_spill]] %s3848_s27  ;;  %s35_s7 = sadd.s32 1, %s2956_s22 }
  0x14   : > { %s3850_s28 = scalar_select %p3054_p8, 1, 0 }
  0x15   : > { %p2576_p9 = pneg %p3054_p8  ;;  %s2745_s8 = scalar_lea.vmem %s198_s30, 65536 }
  0x16   : > { %p2746_p13 = scmp.ne.s32.totalorder %s198_s30, %s2745_s8  ;;  %p2753_p5 = scmp.lt.s32.totalorder %s198_s30, %s198_s30 }
  0x17   : > { %p3063_p11 = pnand %p2576_p9, %p3838_p1  ;;  %p2754_p7 = scmp.lt.s32.totalorder %s2745_s8, %s2745_s8 }
  0x19   : > { %p3839_p12 = pneg %p3063_p11  ;;  %p2755_p2 = por %p2754_p7, %p2753_p5 }
  0x1b   : > { %p2748_p0 = pnand %p2746_p13, %p3839_p12 }
  0x1d   : > { %p2749_p3 = pneg %p2748_p0 }
  0x1f   : > { %p2756_p10 = pnand %p2755_p2, %p2749_p3 }
  0x21   : > { %2759 = shalt.err (!%p2756_p10)
}
  0x22   : > { %s3833_s9 = smov 2048   ;;  %s3835_s10 = smov 128  }
  0x23   : > { %s3852_s1 = sld [smem:[#allocation20_spill]]  ;;  %p37_p2 = scmp.ge.s32.totalorder %s35_s7, 2 }
  0x24   : > { %s44_s13 = sadd.s32 1, %s2948_s20  ;;  %p51_p9 = scmp.ne.s32.totalorder %s2948_s20, %s2944_s19 }
  0x25   : > { %p52_p10 = scmp.eq.s32.totalorder %s2960_s23, 0  ;;  %s3881_s7 = smov (%p37_p2, %s35_s7), 0 }
  0x26   : > { %3853 = sst [smem:[#allocation18_spill]] %s3881_s7  ;;  %p3855_p0 = scmp.eq.s32.totalorder %s3035_s24, 1 }
  0x27   : > { %p3087_p13 = por %p52_p10, %p51_p9  ;;  %s39_s16 = ssub.s32 %s2956_s22, %s3881_s7 }
  0x28   : > { %p3093_p3 = por %p3855_p0, %p51_p9  ;;  %p2600_p5 = scmp.lt.s32.totalorder %s2960_s23, 2 }
  0x29   : > { %2579 = dma.hbm_to_vmem [thread:$0]  (!%p3063_p11), %s3852_s1, 65536, %s198_s30, [#allocation6], %s3833_s9, %s3833_s9, %s3835_s10  }
  0x2a   : > { %s3856_s15 = scalar_select %p3093_p3, 1, 0 }
  0x2b   : > { %p42_p7 = scmp.eq.s32.totalorder %s39_s16, 0  ;;  %s235_s17 = sand.u32 1, %s2960_s23  }
  0x2c   : > { %s237_s25 = sand.u32 1, %s2948_s20   ;;  %s2555_s8 = sshll.u32 %s2956_s22, 10 }
  0x2d   : > { %s3103_s29 = scalar_select %p42_p7, %s2948_s20, %s44_s13  }
  0x2e   : > { %s2521_s30 = sshll.u32 %s237_s25, 6  ;;  %s3857_s0 = sld [smem:[#allocation19_spill]] }
  0x2f   : > { %s239_s10 = scalar_lea.vmem [#allocation2], %s2521_s30  ;;  %p3113_p2 = pnand %p2600_p5, %p3087_p13 }
  0x30   : > { %s248_s1 = sshll.u32 %s239_s10, 4  ;;  %s3117_s16 = scalar_lea.sflag [#allocation3], %s235_s17  ;;  %s249_s1 = int_to_ptr.vmem [resolvable:$true] %s248_s1 }
  0x31   : > { %p3841_p9 = pneg %p3113_p2  ;;  %s2773_s13 = scalar_lea.vmem %s249_s1, 1024 }
  0x32   : > { %p2774_p10 = scmp.ne.s32.totalorder %s249_s1, %s2773_s13  ;;  %s2965_s30 = smov [#allocation2]  }
  0x33   : > { %s2778_s10 = sshll.u32 %s2965_s30, 4  ;;  %s2779_s10 = int_to_ptr.vmem [resolvable:$false] %s2778_s10 }
  0x34   : > { %s247_s9 = scalar_lea.hbm %s3857_s0, %s2555_s8  ;;  %p2776_p0 = pnand %p2774_p10, %p3841_p9 }
  0x35   : > { %s2780_s14 = scalar_lea.vmem %s2779_s10, 2048  ;;  %p2781_p13 = scmp.lt.s32.totalorder %s249_s1, %s2779_s10 }
  0x36   : > { %p2777_p7 = pneg %p2776_p0  ;;  %p2782_p5 = scmp.lt.s32.totalorder %s2780_s14, %s2773_s13 }
  0x38   : > { %p2783_p1 = por %p2782_p5, %p2781_p13 }
  0x3a   : > { %p2784_p12 = pnand %p2783_p1, %p2777_p7 }
  0x3c   : > { %2787 = shalt.err (!%p2784_p12)
}
  0x3d   : > { %s2966_s8 = smov 256   ;;  %s2967_s17 = smov 16  }
  0x3e   : > { %2589 = dma.hbm_to_vmem [thread:$0]  (!%p3113_p2), %s247_s9, 1024, %s249_s1, %s3117_s16, %s2966_s8, %s2966_s8, %s2967_s17  }
  0x3f   : > { %s2524_s11 = sshll.u32 %s237_s25, 9  ;;  %s2968_s12 = smov [#allocation7]  }
  0x40   : > { %s210_s0 = sshll.u32 %s2968_s12, 4  ;;  %s262_s30 = scalar_lea.vmem [#allocation10], %s2524_s11  ;;  %s211_s0 = int_to_ptr.vmem [resolvable:$true] %s210_s0 }
  0x41   : > { %s269_s7 = sshll.u32 %s262_s30, 4  ;;  %s2799_s10 = scalar_lea.vmem %s211_s0, 8192  ;;  %s270_s7 = int_to_ptr.vmem [resolvable:$true] %s269_s7 }
  0x42   : > { %p2800_p10 = scmp.ne.s32.totalorder %s211_s0, %s2799_s10  ;;  %p3859_p1 = pneg %p3063_p11 }
  0x43   : > { %p2807_p7 = scmp.lt.s32.totalorder %s211_s0, %s211_s0  ;;  %p2808_p13 = scmp.lt.s32.totalorder %s2799_s10, %s2799_s10 }
  0x44   : > { %p2802_p12 = pnand %p2800_p10, %p3859_p1 }
  0x45   : > { %p2809_p5 = por %p2808_p13, %p2807_p7 }
  0x46   : > { %p2803_p0 = pneg %p2802_p12 }
  0x48   : > { %p2810_p9 = pnand %p2809_p5, %p2803_p0 }
  0x4a   : > { %2813 = shalt.err (!%p2810_p9)
}
  0x4b   : > { %s3860_s1 = smov 128   ;;  %s3861_s9 = smov 2048  }
  0x4c   : > { %2582 = dma.hbm_to_vmem [thread:$0]  (!%p3063_p11), %s3829_s2, 8192, %s211_s0, [#allocation6], %s3861_s9, %s3861_s9, %s3860_s1  }
  0x4d   : > { %s2556_s14 = sshll.u32 %s2956_s22, 13  ;;  %s2969_s8 = smov [#allocation8]  }
  0x4e   : > { %s224_s17 = sshll.u32 %s2969_s8, 4  ;;  %s3144_s30 = scalar_lea.hbm %s3831_s4, %s2556_s14  ;;  %s225_s17 = int_to_ptr.vmem [resolvable:$true] %s224_s17 }
  0x4f   : > { %s2825_s10 = scalar_lea.vmem %s225_s17, 256  ;;  %p3862_p10 = pmov %p3859_p1 }
  0x50   : > { %p2826_p9 = scmp.ne.s32.totalorder %s225_s17, %s2825_s10  ;;  %p2833_p0 = scmp.lt.s32.totalorder %s225_s17, %s225_s17 }
  0x51   : > { %p2834_p7 = scmp.lt.s32.totalorder %s2825_s10, %s2825_s10 }
  0x52   : > { %p2828_p1 = pnand %p2826_p9, %p3862_p10 }
  0x53   : > { %p2835_p13 = por %p2834_p7, %p2833_p0 }
  0x54   : > { %p2829_p12 = pneg %p2828_p1 }
  0x56   : > { %p2836_p5 = pnand %p2835_p13, %p2829_p12 }
  0x58   : > { %2839 = shalt.err (!%p2836_p5)
}
  0x59   : > { %2585 = dma.hbm_to_vmem [thread:$0]  (!%p3063_p11), %s3830_s3, 256, %s225_s17, [#allocation9]  }
  0x5a   : > { %s2853_s13 = scalar_lea.vmem %s270_s7, 8192  ;;  %p3863_p3 = pneg %p3113_p2 }
  0x5b   : > { %p2854_p6 = scmp.ne.s32.totalorder %s270_s7, %s2853_s13  ;;  %s2970_s14 = smov [#allocation10]  }
  0x5c   : > { %s2858_s8 = sshll.u32 %s2970_s14, 4  ;;  %s2859_s8 = int_to_ptr.vmem [resolvable:$false] %s2858_s8 }
  0x5d   : > { %p2856_p4 = pnand %p2854_p6, %p3863_p3  ;;  %s2860_s11 = scalar_lea.vmem %s2859_s8, 16384 }
  0x5e   : > { %p2861_p9 = scmp.lt.s32.totalorder %s270_s7, %s2859_s8  ;;  %p2862_p10 = scmp.lt.s32.totalorder %s2860_s11, %s2853_s13 }
  0x5f   : > { %p2857_p8 = pneg %p2856_p4 }
  0x60   : > { %p2863_p1 = por %p2862_p10, %p2861_p9 }
  0x62   : > { %p2864_p12 = pnand %p2863_p1, %p2857_p8 }
  0x64   : > { %2867 = shalt.err (!%p2864_p12)
}
  0x65   : > { %2592 = dma.hbm_to_vmem [thread:$0]  (!%p3113_p2), %s3144_s30, 8192, %s270_s7, %s3117_s16, %s3861_s9, %s3861_s9, %s3860_s1  }
  0x66   : > { %p3864_p6 = scmp.ne.s32.totalorder %s3850_s28, 0 }
  0x67   : > { %s283_s6 = sand.u32 (!%p3864_p6), 1, %s3035_s24   ;;  %s3168_s17 = sand.u32 (!%p3864_p6), 1, %s2944_s19  }
  0x68   : > { %281 = sbr.rel (%p3864_p6) target bundleno = 686 (0x2ae), region = 40  ;;  %s2528_s12 = sshll.u32 (!%p3864_p6), %s3168_s17, 6 }
  0x69   : > { %s284_s10 = scalar_lea.sflag (!%p3864_p6), [#allocation3], %s283_s6  ;;  %s3171_s0 = scalar_lea.vmem (!%p3864_p6), [#allocation2], %s2528_s12 }
  0x6a   : > { %p3865_p4 = scmp.ne.s32.totalorder (!%p3864_p6), %s3847_s26, 0 }
  0x6d   : > { %2919 = dma.done.wait (%p3865_p4), %s284_s10, 1024  }
  0x6e   : > { %2921 = vsyncadd (%p3865_p4), %s284_s10, 4294966272  ;;  %p3866_p8 = scmp.eq.s32.totalorder %s3035_s24, 0 }
  0x70   : > { %2923 = dma.done.wait (%p3866_p8), [#allocation6], 73728   ;;  %p3867_p11 = pmov %p3866_p8 }
  0x71   : > { %p3868_p3 = pmov %p3866_p8 }
  0x72   : > { %2925 = vsyncadd (%p3867_p11), [#allocation6], 4294893568 }
  0x73   : > { %2927 = dma.done.wait (%p3868_p3), [#allocation9], 256   ;;  %p3869_p2 = pmov %p3868_p3 }
  0x74   : > { %s2532_s27 = sshll.u32 %s3168_s17, 9 }
  0x75   : > { %2929 = vsyncadd (%p3869_p2), [#allocation9], 4294967040  ;;  %s3188_s28 = scalar_lea.vmem [#allocation10], %s2532_s27 }
  0x76   : > { %2931 = dma.done.wait (%p3865_p4), %s284_s10, 8192  }
  0x77   : > { %2933 = vsyncadd (%p3865_p4), %s284_s10, 4294959104  ;;  %v591_v0 = vld [vmem:[#allocation5 + $0x788] sm:$0xff]  ;;  %v593_v1 = vld [vmem:[#allocation5 + $0x798] sm:$0xff]  ;;  %s3403_s24 = scalar_lea.vmem [#allocation11], %s2532_s27  ;;  %s2557_s26 = sshll.u32 %s2952_s21, 13 }
  0x78   : > { %v590_v2 = vld [vmem:[#allocation5 + $0x780] sm:$0xff]  ;;  %862 = vmatprep.subr.mxu0 %v591_v0  ;;  %951 = vmatprep.subr.mxu1 %v593_v1  ;;  %v592_v3 = vld [vmem:[#allocation5 + $0x790] sm:$0xff]  ;;  %v575_v4 = vld [vmem:[#allocation5 + $0x708] sm:$0xff]  ;;  %s2378_s7 = sshll.u32 %s3403_s24, 4  ;;  %s3769_s1 = scalar_lea.hbm %s3832_s5, %s2557_s26  ;;  %s3771_s7 = int_to_ptr.vmem [resolvable:$true] %s2378_s7 }
  0x79   : > { %v577_v5 = vld [vmem:[#allocation5 + $0x718] sm:$0xff]  ;;  %863 = vmatpush1.msra.mxu0 %v590_v2  ;;  %952 = vmatpush1.msra.mxu1 %v592_v3  ;;  %v574_v6 = vld [vmem:[#allocation5 + $0x700] sm:$0xff]  ;;  %v576_v7 = vld [vmem:[#allocation5 + $0x710] sm:$0xff]  ;;  %s2363_s9 = scalar_lea.sflag [#allocation4], %s3168_s17  ;;  %s2868_s30 = scalar_lea.vmem %s3771_s7, 8192 }
  0x7a   : > { %v559_v8 = vld [vmem:[#allocation5 + $0x688] sm:$0xff]  ;;  %864 = vmatprep.subr.mxu0 %v575_v4  ;;  %953 = vmatprep.subr.mxu1 %v577_v5  ;;  %v561_v9 = vld [vmem:[#allocation5 + $0x698] sm:$0xff]  ;;  %v558_v10 = vld [vmem:[#allocation5 + $0x680] sm:$0xff]  ;;  %p2869_p0 = scmp.ne.s32.totalorder %s3771_s7, %s2868_s30  ;;  %p3870_p7 = scmp.ne.s32.totalorder %s3856_s15, 0 }
  0x7b   : > { %v560_v11 = vld [vmem:[#allocation5 + $0x690] sm:$0xff]  ;;  %865 = vmatpush1.msra.mxu0 %v574_v6  ;;  %954 = vmatpush1.msra.mxu1 %v576_v7  ;;  %v543_v12 = vld [vmem:[#allocation5 + $0x608] sm:$0xff]  ;;  %v545_v13 = vld [vmem:[#allocation5 + $0x618] sm:$0xff]  ;;  %s2971_s25 = smov [#allocation11]  }
  0x7c   : > { %866 = vmatprep.subr.mxu0 %v559_v8  ;;  %955 = vmatprep.subr.mxu1 %v561_v9  ;;  %v542_v14 = vld [vmem:[#allocation5 + $0x600] sm:$0xff]  ;;  %v544_v15 = vld [vmem:[#allocation5 + $0x610] sm:$0xff]  ;;  %v527_v16 = vld [vmem:[#allocation5 + $0x588] sm:$0xff]  ;;  %p2870_p13 = pnand %p2869_p0, %p3870_p7  ;;  %s2872_s13 = sshll.u32 %s2971_s25, 4  ;;  %s2873_s13 = int_to_ptr.vmem [resolvable:$false] %s2872_s13 }
  0x7d   : > { %867 = vmatpush1.msra.mxu0 %v558_v10  ;;  %956 = vmatpush1.msra.mxu1 %v560_v11  ;;  %v529_v17 = vld [vmem:[#allocation5 + $0x598] sm:$0xff]  ;;  %v526_v18 = vld [vmem:[#allocation5 + $0x580] sm:$0xff]  ;;  %v528_v19 = vld [vmem:[#allocation5 + $0x590] sm:$0xff]  ;;  %s2874_s14 = scalar_lea.vmem %s2873_s13, 16384  ;;  %p2875_p9 = scmp.lt.s32.totalorder %s3771_s7, %s2873_s13 }
  0x7e   : > { %868 = vmatprep.subr.mxu0 %v543_v12  ;;  %957 = vmatprep.subr.mxu1 %v545_v13  ;;  %v511_v20 = vld [vmem:[#allocation5 + $0x508] sm:$0xff]  ;;  %v513_v21 = vld [vmem:[#allocation5 + $0x518] sm:$0xff]  ;;  %v510_v22 = vld [vmem:[#allocation5 + $0x500] sm:$0xff]  ;;  %p2871_p5 = pneg %p2870_p13  ;;  %p2876_p10 = scmp.lt.s32.totalorder %s2874_s14, %s2868_s30 }
  0x7f   : > { %869 = vmatpush1.msra.mxu0 %v542_v14  ;;  %958 = vmatpush1.msra.mxu1 %v544_v15  ;;  %v512_v23 = vld [vmem:[#allocation5 + $0x510] sm:$0xff]  ;;  %v495_v24 = vld [vmem:[#allocation5 + $0x488] sm:$0xff]  ;;  %v497_v25 = vld [vmem:[#allocation5 + $0x498] sm:$0xff] }
  0x80   : > { %870 = vmatprep.subr.mxu0 %v527_v16  ;;  %959 = vmatprep.subr.mxu1 %v529_v17  ;;  %v494_v26 = vld [vmem:[#allocation5 + $0x480] sm:$0xff]  ;;  %v496_v27 = vld [vmem:[#allocation5 + $0x490] sm:$0xff]  ;;  %v479_v28 = vld [vmem:[#allocation5 + $0x408] sm:$0xff]  ;;  %p2877_p1 = por %p2876_p10, %p2875_p9 }
  0x81   : > { %871 = vmatpush1.msra.mxu0 %v526_v18  ;;  %960 = vmatpush1.msra.mxu1 %v528_v19  ;;  %v481_v29 = vld [vmem:[#allocation5 + $0x418] sm:$0xff]  ;;  %v478_v30 = vld [vmem:[#allocation5 + $0x400] sm:$0xff]  ;;  %v480_v31 = vld [vmem:[#allocation5 + $0x410] sm:$0xff] }
  0x82   : > { %872 = vmatprep.subr.mxu0 %v511_v20  ;;  %961 = vmatprep.subr.mxu1 %v513_v21  ;;  %v463_v32 = vld [vmem:[#allocation5 + $0x388] sm:$0xff]  ;;  %v465_v33 = vld [vmem:[#allocation5 + $0x398] sm:$0xff]  ;;  %v462_v34 = vld [vmem:[#allocation5 + $0x380] sm:$0xff]  ;;  %p2878_p12 = pnand %p2877_p1, %p2871_p5 }
  0x83   : > { %873 = vmatpush1.msra.mxu0 %v510_v22  ;;  %962 = vmatpush1.msra.mxu1 %v512_v23  ;;  %v464_v35 = vld [vmem:[#allocation5 + $0x390] sm:$0xff]  ;;  %v447_v36 = vld [vmem:[#allocation5 + $0x308] sm:$0xff]  ;;  %v449_v37 = vld [vmem:[#allocation5 + $0x318] sm:$0xff] }
  0x84   : > { %874 = vmatprep.subr.mxu0 %v495_v24  ;;  %963 = vmatprep.subr.mxu1 %v497_v25  ;;  %v446_v38 = vld [vmem:[#allocation5 + $0x300] sm:$0xff]  ;;  %v448_v39 = vld [vmem:[#allocation5 + $0x310] sm:$0xff]  ;;  %v431_v40 = vld [vmem:[#allocation5 + $0x288] sm:$0xff] }
  0x85   : > { %875 = vmatpush1.msra.mxu0 %v494_v26  ;;  %964 = vmatpush1.msra.mxu1 %v496_v27  ;;  %v433_v41 = vld [vmem:[#allocation5 + $0x298] sm:$0xff]  ;;  %v430_v42 = vld [vmem:[#allocation5 + $0x280] sm:$0xff]  ;;  %v432_v43 = vld [vmem:[#allocation5 + $0x290] sm:$0xff] }
  0x86   : > { %876 = vmatprep.subr.mxu0 %v479_v28  ;;  %965 = vmatprep.subr.mxu1 %v481_v29  ;;  %v415_v44 = vld [vmem:[#allocation5 + $0x208] sm:$0xff]  ;;  %v417_v45 = vld [vmem:[#allocation5 + $0x218] sm:$0xff]  ;;  %v414_v46 = vld [vmem:[#allocation5 + $0x200] sm:$0xff] }
  0x87   : > { %877 = vmatpush1.msra.mxu0 %v478_v30  ;;  %966 = vmatpush1.msra.mxu1 %v480_v31  ;;  %v416_v47 = vld [vmem:[#allocation5 + $0x210] sm:$0xff]  ;;  %v399_v48 = vld [vmem:[#allocation5 + $0x188] sm:$0xff]  ;;  %v401_v49 = vld [vmem:[#allocation5 + $0x198] sm:$0xff] }
  0x88   : > { %878 = vmatprep.subr.mxu0 %v463_v32  ;;  %967 = vmatprep.subr.mxu1 %v465_v33  ;;  %v398_v50 = vld [vmem:[#allocation5 + $0x180] sm:$0xff]  ;;  %v400_v51 = vld [vmem:[#allocation5 + $0x190] sm:$0xff]  ;;  %v383_v52 = vld [vmem:[#allocation5 + $0x108] sm:$0xff] }
  0x89   : > { %879 = vmatpush1.msra.mxu0 %v462_v34  ;;  %968 = vmatpush1.msra.mxu1 %v464_v35  ;;  %v385_v53 = vld [vmem:[#allocation5 + $0x118] sm:$0xff]  ;;  %v382_v54 = vld [vmem:[#allocation5 + $0x100] sm:$0xff]  ;;  %v384_v55 = vld [vmem:[#allocation5 + $0x110] sm:$0xff] }
  0x8a   : > { %880 = vmatprep.subr.mxu0 %v447_v36  ;;  %969 = vmatprep.subr.mxu1 %v449_v37  ;;  %v367_v56 = vld [vmem:[#allocation5 + $0x88] sm:$0xff]  ;;  %v369_v57 = vld [vmem:[#allocation5 + $0x98] sm:$0xff]  ;;  %v366_v58 = vld [vmem:[#allocation5 + $0x80] sm:$0xff] }
  0x8b   : > { %881 = vmatpush1.msra.mxu0 %v446_v38  ;;  %970 = vmatpush1.msra.mxu1 %v448_v39  ;;  %v368_v59 = vld [vmem:[#allocation5 + $0x90] sm:$0xff]  ;;  %v351_v60 = vld [vmem:[#allocation5 + $0x8] sm:$0xff]  ;;  %v353_v61 = vld [vmem:[#allocation5 + $0x18] sm:$0xff] }
  0x8c   : > { %882 = vmatprep.subr.mxu0 %v431_v40  ;;  %971 = vmatprep.subr.mxu1 %v433_v41  ;;  %v350_v62 = vld [vmem:[#allocation5] sm:$0xff]  ;;  %v352_v63 = vld [vmem:[#allocation5 + $0x10] sm:$0xff]  ;;  %v847_v0 = vld [vmem:[#allocation5 + $0xf88] sm:$0xff] }
  0x8d   : > { %883 = vmatpush1.msra.mxu0 %v430_v42  ;;  %972 = vmatpush1.msra.mxu1 %v432_v43  ;;  %v849_v1 = vld [vmem:[#allocation5 + $0xf98] sm:$0xff]  ;;  %v846_v2 = vld [vmem:[#allocation5 + $0xf80] sm:$0xff]  ;;  %v848_v3 = vld [vmem:[#allocation5 + $0xf90] sm:$0xff] }
  0x8e   : > { %884 = vmatprep.subr.mxu0 %v415_v44  ;;  %973 = vmatprep.subr.mxu1 %v417_v45  ;;  %v831_v4 = vld [vmem:[#allocation5 + $0xf08] sm:$0xff]  ;;  %v833_v5 = vld [vmem:[#allocation5 + $0xf18] sm:$0xff]  ;;  %v830_v6 = vld [vmem:[#allocation5 + $0xf00] sm:$0xff] }
  0x8f   : > { %885 = vmatpush1.msra.mxu0 %v414_v46  ;;  %974 = vmatpush1.msra.mxu1 %v416_v47  ;;  %v832_v7 = vld [vmem:[#allocation5 + $0xf10] sm:$0xff]  ;;  %v815_v8 = vld [vmem:[#allocation5 + $0xe88] sm:$0xff]  ;;  %v817_v9 = vld [vmem:[#allocation5 + $0xe98] sm:$0xff] }
  0x90   : > { %886 = vmatprep.subr.mxu0 %v399_v48  ;;  %975 = vmatprep.subr.mxu1 %v401_v49  ;;  %v814_v10 = vld [vmem:[#allocation5 + $0xe80] sm:$0xff]  ;;  %v816_v11 = vld [vmem:[#allocation5 + $0xe90] sm:$0xff]  ;;  %v799_v12 = vld [vmem:[#allocation5 + $0xe08] sm:$0xff] }
  0x91   : > { %887 = vmatpush1.msra.mxu0 %v398_v50  ;;  %976 = vmatpush1.msra.mxu1 %v400_v51  ;;  %v801_v13 = vld [vmem:[#allocation5 + $0xe18] sm:$0xff]  ;;  %v798_v14 = vld [vmem:[#allocation5 + $0xe00] sm:$0xff]  ;;  %v800_v15 = vld [vmem:[#allocation5 + $0xe10] sm:$0xff] }
  0x92   : > { %888 = vmatprep.subr.mxu0 %v383_v52  ;;  %977 = vmatprep.subr.mxu1 %v385_v53  ;;  %v783_v16 = vld [vmem:[#allocation5 + $0xd88] sm:$0xff]  ;;  %v785_v17 = vld [vmem:[#allocation5 + $0xd98] sm:$0xff]  ;;  %v782_v18 = vld [vmem:[#allocation5 + $0xd80] sm:$0xff] }
  0x93   : > { %889 = vmatpush1.msra.mxu0 %v382_v54  ;;  %978 = vmatpush1.msra.mxu1 %v384_v55  ;;  %v784_v19 = vld [vmem:[#allocation5 + $0xd90] sm:$0xff]  ;;  %v767_v20 = vld [vmem:[#allocation5 + $0xd08] sm:$0xff]  ;;  %v769_v21 = vld [vmem:[#allocation5 + $0xd18] sm:$0xff] }
  0x94   : > { %890 = vmatprep.subr.mxu0 %v367_v56  ;;  %979 = vmatprep.subr.mxu1 %v369_v57  ;;  %v766_v22 = vld [vmem:[#allocation5 + $0xd00] sm:$0xff]  ;;  %v768_v23 = vld [vmem:[#allocation5 + $0xd10] sm:$0xff]  ;;  %v751_v24 = vld [vmem:[#allocation5 + $0xc88] sm:$0xff] }
  0x95   : > { %891 = vmatpush1.msra.mxu0 %v366_v58  ;;  %980 = vmatpush1.msra.mxu1 %v368_v59  ;;  %v753_v25 = vld [vmem:[#allocation5 + $0xc98] sm:$0xff]  ;;  %v750_v26 = vld [vmem:[#allocation5 + $0xc80] sm:$0xff]  ;;  %v752_v27 = vld [vmem:[#allocation5 + $0xc90] sm:$0xff] }
  0x96   : > { %892 = vmatprep.subr.mxu0 %v351_v60  ;;  %981 = vmatprep.subr.mxu1 %v353_v61  ;;  %v735_v28 = vld [vmem:[#allocation5 + $0xc08] sm:$0xff]  ;;  %v737_v29 = vld [vmem:[#allocation5 + $0xc18] sm:$0xff]  ;;  %v734_v30 = vld [vmem:[#allocation5 + $0xc00] sm:$0xff] }
  0x97   : > { %893 = vmatpush1.msra.mxu0 %v350_v62  ;;  %982 = vmatpush1.msra.mxu1 %v352_v63  ;;  %v736_v31 = vld [vmem:[#allocation5 + $0xc10] sm:$0xff]  ;;  %v719_v32 = vld [vmem:[#allocation5 + $0xb88] sm:$0xff]  ;;  %v721_v33 = vld [vmem:[#allocation5 + $0xb98] sm:$0xff] }
  0x98   : > { %894 = vmatprep.subr.mxu0 %v847_v0  ;;  %983 = vmatprep.subr.mxu1 %v849_v1  ;;  %v718_v34 = vld [vmem:[#allocation5 + $0xb80] sm:$0xff]  ;;  %v720_v35 = vld [vmem:[#allocation5 + $0xb90] sm:$0xff]  ;;  %v703_v36 = vld [vmem:[#allocation5 + $0xb08] sm:$0xff] }
  0x99   : > { %895 = vmatpush2.msra.mxu0 %v846_v2  ;;  %984 = vmatpush2.msra.mxu1 %v848_v3  ;;  %v705_v37 = vld [vmem:[#allocation5 + $0xb18] sm:$0xff]  ;;  %v702_v38 = vld [vmem:[#allocation5 + $0xb00] sm:$0xff]  ;;  %v704_v39 = vld [vmem:[#allocation5 + $0xb10] sm:$0xff] }
  0x9a   : > { %896 = vmatprep.subr.mxu0 %v831_v4  ;;  %985 = vmatprep.subr.mxu1 %v833_v5  ;;  %v687_v40 = vld [vmem:[#allocation5 + $0xa88] sm:$0xff]  ;;  %v689_v41 = vld [vmem:[#allocation5 + $0xa98] sm:$0xff]  ;;  %v686_v42 = vld [vmem:[#allocation5 + $0xa80] sm:$0xff] }
  0x9b   : > { %897 = vmatpush2.msra.mxu0 %v830_v6  ;;  %986 = vmatpush2.msra.mxu1 %v832_v7  ;;  %v688_v43 = vld [vmem:[#allocation5 + $0xa90] sm:$0xff]  ;;  %v671_v44 = vld [vmem:[#allocation5 + $0xa08] sm:$0xff]  ;;  %v673_v45 = vld [vmem:[#allocation5 + $0xa18] sm:$0xff] }
  0x9c   : > { %898 = vmatprep.subr.mxu0 %v815_v8  ;;  %987 = vmatprep.subr.mxu1 %v817_v9  ;;  %v670_v46 = vld [vmem:[#allocation5 + $0xa00] sm:$0xff]  ;;  %v672_v47 = vld [vmem:[#allocation5 + $0xa10] sm:$0xff]  ;;  %v655_v48 = vld [vmem:[#allocation5 + $0x988] sm:$0xff] }
  0x9d   : > { %899 = vmatpush2.msra.mxu0 %v814_v10  ;;  %988 = vmatpush2.msra.mxu1 %v816_v11  ;;  %v657_v49 = vld [vmem:[#allocation5 + $0x998] sm:$0xff]  ;;  %v654_v50 = vld [vmem:[#allocation5 + $0x980] sm:$0xff]  ;;  %v656_v51 = vld [vmem:[#allocation5 + $0x990] sm:$0xff] }
  0x9e   : > { %900 = vmatprep.subr.mxu0 %v799_v12  ;;  %989 = vmatprep.subr.mxu1 %v801_v13  ;;  %v639_v52 = vld [vmem:[#allocation5 + $0x908] sm:$0xff]  ;;  %v641_v53 = vld [vmem:[#allocation5 + $0x918] sm:$0xff]  ;;  %v638_v54 = vld [vmem:[#allocation5 + $0x900] sm:$0xff] }
  0x9f   : > { %901 = vmatpush2.msra.mxu0 %v798_v14  ;;  %990 = vmatpush2.msra.mxu1 %v800_v15  ;;  %v640_v55 = vld [vmem:[#allocation5 + $0x910] sm:$0xff]  ;;  %v623_v56 = vld [vmem:[#allocation5 + $0x888] sm:$0xff]  ;;  %v625_v57 = vld [vmem:[#allocation5 + $0x898] sm:$0xff] }
  0xa0   : > { %902 = vmatprep.subr.mxu0 %v783_v16  ;;  %991 = vmatprep.subr.mxu1 %v785_v17  ;;  %v622_v58 = vld [vmem:[#allocation5 + $0x880] sm:$0xff]  ;;  %v624_v59 = vld [vmem:[#allocation5 + $0x890] sm:$0xff]  ;;  %v607_v60 = vld [vmem:[#allocation5 + $0x808] sm:$0xff] }
  0xa1   : > { %903 = vmatpush2.msra.mxu0 %v782_v18  ;;  %992 = vmatpush2.msra.mxu1 %v784_v19  ;;  %v609_v61 = vld [vmem:[#allocation5 + $0x818] sm:$0xff]  ;;  %v606_v62 = vld [vmem:[#allocation5 + $0x800] sm:$0xff]  ;;  %v3195_v63 = vld [vmem:[%s3171_s0 + $0x8] sm:$0xff] }
  0xa2   : > { %904 = vmatprep.subr.mxu0 %v767_v20  ;;  %993 = vmatprep.subr.mxu1 %v769_v21  ;;  %v608_v0 = vld [vmem:[#allocation5 + $0x810] sm:$0xff]  ;;  %v3198_v1 = vld [vmem:[%s3171_s0] sm:$0xff]  ;;  %v595_v2 = vld [vmem:[#allocation5 + $0x7a8] sm:$0xff] }
  0xa3   : > { %905 = vmatpush2.msra.mxu0 %v766_v22  ;;  %994 = vmatpush2.msra.mxu1 %v768_v23  ;;  %v597_v3 = vld [vmem:[#allocation5 + $0x7b8] sm:$0xff]  ;;  %v594_v4 = vld [vmem:[#allocation5 + $0x7a0] sm:$0xff]  ;;  %v596_v5 = vld [vmem:[#allocation5 + $0x7b0] sm:$0xff] }
  0xa4   : > { %906 = vmatprep.subr.mxu0 %v751_v24  ;;  %995 = vmatprep.subr.mxu1 %v753_v25  ;;  %v579_v6 = vld [vmem:[#allocation5 + $0x728] sm:$0xff]  ;;  %v581_v7 = vld [vmem:[#allocation5 + $0x738] sm:$0xff]  ;;  %v578_v9 = vld [vmem:[#allocation5 + $0x720] sm:$0xff] }
  0xa5   : > { %907 = vmatpush2.msra.mxu0 %v750_v26  ;;  %996 = vmatpush2.msra.mxu1 %v752_v27  ;;  %v3205_v8 = vld [vmem:[%s3171_s0 + $0x18] sm:$0xff]  ;;  %v580_v10 = vld [vmem:[#allocation5 + $0x730] sm:$0xff]  ;;  %v563_v12 = vld [vmem:[#allocation5 + $0x6a8] sm:$0xff] }
  0xa6   : > { %908 = vmatprep.subr.mxu0 %v735_v28  ;;  %997 = vmatprep.subr.mxu1 %v737_v29  ;;  %v3208_v11 = vld [vmem:[%s3171_s0 + $0x10] sm:$0xff]  ;;  %v565_v13 = vld [vmem:[#allocation5 + $0x6b8] sm:$0xff]  ;;  %v562_v14 = vld [vmem:[#allocation5 + $0x6a0] sm:$0xff] }
  0xa7   : > { %909 = vmatpush2.msra.mxu0 %v734_v30  ;;  %998 = vmatpush2.msra.mxu1 %v736_v31  ;;  %v564_v15 = vld [vmem:[#allocation5 + $0x6b0] sm:$0xff]  ;;  %v547_v16 = vld [vmem:[#allocation5 + $0x628] sm:$0xff]  ;;  %v549_v17 = vld [vmem:[#allocation5 + $0x638] sm:$0xff] }
  0xa8   : > { %910 = vmatprep.subr.mxu0 %v719_v32  ;;  %999 = vmatprep.subr.mxu1 %v721_v33  ;;  %v3215_v18 = vld [vmem:[%s3171_s0 + $0x28] sm:$0xff]  ;;  %v546_v19 = vld [vmem:[#allocation5 + $0x620] sm:$0xff]  ;;  %v548_v20 = vld [vmem:[#allocation5 + $0x630] sm:$0xff] }
  0xa9   : > { %911 = vmatpush2.msra.mxu0 %v718_v34  ;;  %1000 = vmatpush2.msra.mxu1 %v720_v35  ;;  %v3218_v21 = vld [vmem:[%s3171_s0 + $0x20] sm:$0xff]  ;;  %v531_v22 = vld [vmem:[#allocation5 + $0x5a8] sm:$0xff]  ;;  %v533_v23 = vld [vmem:[#allocation5 + $0x5b8] sm:$0xff] }
  0xaa   : > { %912 = vmatprep.subr.mxu0 %v703_v36  ;;  %1001 = vmatprep.subr.mxu1 %v705_v37  ;;  %v530_v24 = vld [vmem:[#allocation5 + $0x5a0] sm:$0xff]  ;;  %v532_v25 = vld [vmem:[#allocation5 + $0x5b0] sm:$0xff]  ;;  %v515_v26 = vld [vmem:[#allocation5 + $0x528] sm:$0xff] }
  0xab   : > { %913 = vmatpush2.msra.mxu0 %v702_v38  ;;  %1002 = vmatpush2.msra.mxu1 %v704_v39  ;;  %v517_v27 = vld [vmem:[#allocation5 + $0x538] sm:$0xff]  ;;  %v514_v29 = vld [vmem:[#allocation5 + $0x520] sm:$0xff]  ;;  %v516_v30 = vld [vmem:[#allocation5 + $0x530] sm:$0xff] }
  0xac   : > { %914 = vmatprep.subr.mxu0 %v687_v40  ;;  %1003 = vmatprep.subr.mxu1 %v689_v41  ;;  %v3225_v28 = vld [vmem:[%s3171_s0 + $0x38] sm:$0xff]  ;;  %v3228_v31 = vld [vmem:[%s3171_s0 + $0x30] sm:$0xff]  ;;  %v499_v32 = vld [vmem:[#allocation5 + $0x4a8] sm:$0xff] }
  0xad   : > { %915 = vmatpush2.msra.mxu0 %v686_v42  ;;  %1004 = vmatpush2.msra.mxu1 %v688_v43  ;;  %v501_v33 = vld [vmem:[#allocation5 + $0x4b8] sm:$0xff]  ;;  %v498_v34 = vld [vmem:[#allocation5 + $0x4a0] sm:$0xff]  ;;  %v500_v35 = vld [vmem:[#allocation5 + $0x4b0] sm:$0xff] }
  0xae   : > { %916 = vmatprep.subr.mxu0 %v671_v44  ;;  %1005 = vmatprep.subr.mxu1 %v673_v45  ;;  %v483_v36 = vld [vmem:[#allocation5 + $0x428] sm:$0xff]  ;;  %v485_v37 = vld [vmem:[#allocation5 + $0x438] sm:$0xff]  ;;  %v482_v38 = vld [vmem:[#allocation5 + $0x420] sm:$0xff] }
  0xaf   : > { %917 = vmatpush2.msra.mxu0 %v670_v46  ;;  %1006 = vmatpush2.msra.mxu1 %v672_v47  ;;  %v484_v39 = vld [vmem:[#allocation5 + $0x430] sm:$0xff]  ;;  %v467_v40 = vld [vmem:[#allocation5 + $0x3a8] sm:$0xff]  ;;  %v469_v41 = vld [vmem:[#allocation5 + $0x3b8] sm:$0xff] }
  0xb0   : > { %918 = vmatprep.subr.mxu0 %v655_v48  ;;  %1007 = vmatprep.subr.mxu1 %v657_v49  ;;  %v466_v42 = vld [vmem:[#allocation5 + $0x3a0] sm:$0xff]  ;;  %v468_v43 = vld [vmem:[#allocation5 + $0x3b0] sm:$0xff]  ;;  %v451_v44 = vld [vmem:[#allocation5 + $0x328] sm:$0xff] }
  0xb1   : > { %919 = vmatpush2.msra.mxu0 %v654_v50  ;;  %1008 = vmatpush2.msra.mxu1 %v656_v51  ;;  %v453_v45 = vld [vmem:[#allocation5 + $0x338] sm:$0xff]  ;;  %v450_v46 = vld [vmem:[#allocation5 + $0x320] sm:$0xff]  ;;  %v452_v47 = vld [vmem:[#allocation5 + $0x330] sm:$0xff] }
  0xb2   : > { %920 = vmatprep.subr.mxu0 %v639_v52  ;;  %1009 = vmatprep.subr.mxu1 %v641_v53  ;;  %v435_v48 = vld [vmem:[#allocation5 + $0x2a8] sm:$0xff]  ;;  %v437_v49 = vld [vmem:[#allocation5 + $0x2b8] sm:$0xff]  ;;  %v434_v50 = vld [vmem:[#allocation5 + $0x2a0] sm:$0xff] }
  0xb3   : > { %921 = vmatpush2.msra.mxu0 %v638_v54  ;;  %1010 = vmatpush2.msra.mxu1 %v640_v55  ;;  %v436_v51 = vld [vmem:[#allocation5 + $0x2b0] sm:$0xff]  ;;  %v419_v52 = vld [vmem:[#allocation5 + $0x228] sm:$0xff]  ;;  %v421_v53 = vld [vmem:[#allocation5 + $0x238] sm:$0xff] }
  0xb4   : > { %922 = vmatprep.subr.mxu0 %v623_v56  ;;  %1011 = vmatprep.subr.mxu1 %v625_v57  ;;  %v418_v54 = vld [vmem:[#allocation5 + $0x220] sm:$0xff]  ;;  %v420_v55 = vld [vmem:[#allocation5 + $0x230] sm:$0xff]  ;;  %v403_v56 = vld [vmem:[#allocation5 + $0x1a8] sm:$0xff] }
  0xb5   : > { %923 = vmatpush2.msra.mxu0 %v622_v58  ;;  %1012 = vmatpush2.msra.mxu1 %v624_v59  ;;  %v405_v57 = vld [vmem:[#allocation5 + $0x1b8] sm:$0xff]  ;;  %v402_v58 = vld [vmem:[#allocation5 + $0x1a0] sm:$0xff]  ;;  %v404_v59 = vld [vmem:[#allocation5 + $0x1b0] sm:$0xff] }
  0xb6   : > { %924 = vmatprep.subr.mxu0 %v607_v60  ;;  %1013 = vmatprep.subr.mxu1 %v609_v61  ;;  %v387_v60 = vld [vmem:[#allocation5 + $0x128] sm:$0xff]  ;;  %v389_v61 = vld [vmem:[#allocation5 + $0x138] sm:$0xff] }
  0xb7   : > { %925 = vmatpush2.msra.mxu0 %v606_v62  ;;  %926 = vmatprep.mubr.f32.mxu0 %v3195_v63  ;;  %v386_v62 = vld [vmem:[#allocation5 + $0x120] sm:$0xff] }
  0xb8   : > { %1014 = vmatpush2.msra.mxu1 %v608_v0  ;;  %1015 = vmatprep.mubr.f32.mxu1 %v3195_v63  ;;  %v388_v0 = vld [vmem:[#allocation5 + $0x130] sm:$0xff] }
  0xb9   : > { %927 = vmatmul.mubr.f32.vlgmr.msra.gmra.mxu0 %v3198_v1  ;;  %1016 = vmatmul.mubr.f32.vlgmr.msra.gmra.mxu1 %v3198_v1 }
  0xba   : > { %1040 = vmatprep.subr.mxu0 %v595_v2  ;;  %1129 = vmatprep.subr.mxu1 %v597_v3  ;;  %v371_v2 = vld [vmem:[#allocation5 + $0xa8] sm:$0xff]  ;;  %v373_v3 = vld [vmem:[#allocation5 + $0xb8] sm:$0xff] }
  0xbb   : > { %1041 = vmatpush1.msra.mxu0 %v594_v4  ;;  %1130 = vmatpush1.msra.mxu1 %v596_v5  ;;  %v370_v4 = vld [vmem:[#allocation5 + $0xa0] sm:$0xff]  ;;  %v372_v5 = vld [vmem:[#allocation5 + $0xb0] sm:$0xff] }
  0xbc   : > { %1042 = vmatprep.subr.mxu0 %v579_v6  ;;  %1131 = vmatprep.subr.mxu1 %v581_v7  ;;  %v355_v6 = vld [vmem:[#allocation5 + $0x28] sm:$0xff]  ;;  %v357_v7 = vld [vmem:[#allocation5 + $0x38] sm:$0xff] }
  0xbd   : > { %932 = vmatprep.mubr.f32.mxu0 %v3205_v8  ;;  %1021 = vmatprep.mubr.f32.mxu1 %v3205_v8 }
  0xbe   : > { %1043 = vmatpush1.msra.mxu0 %v578_v9  ;;  %1132 = vmatpush1.msra.mxu1 %v580_v10  ;;  %v354_v9 = vld [vmem:[#allocation5 + $0x20] sm:$0xff]  ;;  %v356_v10 = vld [vmem:[#allocation5 + $0x30] sm:$0xff] }
  0xbf   : > { %933 = vmatmul.mubr.f32.gmra.mxu0 %v3208_v11  ;;  %1022 = vmatmul.mubr.f32.gmra.mxu1 %v3208_v11 }
  0xc0   : > { %1044 = vmatprep.subr.mxu0 %v563_v12  ;;  %1133 = vmatprep.subr.mxu1 %v565_v13  ;;  %v851_v12 = vld [vmem:[#allocation5 + $0xfa8] sm:$0xff]  ;;  %v853_v13 = vld [vmem:[#allocation5 + $0xfb8] sm:$0xff] }
  0xc1   : > { %1045 = vmatpush1.msra.mxu0 %v562_v14  ;;  %1134 = vmatpush1.msra.mxu1 %v564_v15  ;;  %v850_v14 = vld [vmem:[#allocation5 + $0xfa0] sm:$0xff]  ;;  %v852_v15 = vld [vmem:[#allocation5 + $0xfb0] sm:$0xff] }
  0xc2   : > { %1046 = vmatprep.subr.mxu0 %v547_v16  ;;  %1135 = vmatprep.subr.mxu1 %v549_v17  ;;  %v835_v16 = vld [vmem:[#allocation5 + $0xf28] sm:$0xff]  ;;  %v837_v17 = vld [vmem:[#allocation5 + $0xf38] sm:$0xff] }
  0xc3   : > { %938 = vmatprep.mubr.f32.mxu0 %v3215_v18  ;;  %1027 = vmatprep.mubr.f32.mxu1 %v3215_v18 }
  0xc4   : > { %1047 = vmatpush1.msra.mxu0 %v546_v19  ;;  %1136 = vmatpush1.msra.mxu1 %v548_v20  ;;  %v834_v19 = vld [vmem:[#allocation5 + $0xf20] sm:$0xff]  ;;  %v836_v20 = vld [vmem:[#allocation5 + $0xf30] sm:$0xff] }
  0xc5   : > { %939 = vmatmul.mubr.f32.gmra.mxu0 %v3218_v21  ;;  %1028 = vmatmul.mubr.f32.gmra.mxu1 %v3218_v21 }
  0xc6   : > { %1048 = vmatprep.subr.mxu0 %v531_v22  ;;  %1137 = vmatprep.subr.mxu1 %v533_v23  ;;  %v819_v22 = vld [vmem:[#allocation5 + $0xea8] sm:$0xff]  ;;  %v821_v23 = vld [vmem:[#allocation5 + $0xeb8] sm:$0xff] }
  0xc7   : > { %1049 = vmatpush1.msra.mxu0 %v530_v24  ;;  %1138 = vmatpush1.msra.mxu1 %v532_v25  ;;  %v818_v24 = vld [vmem:[#allocation5 + $0xea0] sm:$0xff]  ;;  %v820_v25 = vld [vmem:[#allocation5 + $0xeb0] sm:$0xff] }
  0xc8   : > { %1050 = vmatprep.subr.mxu0 %v515_v26  ;;  %1139 = vmatprep.subr.mxu1 %v517_v27  ;;  %v803_v26 = vld [vmem:[#allocation5 + $0xe28] sm:$0xff]  ;;  %v805_v27 = vld [vmem:[#allocation5 + $0xe38] sm:$0xff] }
  0xc9   : > { %944 = vmatprep.mubr.f32.mxu0 %v3225_v28  ;;  %1033 = vmatprep.mubr.f32.mxu1 %v3225_v28 }
  0xca   : > { %1051 = vmatpush1.msra.mxu0 %v514_v29  ;;  %1140 = vmatpush1.msra.mxu1 %v516_v30  ;;  %v802_v29 = vld [vmem:[#allocation5 + $0xe20] sm:$0xff]  ;;  %v804_v30 = vld [vmem:[#allocation5 + $0xe30] sm:$0xff] }
  0xcb   : > { %945 = vmatmul.mubr.f32.gmra.mxu0 %v3228_v31  ;;  %1034 = vmatmul.mubr.f32.gmra.mxu1 %v3228_v31 }
  0xcc   : > { %1052 = vmatprep.subr.mxu0 %v499_v32  ;;  %1141 = vmatprep.subr.mxu1 %v501_v33  ;;  %v787_v32 = vld [vmem:[#allocation5 + $0xda8] sm:$0xff]  ;;  %v789_v33 = vld [vmem:[#allocation5 + $0xdb8] sm:$0xff] }
  0xcd   : > { %1053 = vmatpush1.msra.mxu0 %v498_v34  ;;  %1142 = vmatpush1.msra.mxu1 %v500_v35  ;;  %v786_v34 = vld [vmem:[#allocation5 + $0xda0] sm:$0xff]  ;;  %v788_v35 = vld [vmem:[#allocation5 + $0xdb0] sm:$0xff] }
  0xce   : > { %1054 = vmatprep.subr.mxu0 %v483_v36  ;;  %1143 = vmatprep.subr.mxu1 %v485_v37  ;;  %v771_v36 = vld [vmem:[#allocation5 + $0xd28] sm:$0xff]  ;;  %v773_v37 = vld [vmem:[#allocation5 + $0xd38] sm:$0xff] }
  0xcf   : > { %1055 = vmatpush1.msra.mxu0 %v482_v38  ;;  %1144 = vmatpush1.msra.mxu1 %v484_v39  ;;  %v770_v38 = vld [vmem:[#allocation5 + $0xd20] sm:$0xff]  ;;  %v772_v39 = vld [vmem:[#allocation5 + $0xd30] sm:$0xff] }
  0xd0   : > { %1056 = vmatprep.subr.mxu0 %v467_v40  ;;  %1145 = vmatprep.subr.mxu1 %v469_v41  ;;  %v755_v40 = vld [vmem:[#allocation5 + $0xca8] sm:$0xff]  ;;  %v757_v41 = vld [vmem:[#allocation5 + $0xcb8] sm:$0xff] }
  0xd1   : > { %1057 = vmatpush1.msra.mxu0 %v466_v42  ;;  %1146 = vmatpush1.msra.mxu1 %v468_v43  ;;  %v754_v42 = vld [vmem:[#allocation5 + $0xca0] sm:$0xff]  ;;  %v756_v43 = vld [vmem:[#allocation5 + $0xcb0] sm:$0xff] }
  0xd2   : > { %1058 = vmatprep.subr.mxu0 %v451_v44  ;;  %1147 = vmatprep.subr.mxu1 %v453_v45  ;;  %v739_v44 = vld [vmem:[#allocation5 + $0xc28] sm:$0xff]  ;;  %v741_v45 = vld [vmem:[#allocation5 + $0xc38] sm:$0xff] }
  0xd3   : > { %1059 = vmatpush1.msra.mxu0 %v450_v46  ;;  %1148 = vmatpush1.msra.mxu1 %v452_v47  ;;  %v738_v46 = vld [vmem:[#allocation5 + $0xc20] sm:$0xff]  ;;  %v740_v47 = vld [vmem:[#allocation5 + $0xc30] sm:$0xff] }
  0xd4   : > { %1060 = vmatprep.subr.mxu0 %v435_v48  ;;  %1149 = vmatprep.subr.mxu1 %v437_v49  ;;  %v723_v48 = vld [vmem:[#allocation5 + $0xba8] sm:$0xff]  ;;  %v725_v49 = vld [vmem:[#allocation5 + $0xbb8] sm:$0xff] }
  0xd5   : > { %1061 = vmatpush1.msra.mxu0 %v434_v50  ;;  %1150 = vmatpush1.msra.mxu1 %v436_v51  ;;  %v722_v50 = vld [vmem:[#allocation5 + $0xba0] sm:$0xff]  ;;  %v724_v51 = vld [vmem:[#allocation5 + $0xbb0] sm:$0xff] }
  0xd6   : > { %1062 = vmatprep.subr.mxu0 %v419_v52  ;;  %1151 = vmatprep.subr.mxu1 %v421_v53  ;;  %v707_v52 = vld [vmem:[#allocation5 + $0xb28] sm:$0xff]  ;;  %v709_v53 = vld [vmem:[#allocation5 + $0xb38] sm:$0xff] }
  0xd7   : > { %1063 = vmatpush1.msra.mxu0 %v418_v54  ;;  %1152 = vmatpush1.msra.mxu1 %v420_v55  ;;  %v706_v54 = vld [vmem:[#allocation5 + $0xb20] sm:$0xff]  ;;  %v708_v55 = vld [vmem:[#allocation5 + $0xb30] sm:$0xff] }
  0xd8   : > { %1064 = vmatprep.subr.mxu0 %v403_v56  ;;  %1153 = vmatprep.subr.mxu1 %v405_v57  ;;  %v691_v56 = vld [vmem:[#allocation5 + $0xaa8] sm:$0xff]  ;;  %v693_v57 = vld [vmem:[#allocation5 + $0xab8] sm:$0xff] }
  0xd9   : > { %1065 = vmatpush1.msra.mxu0 %v402_v58  ;;  %1154 = vmatpush1.msra.mxu1 %v404_v59  ;;  %v690_v58 = vld [vmem:[#allocation5 + $0xaa0] sm:$0xff]  ;;  %v692_v59 = vld [vmem:[#allocation5 + $0xab0] sm:$0xff] }
  0xda   : > { %1066 = vmatprep.subr.mxu0 %v387_v60  ;;  %1155 = vmatprep.subr.mxu1 %v389_v61  ;;  %v675_v60 = vld [vmem:[#allocation5 + $0xa28] sm:$0xff]  ;;  %v677_v61 = vld [vmem:[#allocation5 + $0xa38] sm:$0xff] }
  0xdb   : > { %1067 = vmatpush1.msra.mxu0 %v386_v62  ;;  %1156 = vmatpush1.msra.mxu1 %v388_v0  ;;  %v674_v62 = vld [vmem:[#allocation5 + $0xa20] sm:$0xff]  ;;  %v676_v0 = vld [vmem:[#allocation5 + $0xa30] sm:$0xff] }
  0xdc   : > { %1068 = vmatprep.subr.mxu0 %v371_v2  ;;  %1157 = vmatprep.subr.mxu1 %v373_v3  ;;  %v659_v2 = vld [vmem:[#allocation5 + $0x9a8] sm:$0xff]  ;;  %v661_v3 = vld [vmem:[#allocation5 + $0x9b8] sm:$0xff] }
  0xdd   : > { %1069 = vmatpush1.msra.mxu0 %v370_v4  ;;  %1158 = vmatpush1.msra.mxu1 %v372_v5  ;;  %v658_v4 = vld [vmem:[#allocation5 + $0x9a0] sm:$0xff]  ;;  %v660_v5 = vld [vmem:[#allocation5 + $0x9b0] sm:$0xff] }
  0xde   : > { %1070 = vmatprep.subr.mxu0 %v355_v6  ;;  %1159 = vmatprep.subr.mxu1 %v357_v7  ;;  %v643_v6 = vld [vmem:[#allocation5 + $0x928] sm:$0xff]  ;;  %v645_v7 = vld [vmem:[#allocation5 + $0x938] sm:$0xff] }
  0xdf   : > { %1071 = vmatpush1.msra.mxu0 %v354_v9  ;;  %1160 = vmatpush1.msra.mxu1 %v356_v10  ;;  %v642_v9 = vld [vmem:[#allocation5 + $0x920] sm:$0xff]  ;;  %v644_v10 = vld [vmem:[#allocation5 + $0x930] sm:$0xff] }
  0xe0   : > { %1072 = vmatprep.subr.mxu0 %v851_v12  ;;  %1161 = vmatprep.subr.mxu1 %v853_v13  ;;  %v627_v12 = vld [vmem:[#allocation5 + $0x8a8] sm:$0xff]  ;;  %v629_v13 = vld [vmem:[#allocation5 + $0x8b8] sm:$0xff] }
  0xe1   : > { %1073 = vmatpush2.msra.mxu0 %v850_v14  ;;  %1162 = vmatpush2.msra.mxu1 %v852_v15  ;;  %v626_v14 = vld [vmem:[#allocation5 + $0x8a0] sm:$0xff]  ;;  %v628_v15 = vld [vmem:[#allocation5 + $0x8b0] sm:$0xff] }
  0xe2   : > { %1074 = vmatprep.subr.mxu0 %v835_v16  ;;  %1163 = vmatprep.subr.mxu1 %v837_v17  ;;  %v611_v16 = vld [vmem:[#allocation5 + $0x828] sm:$0xff]  ;;  %v613_v17 = vld [vmem:[#allocation5 + $0x838] sm:$0xff] }
  0xe3   : > { %1075 = vmatpush2.msra.mxu0 %v834_v19  ;;  %1164 = vmatpush2.msra.mxu1 %v836_v20  ;;  %v610_v19 = vld [vmem:[#allocation5 + $0x820] sm:$0xff]  ;;  %v612_v20 = vld [vmem:[#allocation5 + $0x830] sm:$0xff] }
  0xe4   : > { %1076 = vmatprep.subr.mxu0 %v819_v22  ;;  %1165 = vmatprep.subr.mxu1 %v821_v23  ;;  %v599_v22 = vld [vmem:[#allocation5 + $0x7c8] sm:$0xff]  ;;  %v601_v23 = vld [vmem:[#allocation5 + $0x7d8] sm:$0xff] }
  0xe5   : > { %1077 = vmatpush2.msra.mxu0 %v818_v24  ;;  %1166 = vmatpush2.msra.mxu1 %v820_v25  ;;  %v598_v24 = vld [vmem:[#allocation5 + $0x7c0] sm:$0xff]  ;;  %v600_v25 = vld [vmem:[#allocation5 + $0x7d0] sm:$0xff] }
  0xe6   : > { %1078 = vmatprep.subr.mxu0 %v803_v26  ;;  %1167 = vmatprep.subr.mxu1 %v805_v27  ;;  %v583_v26 = vld [vmem:[#allocation5 + $0x748] sm:$0xff]  ;;  %v585_v27 = vld [vmem:[#allocation5 + $0x758] sm:$0xff] }
  0xe7   : > { %1079 = vmatpush2.msra.mxu0 %v802_v29  ;;  %1168 = vmatpush2.msra.mxu1 %v804_v30  ;;  %v582_v29 = vld [vmem:[#allocation5 + $0x740] sm:$0xff]  ;;  %v584_v30 = vld [vmem:[#allocation5 + $0x750] sm:$0xff] }
  0xe8   : > { %1080 = vmatprep.subr.mxu0 %v787_v32  ;;  %1169 = vmatprep.subr.mxu1 %v789_v33  ;;  %v569_v32 = vld [vmem:[#allocation5 + $0x6d8] sm:$0xff]  ;;  %v566_v33 = vld [vmem:[#allocation5 + $0x6c0] sm:$0xff] }
  0xe9   : > { %1081 = vmatpush2.msra.mxu0 %v786_v34  ;;  %1170 = vmatpush2.msra.mxu1 %v788_v35  ;;  %v551_v34 = vld [vmem:[#allocation5 + $0x648] sm:$0xff]  ;;  %v553_v35 = vld [vmem:[#allocation5 + $0x658] sm:$0xff] }
  0xea   : > { %1082 = vmatprep.subr.mxu0 %v771_v36  ;;  %1171 = vmatprep.subr.mxu1 %v773_v37  ;;  %v550_v36 = vld [vmem:[#allocation5 + $0x640] sm:$0xff]  ;;  %v552_v37 = vld [vmem:[#allocation5 + $0x650] sm:$0xff] }
  0xeb   : > { %1083 = vmatpush2.msra.mxu0 %v770_v38  ;;  %1172 = vmatpush2.msra.mxu1 %v772_v39  ;;  %v537_v38 = vld [vmem:[#allocation5 + $0x5d8] sm:$0xff]  ;;  %v534_v39 = vld [vmem:[#allocation5 + $0x5c0] sm:$0xff] }
  0xec   : > { %1084 = vmatprep.subr.mxu0 %v755_v40  ;;  %1173 = vmatprep.subr.mxu1 %v757_v41  ;;  %v519_v40 = vld [vmem:[#allocation5 + $0x548] sm:$0xff]  ;;  %v521_v41 = vld [vmem:[#allocation5 + $0x558] sm:$0xff] }
  0xed   : > { %1085 = vmatpush2.msra.mxu0 %v754_v42  ;;  %1174 = vmatpush2.msra.mxu1 %v756_v43  ;;  %v518_v42 = vld [vmem:[#allocation5 + $0x540] sm:$0xff]  ;;  %v520_v43 = vld [vmem:[#allocation5 + $0x550] sm:$0xff] }
  0xee   : > { %1086 = vmatprep.subr.mxu0 %v739_v44  ;;  %1175 = vmatprep.subr.mxu1 %v741_v45  ;;  %v505_v44 = vld [vmem:[#allocation5 + $0x4d8] sm:$0xff]  ;;  %v502_v45 = vld [vmem:[#allocation5 + $0x4c0] sm:$0xff] }
  0xef   : > { %1087 = vmatpush2.msra.mxu0 %v738_v46  ;;  %1176 = vmatpush2.msra.mxu1 %v740_v47  ;;  %v487_v46 = vld [vmem:[#allocation5 + $0x448] sm:$0xff]  ;;  %v489_v47 = vld [vmem:[#allocation5 + $0x458] sm:$0xff] }
  0xf0   : > { %1088 = vmatprep.subr.mxu0 %v723_v48  ;;  %1177 = vmatprep.subr.mxu1 %v725_v49  ;;  %v486_v48 = vld [vmem:[#allocation5 + $0x440] sm:$0xff]  ;;  %v488_v49 = vld [vmem:[#allocation5 + $0x450] sm:$0xff] }
  0xf1   : > { %1089 = vmatpush2.msra.mxu0 %v722_v50  ;;  %1178 = vmatpush2.msra.mxu1 %v724_v51  ;;  %v471_v50 = vld [vmem:[#allocation5 + $0x3c8] sm:$0xff]  ;;  %v470_v51 = vld [vmem:[#allocation5 + $0x3c0] sm:$0xff] }
  0xf2   : > { %1090 = vmatprep.subr.mxu0 %v707_v52  ;;  %1179 = vmatprep.subr.mxu1 %v709_v53  ;;  %v472_v52 = vld [vmem:[#allocation5 + $0x3d0] sm:$0xff]  ;;  %v455_v53 = vld [vmem:[#allocation5 + $0x348] sm:$0xff] }
  0xf3   : > { %1091 = vmatpush2.msra.mxu0 %v706_v54  ;;  %1180 = vmatpush2.msra.mxu1 %v708_v55  ;;  %v457_v54 = vld [vmem:[#allocation5 + $0x358] sm:$0xff]  ;;  %v456_v55 = vld [vmem:[#allocation5 + $0x350] sm:$0xff] }
  0xf4   : > { %1092 = vmatprep.subr.mxu0 %v691_v56  ;;  %1181 = vmatprep.subr.mxu1 %v693_v57  ;;  %v439_v56 = vld [vmem:[#allocation5 + $0x2c8] sm:$0xff]  ;;  %v441_v57 = vld [vmem:[#allocation5 + $0x2d8] sm:$0xff] }
  0xf5   : > { %1093 = vmatpush2.msra.mxu0 %v690_v58  ;;  %1182 = vmatpush2.msra.mxu1 %v692_v59  ;;  %v438_v58 = vld [vmem:[#allocation5 + $0x2c0] sm:$0xff]  ;;  %v440_v59 = vld [vmem:[#allocation5 + $0x2d0] sm:$0xff] }
  0xf6   : > { %1094 = vmatprep.subr.mxu0 %v675_v60  ;;  %1183 = vmatprep.subr.mxu1 %v677_v61  ;;  %v423_v60 = vld [vmem:[#allocation5 + $0x248] sm:$0xff]  ;;  %v425_v61 = vld [vmem:[#allocation5 + $0x258] sm:$0xff] }
  0xf7   : > { %1095 = vmatpush2.msra.mxu0 %v674_v62  ;;  %1184 = vmatpush2.msra.mxu1 %v676_v0  ;;  %v422_v62 = vld [vmem:[#allocation5 + $0x240] sm:$0xff]  ;;  %v424_v0 = vld [vmem:[#allocation5 + $0x250] sm:$0xff] }
  0xf8   : > { %1096 = vmatprep.subr.mxu0 %v659_v2  ;;  %1185 = vmatprep.subr.mxu1 %v661_v3  ;;  %v407_v2 = vld [vmem:[#allocation5 + $0x1c8] sm:$0xff]  ;;  %v409_v3 = vld [vmem:[#allocation5 + $0x1d8] sm:$0xff] }
  0xf9   : > { %1097 = vmatpush2.msra.mxu0 %v658_v4  ;;  %1186 = vmatpush2.msra.mxu1 %v660_v5  ;;  %v406_v4 = vld [vmem:[#allocation5 + $0x1c0] sm:$0xff]  ;;  %v408_v5 = vld [vmem:[#allocation5 + $0x1d0] sm:$0xff] }
  0xfa   : > { %1098 = vmatprep.subr.mxu0 %v643_v6  ;;  %1187 = vmatprep.subr.mxu1 %v645_v7  ;;  %v391_v6 = vld [vmem:[#allocation5 + $0x148] sm:$0xff]  ;;  %v393_v7 = vld [vmem:[#allocation5 + $0x158] sm:$0xff] }
  0xfb   : > { %1099 = vmatpush2.msra.mxu0 %v642_v9  ;;  %1188 = vmatpush2.msra.mxu1 %v644_v10  ;;  %v390_v9 = vld [vmem:[#allocation5 + $0x140] sm:$0xff]  ;;  %v392_v10 = vld [vmem:[#allocation5 + $0x150] sm:$0xff] }
  0xfc   : > { %1100 = vmatprep.subr.mxu0 %v627_v12  ;;  %1189 = vmatprep.subr.mxu1 %v629_v13  ;;  %v375_v12 = vld [vmem:[#allocation5 + $0xc8] sm:$0xff]  ;;  %v377_v13 = vld [vmem:[#allocation5 + $0xd8] sm:$0xff] }
  0xfd   : > { %1101 = vmatpush2.msra.mxu0 %v626_v14  ;;  %1190 = vmatpush2.msra.mxu1 %v628_v15  ;;  %v374_v14 = vld [vmem:[#allocation5 + $0xc0] sm:$0xff]  ;;  %v376_v15 = vld [vmem:[#allocation5 + $0xd0] sm:$0xff] }
  0xfe   : > { %1102 = vmatprep.subr.mxu0 %v611_v16  ;;  %1191 = vmatprep.subr.mxu1 %v613_v17  ;;  %v359_v16 = vld [vmem:[#allocation5 + $0x48] sm:$0xff]  ;;  %v361_v17 = vld [vmem:[#allocation5 + $0x58] sm:$0xff] }
  0xff   : > { %1103 = vmatpush2.msra.mxu0 %v610_v19  ;;  %1104 = vmatprep.mubr.f32.mxu0 %v3195_v63  ;;  %v358_v19 = vld [vmem:[#allocation5 + $0x40] sm:$0xff] }
 0x100   : > { %1192 = vmatpush2.msra.mxu1 %v612_v20  ;;  %1193 = vmatprep.mubr.f32.mxu1 %v3195_v63  ;;  %v567_v63 = vld [vmem:[#allocation5 + $0x6c8] sm:$0xff]  ;;  %v360_v20 = vld [vmem:[#allocation5 + $0x50] sm:$0xff] }
 0x101   : > { %1105 = vmatmul.mubr.f32.vlgmr.msra.gmra.mxu0 %v3198_v1  ;;  %1194 = vmatmul.mubr.f32.vlgmr.msra.gmra.mxu1 %v3198_v1  ;;  %v568_v1 = vld [vmem:[#allocation5 + $0x6d0] sm:$0xff] }
 0x102   : > { %1218 = vmatprep.subr.mxu0 %v599_v22  ;;  %1307 = vmatprep.subr.mxu1 %v601_v23  ;;  %v855_v22 = vld [vmem:[#allocation5 + $0xfc8] sm:$0xff]  ;;  %v857_v23 = vld [vmem:[#allocation5 + $0xfd8] sm:$0xff] }
 0x103   : > { %1219 = vmatpush1.msra.mxu0 %v598_v24  ;;  %1308 = vmatpush1.msra.mxu1 %v600_v25  ;;  %v854_v24 = vld [vmem:[#allocation5 + $0xfc0] sm:$0xff]  ;;  %v856_v25 = vld [vmem:[#allocation5 + $0xfd0] sm:$0xff] }
 0x104   : > { %1220 = vmatprep.subr.mxu0 %v583_v26  ;;  %1309 = vmatprep.subr.mxu1 %v585_v27  ;;  %v839_v26 = vld [vmem:[#allocation5 + $0xf48] sm:$0xff]  ;;  %v841_v27 = vld [vmem:[#allocation5 + $0xf58] sm:$0xff] }
 0x105   : > { %1110 = vmatprep.mubr.f32.mxu0 %v3205_v8  ;;  %1199 = vmatprep.mubr.f32.mxu1 %v3205_v8  ;;  %v535_v8 = vld [vmem:[#allocation5 + $0x5c8] sm:$0xff] }
 0x106   : > { %1221 = vmatpush1.msra.mxu0 %v582_v29  ;;  %1310 = vmatpush1.msra.mxu1 %v584_v30  ;;  %v838_v29 = vld [vmem:[#allocation5 + $0xf40] sm:$0xff]  ;;  %v840_v30 = vld [vmem:[#allocation5 + $0xf50] sm:$0xff] }
 0x107   : > { %1111 = vmatmul.mubr.f32.gmra.mxu0 %v3208_v11  ;;  %1200 = vmatmul.mubr.f32.gmra.mxu1 %v3208_v11  ;;  %v536_v11 = vld [vmem:[#allocation5 + $0x5d0] sm:$0xff] }
 0x108   : > { %1222 = vmatprep.subr.mxu0 %v567_v63  ;;  %1311 = vmatprep.subr.mxu1 %v569_v32  ;;  %v823_v63 = vld [vmem:[#allocation5 + $0xec8] sm:$0xff]  ;;  %v825_v32 = vld [vmem:[#allocation5 + $0xed8] sm:$0xff] }
 0x109   : > { %1223 = vmatpush1.msra.mxu0 %v566_v33  ;;  %1312 = vmatpush1.msra.mxu1 %v568_v1  ;;  %v822_v33 = vld [vmem:[#allocation5 + $0xec0] sm:$0xff]  ;;  %v824_v1 = vld [vmem:[#allocation5 + $0xed0] sm:$0xff] }
 0x10a   : > { %1224 = vmatprep.subr.mxu0 %v551_v34  ;;  %1313 = vmatprep.subr.mxu1 %v553_v35  ;;  %v807_v34 = vld [vmem:[#allocation5 + $0xe48] sm:$0xff]  ;;  %v809_v35 = vld [vmem:[#allocation5 + $0xe58] sm:$0xff] }
 0x10b   : > { %1116 = vmatprep.mubr.f32.mxu0 %v3215_v18  ;;  %1205 = vmatprep.mubr.f32.mxu1 %v3215_v18  ;;  %v503_v18 = vld [vmem:[#allocation5 + $0x4c8] sm:$0xff] }
 0x10c   : > { %1225 = vmatpush1.msra.mxu0 %v550_v36  ;;  %1314 = vmatpush1.msra.mxu1 %v552_v37  ;;  %v806_v36 = vld [vmem:[#allocation5 + $0xe40] sm:$0xff]  ;;  %v808_v37 = vld [vmem:[#allocation5 + $0xe50] sm:$0xff] }
 0x10d   : > { %1117 = vmatmul.mubr.f32.gmra.mxu0 %v3218_v21  ;;  %1206 = vmatmul.mubr.f32.gmra.mxu1 %v3218_v21  ;;  %v504_v21 = vld [vmem:[#allocation5 + $0x4d0] sm:$0xff] }
 0x10e   : > { %1226 = vmatprep.subr.mxu0 %v535_v8  ;;  %1315 = vmatprep.subr.mxu1 %v537_v38  ;;  %v791_v8 = vld [vmem:[#allocation5 + $0xdc8] sm:$0xff]  ;;  %v793_v38 = vld [vmem:[#allocation5 + $0xdd8] sm:$0xff] }
 0x10f   : > { %1227 = vmatpush1.msra.mxu0 %v534_v39  ;;  %1316 = vmatpush1.msra.mxu1 %v536_v11  ;;  %v790_v39 = vld [vmem:[#allocation5 + $0xdc0] sm:$0xff]  ;;  %v792_v11 = vld [vmem:[#allocation5 + $0xdd0] sm:$0xff] }
 0x110   : > { %1228 = vmatprep.subr.mxu0 %v519_v40  ;;  %1317 = vmatprep.subr.mxu1 %v521_v41  ;;  %v775_v40 = vld [vmem:[#allocation5 + $0xd48] sm:$0xff]  ;;  %v777_v41 = vld [vmem:[#allocation5 + $0xd58] sm:$0xff] }
 0x111   : > { %1122 = vmatprep.mubr.f32.mxu0 %v3225_v28  ;;  %1211 = vmatprep.mubr.f32.mxu1 %v3225_v28  ;;  %v473_v28 = vld [vmem:[#allocation5 + $0x3d8] sm:$0xff] }
 0x112   : > { %1229 = vmatpush1.msra.mxu0 %v518_v42  ;;  %1318 = vmatpush1.msra.mxu1 %v520_v43  ;;  %v774_v42 = vld [vmem:[#allocation5 + $0xd40] sm:$0xff]  ;;  %v776_v43 = vld [vmem:[#allocation5 + $0xd50] sm:$0xff] }
 0x113   : > { %1123 = vmatmul.mubr.f32.gmra.mxu0 %v3228_v31  ;;  %1212 = vmatmul.mubr.f32.gmra.mxu1 %v3228_v31  ;;  %v454_v31 = vld [vmem:[#allocation5 + $0x340] sm:$0xff] }
 0x114   : > { %1230 = vmatprep.subr.mxu0 %v503_v18  ;;  %1319 = vmatprep.subr.mxu1 %v505_v44  ;;  %v759_v18 = vld [vmem:[#allocation5 + $0xcc8] sm:$0xff]  ;;  %v761_v44 = vld [vmem:[#allocation5 + $0xcd8] sm:$0xff] }
 0x115   : > { %1231 = vmatpush1.msra.mxu0 %v502_v45  ;;  %1320 = vmatpush1.msra.mxu1 %v504_v21  ;;  %v758_v45 = vld [vmem:[#allocation5 + $0xcc0] sm:$0xff]  ;;  %v760_v21 = vld [vmem:[#allocation5 + $0xcd0] sm:$0xff] }
 0x116   : > { %1232 = vmatprep.subr.mxu0 %v487_v46  ;;  %1321 = vmatprep.subr.mxu1 %v489_v47  ;;  %v743_v46 = vld [vmem:[#allocation5 + $0xc48] sm:$0xff]  ;;  %v745_v47 = vld [vmem:[#allocation5 + $0xc58] sm:$0xff] }
 0x117   : > { %1233 = vmatpush1.msra.mxu0 %v486_v48  ;;  %1322 = vmatpush1.msra.mxu1 %v488_v49  ;;  %v742_v48 = vld [vmem:[#allocation5 + $0xc40] sm:$0xff]  ;;  %v744_v49 = vld [vmem:[#allocation5 + $0xc50] sm:$0xff] }
 0x118   : > { %1234 = vmatprep.subr.mxu0 %v471_v50  ;;  %1323 = vmatprep.subr.mxu1 %v473_v28  ;;  %v727_v50 = vld [vmem:[#allocation5 + $0xbc8] sm:$0xff]  ;;  %v729_v28 = vld [vmem:[#allocation5 + $0xbd8] sm:$0xff] }
 0x119   : > { %1235 = vmatpush1.msra.mxu0 %v470_v51  ;;  %1324 = vmatpush1.msra.mxu1 %v472_v52  ;;  %v726_v51 = vld [vmem:[#allocation5 + $0xbc0] sm:$0xff]  ;;  %v728_v52 = vld [vmem:[#allocation5 + $0xbd0] sm:$0xff] }
 0x11a   : > { %1236 = vmatprep.subr.mxu0 %v455_v53  ;;  %1325 = vmatprep.subr.mxu1 %v457_v54  ;;  %v711_v53 = vld [vmem:[#allocation5 + $0xb48] sm:$0xff]  ;;  %v713_v54 = vld [vmem:[#allocation5 + $0xb58] sm:$0xff] }
 0x11b   : > { %1237 = vmatpush1.msra.mxu0 %v454_v31  ;;  %1326 = vmatpush1.msra.mxu1 %v456_v55  ;;  %v710_v31 = vld [vmem:[#allocation5 + $0xb40] sm:$0xff]  ;;  %v712_v55 = vld [vmem:[#allocation5 + $0xb50] sm:$0xff] }
 0x11c   : > { %1238 = vmatprep.subr.mxu0 %v439_v56  ;;  %1327 = vmatprep.subr.mxu1 %v441_v57  ;;  %v695_v56 = vld [vmem:[#allocation5 + $0xac8] sm:$0xff]  ;;  %v697_v57 = vld [vmem:[#allocation5 + $0xad8] sm:$0xff] }
 0x11d   : > { %1239 = vmatpush1.msra.mxu0 %v438_v58  ;;  %1328 = vmatpush1.msra.mxu1 %v440_v59  ;;  %v694_v58 = vld [vmem:[#allocation5 + $0xac0] sm:$0xff]  ;;  %v696_v59 = vld [vmem:[#allocation5 + $0xad0] sm:$0xff] }
 0x11e   : > { %1240 = vmatprep.subr.mxu0 %v423_v60  ;;  %1329 = vmatprep.subr.mxu1 %v425_v61  ;;  %v679_v60 = vld [vmem:[#allocation5 + $0xa48] sm:$0xff]  ;;  %v681_v61 = vld [vmem:[#allocation5 + $0xa58] sm:$0xff] }
 0x11f   : > { %1241 = vmatpush1.msra.mxu0 %v422_v62  ;;  %1330 = vmatpush1.msra.mxu1 %v424_v0  ;;  %v678_v62 = vld [vmem:[#allocation5 + $0xa40] sm:$0xff]  ;;  %v680_v0 = vld [vmem:[#allocation5 + $0xa50] sm:$0xff] }
 0x120   : > { %1242 = vmatprep.subr.mxu0 %v407_v2  ;;  %1331 = vmatprep.subr.mxu1 %v409_v3  ;;  %v663_v2 = vld [vmem:[#allocation5 + $0x9c8] sm:$0xff]  ;;  %v665_v3 = vld [vmem:[#allocation5 + $0x9d8] sm:$0xff] }
 0x121   : > { %1243 = vmatpush1.msra.mxu0 %v406_v4  ;;  %1332 = vmatpush1.msra.mxu1 %v408_v5  ;;  %v662_v4 = vld [vmem:[#allocation5 + $0x9c0] sm:$0xff]  ;;  %v664_v5 = vld [vmem:[#allocation5 + $0x9d0] sm:$0xff] }
 0x122   : > { %1244 = vmatprep.subr.mxu0 %v391_v6  ;;  %1333 = vmatprep.subr.mxu1 %v393_v7  ;;  %v647_v6 = vld [vmem:[#allocation5 + $0x948] sm:$0xff]  ;;  %v649_v7 = vld [vmem:[#allocation5 + $0x958] sm:$0xff] }
 0x123   : > { %1245 = vmatpush1.msra.mxu0 %v390_v9  ;;  %1334 = vmatpush1.msra.mxu1 %v392_v10  ;;  %v646_v9 = vld [vmem:[#allocation5 + $0x940] sm:$0xff]  ;;  %v648_v10 = vld [vmem:[#allocation5 + $0x950] sm:$0xff] }
 0x124   : > { %1246 = vmatprep.subr.mxu0 %v375_v12  ;;  %1335 = vmatprep.subr.mxu1 %v377_v13  ;;  %v631_v12 = vld [vmem:[#allocation5 + $0x8c8] sm:$0xff]  ;;  %v633_v13 = vld [vmem:[#allocation5 + $0x8d8] sm:$0xff] }
 0x125   : > { %1247 = vmatpush1.msra.mxu0 %v374_v14  ;;  %1336 = vmatpush1.msra.mxu1 %v376_v15  ;;  %v630_v14 = vld [vmem:[#allocation5 + $0x8c0] sm:$0xff]  ;;  %v632_v15 = vld [vmem:[#allocation5 + $0x8d0] sm:$0xff] }
 0x126   : > { %1248 = vmatprep.subr.mxu0 %v359_v16  ;;  %1337 = vmatprep.subr.mxu1 %v361_v17  ;;  %v615_v16 = vld [vmem:[#allocation5 + $0x848] sm:$0xff]  ;;  %v617_v17 = vld [vmem:[#allocation5 + $0x858] sm:$0xff] }
 0x127   : > { %1249 = vmatpush1.msra.mxu0 %v358_v19  ;;  %1338 = vmatpush1.msra.mxu1 %v360_v20  ;;  %v614_v19 = vld [vmem:[#allocation5 + $0x840] sm:$0xff]  ;;  %v616_v20 = vld [vmem:[#allocation5 + $0x850] sm:$0xff] }
 0x128   : > { %1250 = vmatprep.subr.mxu0 %v855_v22  ;;  %1339 = vmatprep.subr.mxu1 %v857_v23  ;;  %v3251_v22 = vld [vmem:[%s3171_s0 + $0x8] sm:$0xff] }
 0x129   : > { %1251 = vmatpush2.msra.mxu0 %v854_v24  ;;  %1340 = vmatpush2.msra.mxu1 %v856_v25  ;;  %v603_v23 = vld [vmem:[#allocation5 + $0x7e8] sm:$0xff]  ;;  %v605_v24 = vld [vmem:[#allocation5 + $0x7f8] sm:$0xff]  ;;  %v602_v25 = vld [vmem:[#allocation5 + $0x7e0] sm:$0xff] }
 0x12a   : > { %1252 = vmatprep.subr.mxu0 %v839_v26  ;;  %1341 = vmatprep.subr.mxu1 %v841_v27  ;;  %v604_v26 = vld [vmem:[#allocation5 + $0x7f0] sm:$0xff]  ;;  %v3256_v27 = vld [vmem:[%s3171_s0] sm:$0xff] }
 0x12b   : > { %1253 = vmatpush2.msra.mxu0 %v838_v29  ;;  %1342 = vmatpush2.msra.mxu1 %v840_v30  ;;  %v587_v29 = vld [vmem:[#allocation5 + $0x768] sm:$0xff]  ;;  %v589_v30 = vld [vmem:[#allocation5 + $0x778] sm:$0xff] }
 0x12c   : > { %1254 = vmatprep.subr.mxu0 %v823_v63  ;;  %1343 = vmatprep.subr.mxu1 %v825_v32  ;;  %v586_v63 = vld [vmem:[#allocation5 + $0x760] sm:$0xff]  ;;  %v588_v32 = vld [vmem:[#allocation5 + $0x770] sm:$0xff] }
 0x12d   : > { %1255 = vmatpush2.msra.mxu0 %v822_v33  ;;  %1344 = vmatpush2.msra.mxu1 %v824_v1  ;;  %v3261_v33 = vld [vmem:[%s3171_s0 + $0x18] sm:$0xff]  ;;  %v571_v1 = vld [vmem:[#allocation5 + $0x6e8] sm:$0xff] }
 0x12e   : > { %1256 = vmatprep.subr.mxu0 %v807_v34  ;;  %1345 = vmatprep.subr.mxu1 %v809_v35  ;;  %v573_v34 = vld [vmem:[#allocation5 + $0x6f8] sm:$0xff]  ;;  %v570_v35 = vld [vmem:[#allocation5 + $0x6e0] sm:$0xff] }
 0x12f   : > { %1257 = vmatpush2.msra.mxu0 %v806_v36  ;;  %1346 = vmatpush2.msra.mxu1 %v808_v37  ;;  %v572_v36 = vld [vmem:[#allocation5 + $0x6f0] sm:$0xff] }
 0x130   : > { %1258 = vmatprep.subr.mxu0 %v791_v8  ;;  %1347 = vmatprep.subr.mxu1 %v793_v38  ;;  %v3266_v37 = vld [vmem:[%s3171_s0 + $0x10] sm:$0xff]  ;;  %v555_v8 = vld [vmem:[#allocation5 + $0x668] sm:$0xff]  ;;  %v557_v38 = vld [vmem:[#allocation5 + $0x678] sm:$0xff] }
 0x131   : > { %1259 = vmatpush2.msra.mxu0 %v790_v39  ;;  %1348 = vmatpush2.msra.mxu1 %v792_v11  ;;  %v554_v39 = vld [vmem:[#allocation5 + $0x660] sm:$0xff]  ;;  %v556_v11 = vld [vmem:[#allocation5 + $0x670] sm:$0xff] }
 0x132   : > { %1260 = vmatprep.subr.mxu0 %v775_v40  ;;  %1349 = vmatprep.subr.mxu1 %v777_v41  ;;  %v3271_v40 = vld [vmem:[%s3171_s0 + $0x28] sm:$0xff] }
 0x133   : > { %1261 = vmatpush2.msra.mxu0 %v774_v42  ;;  %1350 = vmatpush2.msra.mxu1 %v776_v43  ;;  %v539_v41 = vld [vmem:[#allocation5 + $0x5e8] sm:$0xff]  ;;  %v541_v42 = vld [vmem:[#allocation5 + $0x5f8] sm:$0xff]  ;;  %v538_v43 = vld [vmem:[#allocation5 + $0x5e0] sm:$0xff] }
 0x134   : > { %1262 = vmatprep.subr.mxu0 %v759_v18  ;;  %1351 = vmatprep.subr.mxu1 %v761_v44  ;;  %v540_v18 = vld [vmem:[#allocation5 + $0x5f0] sm:$0xff]  ;;  %v3276_v44 = vld [vmem:[%s3171_s0 + $0x20] sm:$0xff] }
 0x135   : > { %1263 = vmatpush2.msra.mxu0 %v758_v45  ;;  %1352 = vmatpush2.msra.mxu1 %v760_v21  ;;  %v523_v45 = vld [vmem:[#allocation5 + $0x568] sm:$0xff]  ;;  %v525_v21 = vld [vmem:[#allocation5 + $0x578] sm:$0xff] }
 0x136   : > { %1264 = vmatprep.subr.mxu0 %v743_v46  ;;  %1353 = vmatprep.subr.mxu1 %v745_v47  ;;  %v522_v46 = vld [vmem:[#allocation5 + $0x560] sm:$0xff]  ;;  %v524_v47 = vld [vmem:[#allocation5 + $0x570] sm:$0xff] }
 0x137   : > { %1265 = vmatpush2.msra.mxu0 %v742_v48  ;;  %1354 = vmatpush2.msra.mxu1 %v744_v49  ;;  %v3281_v48 = vld [vmem:[%s3171_s0 + $0x38] sm:$0xff]  ;;  %v507_v49 = vld [vmem:[#allocation5 + $0x4e8] sm:$0xff] }
 0x138   : > { %1266 = vmatprep.subr.mxu0 %v727_v50  ;;  %1355 = vmatprep.subr.mxu1 %v729_v28  ;;  %v509_v50 = vld [vmem:[#allocation5 + $0x4f8] sm:$0xff]  ;;  %v506_v28 = vld [vmem:[#allocation5 + $0x4e0] sm:$0xff] }
 0x139   : > { %1267 = vmatpush2.msra.mxu0 %v726_v51  ;;  %1356 = vmatpush2.msra.mxu1 %v728_v52  ;;  %v508_v51 = vld [vmem:[#allocation5 + $0x4f0] sm:$0xff] }
 0x13a   : > { %1268 = vmatprep.subr.mxu0 %v711_v53  ;;  %1357 = vmatprep.subr.mxu1 %v713_v54  ;;  %v3286_v52 = vld [vmem:[%s3171_s0 + $0x30] sm:$0xff]  ;;  %v491_v53 = vld [vmem:[#allocation5 + $0x468] sm:$0xff]  ;;  %v493_v54 = vld [vmem:[#allocation5 + $0x478] sm:$0xff] }
 0x13b   : > { %1269 = vmatpush2.msra.mxu0 %v710_v31  ;;  %1358 = vmatpush2.msra.mxu1 %v712_v55  ;;  %v490_v31 = vld [vmem:[#allocation5 + $0x460] sm:$0xff]  ;;  %v492_v55 = vld [vmem:[#allocation5 + $0x470] sm:$0xff] }
 0x13c   : > { %1270 = vmatprep.subr.mxu0 %v695_v56  ;;  %1359 = vmatprep.subr.mxu1 %v697_v57  ;;  %v475_v56 = vld [vmem:[#allocation5 + $0x3e8] sm:$0xff]  ;;  %v477_v57 = vld [vmem:[#allocation5 + $0x3f8] sm:$0xff] }
 0x13d   : > { %1271 = vmatpush2.msra.mxu0 %v694_v58  ;;  %1360 = vmatpush2.msra.mxu1 %v696_v59  ;;  %v474_v58 = vld [vmem:[#allocation5 + $0x3e0] sm:$0xff]  ;;  %v476_v59 = vld [vmem:[#allocation5 + $0x3f0] sm:$0xff] }
 0x13e   : > { %1272 = vmatprep.subr.mxu0 %v679_v60  ;;  %1361 = vmatprep.subr.mxu1 %v681_v61  ;;  %v459_v60 = vld [vmem:[#allocation5 + $0x368] sm:$0xff]  ;;  %v461_v61 = vld [vmem:[#allocation5 + $0x378] sm:$0xff] }
 0x13f   : > { %1273 = vmatpush2.msra.mxu0 %v678_v62  ;;  %1362 = vmatpush2.msra.mxu1 %v680_v0  ;;  %v458_v62 = vld [vmem:[#allocation5 + $0x360] sm:$0xff]  ;;  %v460_v0 = vld [vmem:[#allocation5 + $0x370] sm:$0xff] }
 0x140   : > { %1274 = vmatprep.subr.mxu0 %v663_v2  ;;  %1363 = vmatprep.subr.mxu1 %v665_v3  ;;  %v443_v2 = vld [vmem:[#allocation5 + $0x2e8] sm:$0xff]  ;;  %v445_v3 = vld [vmem:[#allocation5 + $0x2f8] sm:$0xff] }
 0x141   : > { %1275 = vmatpush2.msra.mxu0 %v662_v4  ;;  %1364 = vmatpush2.msra.mxu1 %v664_v5  ;;  %v442_v4 = vld [vmem:[#allocation5 + $0x2e0] sm:$0xff]  ;;  %v444_v5 = vld [vmem:[#allocation5 + $0x2f0] sm:$0xff] }
 0x142   : > { %1276 = vmatprep.subr.mxu0 %v647_v6  ;;  %1365 = vmatprep.subr.mxu1 %v649_v7  ;;  %v427_v6 = vld [vmem:[#allocation5 + $0x268] sm:$0xff]  ;;  %v429_v7 = vld [vmem:[#allocation5 + $0x278] sm:$0xff] }
 0x143   : > { %1277 = vmatpush2.msra.mxu0 %v646_v9  ;;  %1366 = vmatpush2.msra.mxu1 %v648_v10  ;;  %v426_v9 = vld [vmem:[#allocation5 + $0x260] sm:$0xff]  ;;  %v428_v10 = vld [vmem:[#allocation5 + $0x270] sm:$0xff] }
 0x144   : > { %1278 = vmatprep.subr.mxu0 %v631_v12  ;;  %1367 = vmatprep.subr.mxu1 %v633_v13  ;;  %v411_v12 = vld [vmem:[#allocation5 + $0x1e8] sm:$0xff]  ;;  %v413_v13 = vld [vmem:[#allocation5 + $0x1f8] sm:$0xff] }
 0x145   : > { %1279 = vmatpush2.msra.mxu0 %v630_v14  ;;  %1368 = vmatpush2.msra.mxu1 %v632_v15  ;;  %v410_v14 = vld [vmem:[#allocation5 + $0x1e0] sm:$0xff]  ;;  %v412_v15 = vld [vmem:[#allocation5 + $0x1f0] sm:$0xff] }
 0x146   : > { %1280 = vmatprep.subr.mxu0 %v615_v16  ;;  %1369 = vmatprep.subr.mxu1 %v617_v17  ;;  %v395_v16 = vld [vmem:[#allocation5 + $0x168] sm:$0xff]  ;;  %v397_v17 = vld [vmem:[#allocation5 + $0x178] sm:$0xff] }
 0x147   : > { %1281 = vmatpush2.msra.mxu0 %v614_v19  ;;  %1282 = vmatprep.mubr.f32.mxu0 %v3251_v22  ;;  %v394_v19 = vld [vmem:[#allocation5 + $0x160] sm:$0xff] }
 0x148   : > { %1370 = vmatpush2.msra.mxu1 %v616_v20  ;;  %1371 = vmatprep.mubr.f32.mxu1 %v3251_v22  ;;  %v396_v20 = vld [vmem:[#allocation5 + $0x170] sm:$0xff] }
 0x149   : > { %1283 = vmatmul.mubr.f32.vlgmr.msra.gmra.mxu0 %v3256_v27  ;;  %1372 = vmatmul.mubr.f32.vlgmr.msra.gmra.mxu1 %v3256_v27 }
 0x14a   : > { %1396 = vmatprep.subr.mxu0 %v603_v23  ;;  %1485 = vmatprep.subr.mxu1 %v605_v24  ;;  %v379_v23 = vld [vmem:[#allocation5 + $0xe8] sm:$0xff]  ;;  %v381_v24 = vld [vmem:[#allocation5 + $0xf8] sm:$0xff] }
 0x14b   : > { %1397 = vmatpush1.msra.mxu0 %v602_v25  ;;  %1486 = vmatpush1.msra.mxu1 %v604_v26  ;;  %v378_v25 = vld [vmem:[#allocation5 + $0xe0] sm:$0xff]  ;;  %v380_v26 = vld [vmem:[#allocation5 + $0xf0] sm:$0xff] }
 0x14c   : > { %1398 = vmatprep.subr.mxu0 %v587_v29  ;;  %1487 = vmatprep.subr.mxu1 %v589_v30  ;;  %v363_v29 = vld [vmem:[#allocation5 + $0x68] sm:$0xff]  ;;  %v365_v30 = vld [vmem:[#allocation5 + $0x78] sm:$0xff] }
 0x14d   : > { %1288 = vmatprep.mubr.f32.mxu0 %v3261_v33  ;;  %1377 = vmatprep.mubr.f32.mxu1 %v3261_v33 }
 0x14e   : > { %1399 = vmatpush1.msra.mxu0 %v586_v63  ;;  %1488 = vmatpush1.msra.mxu1 %v588_v32  ;;  %v362_v63 = vld [vmem:[#allocation5 + $0x60] sm:$0xff]  ;;  %v364_v32 = vld [vmem:[#allocation5 + $0x70] sm:$0xff] }
 0x14f   : > { %1289 = vmatmul.mubr.f32.gmra.mxu0 %v3266_v37  ;;  %1378 = vmatmul.mubr.f32.gmra.mxu1 %v3266_v37 }
 0x150   : > { %1400 = vmatprep.subr.mxu0 %v571_v1  ;;  %1489 = vmatprep.subr.mxu1 %v573_v34  ;;  %v859_v1 = vld [vmem:[#allocation5 + $0xfe8] sm:$0xff]  ;;  %v861_v34 = vld [vmem:[#allocation5 + $0xff8] sm:$0xff] }
 0x151   : > { %1401 = vmatpush1.msra.mxu0 %v570_v35  ;;  %1490 = vmatpush1.msra.mxu1 %v572_v36  ;;  %v858_v35 = vld [vmem:[#allocation5 + $0xfe0] sm:$0xff]  ;;  %v860_v36 = vld [vmem:[#allocation5 + $0xff0] sm:$0xff] }
 0x152   : > { %1402 = vmatprep.subr.mxu0 %v555_v8  ;;  %1491 = vmatprep.subr.mxu1 %v557_v38  ;;  %v843_v8 = vld [vmem:[#allocation5 + $0xf68] sm:$0xff]  ;;  %v845_v38 = vld [vmem:[#allocation5 + $0xf78] sm:$0xff] }
 0x153   : > { %1294 = vmatprep.mubr.f32.mxu0 %v3271_v40  ;;  %1383 = vmatprep.mubr.f32.mxu1 %v3271_v40 }
 0x154   : > { %1403 = vmatpush1.msra.mxu0 %v554_v39  ;;  %1492 = vmatpush1.msra.mxu1 %v556_v11  ;;  %v842_v39 = vld [vmem:[#allocation5 + $0xf60] sm:$0xff]  ;;  %v844_v11 = vld [vmem:[#allocation5 + $0xf70] sm:$0xff] }
 0x155   : > { %1295 = vmatmul.mubr.f32.gmra.mxu0 %v3276_v44  ;;  %1384 = vmatmul.mubr.f32.gmra.mxu1 %v3276_v44 }
 0x156   : > { %1404 = vmatprep.subr.mxu0 %v539_v41  ;;  %1493 = vmatprep.subr.mxu1 %v541_v42  ;;  %v827_v41 = vld [vmem:[#allocation5 + $0xee8] sm:$0xff]  ;;  %v829_v42 = vld [vmem:[#allocation5 + $0xef8] sm:$0xff] }
 0x157   : > { %1405 = vmatpush1.msra.mxu0 %v538_v43  ;;  %1494 = vmatpush1.msra.mxu1 %v540_v18  ;;  %v826_v43 = vld [vmem:[#allocation5 + $0xee0] sm:$0xff]  ;;  %v828_v18 = vld [vmem:[#allocation5 + $0xef0] sm:$0xff] }
 0x158   : > { %1406 = vmatprep.subr.mxu0 %v523_v45  ;;  %1495 = vmatprep.subr.mxu1 %v525_v21  ;;  %v811_v45 = vld [vmem:[#allocation5 + $0xe68] sm:$0xff]  ;;  %v813_v21 = vld [vmem:[#allocation5 + $0xe78] sm:$0xff] }
 0x159   : > { %1300 = vmatprep.mubr.f32.mxu0 %v3281_v48  ;;  %1389 = vmatprep.mubr.f32.mxu1 %v3281_v48 }
 0x15a   : > { %1407 = vmatpush1.msra.mxu0 %v522_v46  ;;  %1496 = vmatpush1.msra.mxu1 %v524_v47  ;;  %v810_v46 = vld [vmem:[#allocation5 + $0xe60] sm:$0xff]  ;;  %v812_v47 = vld [vmem:[#allocation5 + $0xe70] sm:$0xff] }
 0x15b   : > { %1301 = vmatmul.mubr.f32.gmra.mxu0 %v3286_v52  ;;  %1390 = vmatmul.mubr.f32.gmra.mxu1 %v3286_v52 }
 0x15c   : > { %1408 = vmatprep.subr.mxu0 %v507_v49  ;;  %1497 = vmatprep.subr.mxu1 %v509_v50  ;;  %v795_v49 = vld [vmem:[#allocation5 + $0xde8] sm:$0xff]  ;;  %v797_v50 = vld [vmem:[#allocation5 + $0xdf8] sm:$0xff] }
 0x15d   : > { %1409 = vmatpush1.msra.mxu0 %v506_v28  ;;  %1498 = vmatpush1.msra.mxu1 %v508_v51  ;;  %v794_v28 = vld [vmem:[#allocation5 + $0xde0] sm:$0xff]  ;;  %v796_v51 = vld [vmem:[#allocation5 + $0xdf0] sm:$0xff] }
 0x15e   : > { %1410 = vmatprep.subr.mxu0 %v491_v53  ;;  %1499 = vmatprep.subr.mxu1 %v493_v54  ;;  %v779_v53 = vld [vmem:[#allocation5 + $0xd68] sm:$0xff]  ;;  %v781_v54 = vld [vmem:[#allocation5 + $0xd78] sm:$0xff] }
 0x15f   : > { %1411 = vmatpush1.msra.mxu0 %v490_v31  ;;  %1500 = vmatpush1.msra.mxu1 %v492_v55  ;;  %v778_v31 = vld [vmem:[#allocation5 + $0xd60] sm:$0xff]  ;;  %v780_v55 = vld [vmem:[#allocation5 + $0xd70] sm:$0xff] }
 0x160   : > { %1412 = vmatprep.subr.mxu0 %v475_v56  ;;  %1501 = vmatprep.subr.mxu1 %v477_v57  ;;  %v763_v56 = vld [vmem:[#allocation5 + $0xce8] sm:$0xff]  ;;  %v765_v57 = vld [vmem:[#allocation5 + $0xcf8] sm:$0xff] }
 0x161   : > { %1413 = vmatpush1.msra.mxu0 %v474_v58  ;;  %1502 = vmatpush1.msra.mxu1 %v476_v59 }
 0x162   : > { %1414 = vmatprep.subr.mxu0 %v459_v60  ;;  %1503 = vmatprep.subr.mxu1 %v461_v61  ;;  %v762_v60 = vld [vmem:[#allocation5 + $0xce0] sm:$0xff]  ;;  %v764_v61 = vld [vmem:[#allocation5 + $0xcf0] sm:$0xff] }
 0x163   : > { %1415 = vmatpush1.msra.mxu0 %v458_v62  ;;  %1504 = vmatpush1.msra.mxu1 %v460_v0  ;;  %v747_v62 = vld [vmem:[#allocation5 + $0xc68] sm:$0xff]  ;;  %v749_v0 = vld [vmem:[#allocation5 + $0xc78] sm:$0xff] }
 0x164   : > { %1416 = vmatprep.subr.mxu0 %v443_v2  ;;  %1505 = vmatprep.subr.mxu1 %v445_v3 }
 0x165   : > { %1417 = vmatpush1.msra.mxu0 %v442_v4  ;;  %1506 = vmatpush1.msra.mxu1 %v444_v5  ;;  %v746_v4 = vld [vmem:[#allocation5 + $0xc60] sm:$0xff]  ;;  %v748_v5 = vld [vmem:[#allocation5 + $0xc70] sm:$0xff] }
 0x166   : > { %1418 = vmatprep.subr.mxu0 %v427_v6  ;;  %1507 = vmatprep.subr.mxu1 %v429_v7  ;;  %v731_v6 = vld [vmem:[#allocation5 + $0xbe8] sm:$0xff]  ;;  %v733_v7 = vld [vmem:[#allocation5 + $0xbf8] sm:$0xff] }
 0x167   : > { %1419 = vmatpush1.msra.mxu0 %v426_v9  ;;  %1508 = vmatpush1.msra.mxu1 %v428_v10  ;;  %v730_v9 = vld [vmem:[#allocation5 + $0xbe0] sm:$0xff]  ;;  %v732_v10 = vld [vmem:[#allocation5 + $0xbf0] sm:$0xff] }
 0x168   : > { %1420 = vmatprep.subr.mxu0 %v411_v12  ;;  %1509 = vmatprep.subr.mxu1 %v413_v13  ;;  %v715_v12 = vld [vmem:[#allocation5 + $0xb68] sm:$0xff]  ;;  %v717_v13 = vld [vmem:[#allocation5 + $0xb78] sm:$0xff] }
 0x169   : > { %1421 = vmatpush1.msra.mxu0 %v410_v14  ;;  %1510 = vmatpush1.msra.mxu1 %v412_v15  ;;  %v714_v14 = vld [vmem:[#allocation5 + $0xb60] sm:$0xff]  ;;  %v716_v15 = vld [vmem:[#allocation5 + $0xb70] sm:$0xff] }
 0x16a   : > { %1422 = vmatprep.subr.mxu0 %v395_v16  ;;  %1511 = vmatprep.subr.mxu1 %v397_v17 }
 0x16b   : > { %1423 = vmatpush1.msra.mxu0 %v394_v19  ;;  %1512 = vmatpush1.msra.mxu1 %v396_v20  ;;  %v699_v19 = vld [vmem:[#allocation5 + $0xae8] sm:$0xff]  ;;  %v701_v20 = vld [vmem:[#allocation5 + $0xaf8] sm:$0xff] }
 0x16c   : > { %1424 = vmatprep.subr.mxu0 %v379_v23  ;;  %1513 = vmatprep.subr.mxu1 %v381_v24  ;;  %v698_v23 = vld [vmem:[#allocation5 + $0xae0] sm:$0xff]  ;;  %v700_v24 = vld [vmem:[#allocation5 + $0xaf0] sm:$0xff] }
 0x16d   : > { %1425 = vmatpush1.msra.mxu0 %v378_v25  ;;  %1514 = vmatpush1.msra.mxu1 %v380_v26  ;;  %v683_v25 = vld [vmem:[#allocation5 + $0xa68] sm:$0xff]  ;;  %v685_v26 = vld [vmem:[#allocation5 + $0xa78] sm:$0xff] }
 0x16e   : > { %1426 = vmatprep.subr.mxu0 %v363_v29  ;;  %1515 = vmatprep.subr.mxu1 %v365_v30 }
 0x16f   : > { %1427 = vmatpush1.msra.mxu0 %v362_v63  ;;  %1516 = vmatpush1.msra.mxu1 %v364_v32  ;;  %v682_v63 = vld [vmem:[#allocation5 + $0xa60] sm:$0xff]  ;;  %v684_v32 = vld [vmem:[#allocation5 + $0xa70] sm:$0xff] }
 0x170   : > { %1428 = vmatprep.subr.mxu0 %v859_v1  ;;  %1517 = vmatprep.subr.mxu1 %v861_v34  ;;  %v1590_v1 = vld [vmem:[#allocation7 + $0x80] sm:$0xff]  ;;  %v667_v34 = vld [vmem:[#allocation5 + $0x9e8] sm:$0xff] }
 0x171   : > { %1429 = vmatpush2.msra.mxu0 %v858_v35  ;;  %1518 = vmatpush2.msra.mxu1 %v860_v36  ;;  %v669_v35 = vld [vmem:[#allocation5 + $0x9f8] sm:$0xff]  ;;  %v1592_v36 = vld [vmem:[#allocation7 + $0x90] sm:$0xff] }
 0x172   : > { %1430 = vmatprep.subr.mxu0 %v843_v8  ;;  %1519 = vmatprep.subr.mxu1 %v845_v38  ;;  %v666_v8 = vld [vmem:[#allocation5 + $0x9e0] sm:$0xff]  ;;  %v668_v38 = vld [vmem:[#allocation5 + $0x9f0] sm:$0xff] }
 0x173   : > { %1431 = vmatpush2.msra.mxu0 %v842_v39  ;;  %1520 = vmatpush2.msra.mxu1 %v844_v11  ;;  %v1574_v39 = vld [vmem:[#allocation7] sm:$0xff]  ;;  %v1591_v11 = vld [vmem:[#allocation7 + $0x88] sm:$0xff] }
 0x174   : > { %1432 = vmatprep.subr.mxu0 %v827_v41  ;;  %1521 = vmatprep.subr.mxu1 %v829_v42  ;;  %v1606_v41 = vld [vmem:[#allocation7 + $0x100] sm:$0xff]  ;;  %v1576_v42 = vld [vmem:[#allocation7 + $0x10] sm:$0xff] }
 0x175   : > { %1433 = vmatpush2.msra.mxu0 %v826_v43  ;;  %1522 = vmatpush2.msra.mxu1 %v828_v18  ;;  %v1575_v43 = vld [vmem:[#allocation7 + $0x8] sm:$0xff] }
 0x176   : > { %1434 = vmatprep.subr.mxu0 %v811_v45  ;;  %1523 = vmatprep.subr.mxu1 %v813_v21 }
 0x177   : > { %1435 = vmatpush2.msra.mxu0 %v810_v46  ;;  %1524 = vmatpush2.msra.mxu1 %v812_v47  ;;  %v1608_v46 = vld [vmem:[#allocation7 + $0x110] sm:$0xff]  ;;  %v651_v47 = vld [vmem:[#allocation5 + $0x968] sm:$0xff] }
 0x178   : > { %1436 = vmatprep.subr.mxu0 %v795_v49  ;;  %1525 = vmatprep.subr.mxu1 %v797_v50  ;;  %v1593_v50 = vld [vmem:[#allocation7 + $0x98] sm:$0xff] }
 0x179   : > { %1437 = vmatpush2.msra.mxu0 %v794_v28  ;;  %1526 = vmatpush2.msra.mxu1 %v796_v51  ;;  %v3290_v58 = vpop.f32.mrf.mxu0  ;;  %v3292_v59 = vpop.f32.mrf.mxu1  ;;  %v1607_v28 = vld [vmem:[#allocation7 + $0x108] sm:$0xff]  ;;  %v653_v51 = vld [vmem:[#allocation5 + $0x978] sm:$0xff] }
 0x17a   : > { %1438 = vmatprep.subr.mxu0 %v779_v53  ;;  %1527 = vmatprep.subr.mxu1 %v781_v54  ;;  %v650_v53 = vld [vmem:[#allocation5 + $0x960] sm:$0xff]  ;;  %v1638_v54 = vmul.f32 %v1574_v39, %v3290_v58 }
 0x17b   : > { %1439 = vmatpush2.msra.mxu0 %v778_v31  ;;  %1528 = vmatpush2.msra.mxu1 %v780_v55  ;;  %v3294_v2 = vpop.f32.mrf.mxu0  ;;  %v3296_v3 = vpop.f32.mrf.mxu1  ;;  %v1577_v31 = vld [vmem:[#allocation7 + $0x18] sm:$0xff] }
 0x17c   : > { %1440 = vmatprep.subr.mxu0 %v763_v56  ;;  %1529 = vmatprep.subr.mxu1 %v765_v57 }
 0x17d   : > { %1441 = vmatpush2.msra.mxu0 %v762_v60  ;;  %1530 = vmatpush2.msra.mxu1 %v764_v61  ;;  %v652_v61 = vld [vmem:[#allocation5 + $0x970] sm:$0xff] }
 0x17e   : > { %1442 = vmatprep.subr.mxu0 %v747_v62  ;;  %1531 = vmatprep.subr.mxu1 %v749_v0  ;;  %v635_v62 = vld [vmem:[#allocation5 + $0x8e8] sm:$0xff]  ;;  %v1640_v0 = vmul.f32 %v1576_v42, %v3292_v59  ;;  %v620_v42 = vld [vmem:[#allocation5 + $0x870] sm:$0xff] }
 0x17f   : > { %1443 = vmatpush2.msra.mxu0 %v746_v4  ;;  %1532 = vmatpush2.msra.mxu1 %v748_v5  ;;  %v3298_v16 = vpop.f32.mrf.mxu0  ;;  %v3300_v17 = vpop.f32.mrf.mxu1  ;;  %v1639_v4 = vmul.f32 %v1575_v43, %v3294_v2 }
 0x180   : > { %1444 = vmatprep.subr.mxu0 %v731_v6  ;;  %1533 = vmatprep.subr.mxu1 %v733_v7  ;;  %v1654_v18 = vmul.f32 %v1590_v1, %v3298_v16  ;;  %v1656_v49 = vmul.f32 %v1592_v36, %v3300_v17  ;;  %v1609_v6 = vld [vmem:[#allocation7 + $0x118] sm:$0xff]  ;;  %v1623_v36 = vld [vmem:[#allocation7 + $0x188] sm:$0xff] }
 0x181   : > { %1445 = vmatpush2.msra.mxu0 %v730_v9  ;;  %1534 = vmatpush2.msra.mxu1 %v732_v10  ;;  %v3302_v29 = vpop.f32.mrf.mxu0  ;;  %v3304_v30 = vpop.f32.mrf.mxu1  ;;  %v637_v7 = vld [vmem:[#allocation5 + $0x8f8] sm:$0xff] }
 0x182   : > { %1446 = vmatprep.subr.mxu0 %v715_v12  ;;  %1535 = vmatprep.subr.mxu1 %v717_v13  ;;  %v1655_v55 = vmul.f32 %v1591_v11, %v3302_v29  ;;  %v1702_v9 = vadd.f32 %v1654_v18, %v1638_v54  ;;  %v1657_v10 = vmul.f32 %v1593_v50, %v3304_v30  ;;  %v1622_v13 = vld [vmem:[#allocation7 + $0x180] sm:$0xff] }
 0x183   : > { %1447 = vmatpush2.msra.mxu0 %v714_v14  ;;  %1536 = vmatpush2.msra.mxu1 %v716_v15  ;;  %v1624_v14 = vld [vmem:[#allocation7 + $0x190] sm:$0xff]  ;;  %v634_v15 = vld [vmem:[#allocation5 + $0x8e0] sm:$0xff] }
 0x184   : > { %1448 = vmatprep.subr.mxu0 %v699_v19  ;;  %1537 = vmatprep.subr.mxu1 %v701_v20  ;;  %v636_v19 = vld [vmem:[#allocation5 + $0x8f0] sm:$0xff]  ;;  %v1641_v20 = vmul.f32 %v1577_v31, %v3296_v3 }
 0x185   : > { %1449 = vmatpush2.msra.mxu0 %v698_v23  ;;  %1538 = vmatpush2.msra.mxu1 %v700_v24  ;;  %v3307_v45 = vpop.f32.mrf.mxu0  ;;  %v3309_v21 = vpop.f32.mrf.mxu1  ;;  %v1720_v23 = vadd.f32 %v1656_v49, %v1640_v0  ;;  %v619_v24 = vld [vmem:[#allocation5 + $0x868] sm:$0xff] }
 0x186   : > { %1450 = vmatprep.subr.mxu0 %v683_v25  ;;  %1539 = vmatprep.subr.mxu1 %v685_v26  ;;  %v1670_v56 = vmul.f32 %v1606_v41, %v3307_v45  ;;  %v1672_v5 = vmul.f32 %v1608_v46, %v3309_v21  ;;  %v621_v25 = vld [vmem:[#allocation5 + $0x878] sm:$0xff]  ;;  %v1711_v26 = vadd.f32 %v1655_v55, %v1639_v4 }
 0x187   : > { %1451 = vmatpush2.msra.mxu0 %v682_v63  ;;  %1540 = vmatpush2.msra.mxu1 %v684_v32  ;;  %v3315_v57 = vpop.f32.mrf.mxu0  ;;  %v3317_v60 = vpop.f32.mrf.mxu1  ;;  %v1625_v41 = vld [vmem:[#allocation7 + $0x198] sm:$0xff]  ;;  %v1729_v43 = vadd.f32 %v1657_v10, %v1641_v20 }
 0x188   : > { %1452 = vmatprep.subr.mxu0 %v667_v34  ;;  %1541 = vmatprep.subr.mxu1 %v669_v35  ;;  %v1671_v12 = vmul.f32 %v1607_v28, %v3315_v57  ;;  %v1703_v63 = vadd.f32 %v1702_v9, %v1670_v56  ;;  %v1673_v32 = vmul.f32 %v1609_v6, %v3317_v60  ;;  %v1850_v34 = vlaneseq }
 0x189   : > { %1453 = vmatpush2.msra.mxu0 %v666_v8  ;;  %1542 = vmatpush2.msra.mxu1 %v668_v38  ;;  %v618_v8 = vld [vmem:[#allocation5 + $0x860] sm:$0xff]  ;;  %v1721_v38 = vadd.f32 %v1720_v23, %v1672_v5 }
 0x18a   : > { %1454 = vmatprep.subr.mxu0 %v651_v47  ;;  %1543 = vmatprep.subr.mxu1 %v653_v51  ;;  %v1712_v18 = vadd.f32 %v1711_v26, %v1671_v12  ;;  %v1730_v51 = vadd.f32 %v1729_v43, %v1673_v32 }
 0x18b   : > { %1455 = vmatpush2.msra.mxu0 %v650_v53  ;;  %1544 = vmatpush2.msra.mxu1 %v652_v61  ;;  %v3326_v1 = vpop.f32.mrf.mxu0  ;;  %v3328_v35 = vpop.f32.mrf.mxu1  ;;  %v3338_v53 = vshrl.u32 %v1850_v34, 7 }
 0x18c   : > { %1456 = vmatprep.subr.mxu0 %v635_v62  ;;  %1545 = vmatprep.subr.mxu1 %v637_v7  ;;  %v1686_v39 = vmul.f32 %v1622_v13, %v3326_v1  ;;  %v1688_v11 = vmul.f32 %v1624_v14, %v3328_v35  ;;  %v3349_v7 = vld [vmem:[#allocation8] sm:$0xff] }
 0x18d   : > { %1457 = vmatpush2.msra.mxu0 %v634_v15  ;;  %1546 = vmatpush2.msra.mxu1 %v636_v19  ;;  %v3332_v46 = vpop.f32.mrf.mxu0  ;;  %v3334_v47 = vpop.f32.mrf.mxu1  ;;  %v3347_v5 = vsub.s32 0, %v3338_v53  ;;  %v1860_v10 = vsub.s32 2, %v3338_v53  ;;  %v1856_v15 = vsub.s32 1, %v3338_v53  ;;  %v1864_v23 = vsub.s32 3, %v3338_v53 }
 0x18e   : > { %1458 = vmatprep.subr.mxu0 %v619_v24  ;;  %1547 = vmatprep.subr.mxu1 %v621_v25  ;;  %v1704_v49 = vadd.f32 %v1703_v63, %v1686_v39  ;;  %v1722_v50 = vadd.f32 %v1721_v38, %v1688_v11  ;;  %v1687_v28 = vmul.f32 %v1623_v36, %v3332_v46 }
 0x18f   : > { %1459 = vmatpush2.msra.mxu0 %v618_v8  ;;  %1460 = vmatprep.mubr.f32.mxu0 %v3251_v22  ;;  %v1689_v54 = vmul.f32 %v1625_v41, %v3334_v47  ;;  %v1853_v19 = vrot.slane %v3349_v7, %v3347_v5  ;;  %v1857_v36 = vrot.slane %v3349_v7, %v1856_v15 }
 0x190   : > { %1548 = vmatpush2.msra.mxu1 %v620_v42  ;;  %1549 = vmatprep.mubr.f32.mxu1 %v3251_v22  ;;  %v1705_v31 = vrot.slane %v1704_v49, 4  ;;  %v1723_v55 = vrot.slane %v1722_v50, 4  ;;  %v1713_v56 = vadd.f32 %v1712_v18, %v1687_v28  ;;  %v1865_v38 = vrot.slane %v3349_v7, %v1864_v23 }
 0x191   : > { %1461 = vmatmul.mubr.f32.vlgmr.msra.gmra.mxu0 %v3256_v27  ;;  %1550 = vmatmul.mubr.f32.vlgmr.msra.gmra.mxu1 %v3256_v27  ;;  %v1731_v61 = vadd.f32 %v1730_v51, %v1689_v54 }
 0x192   : > { %1466 = vmatprep.mubr.f32.mxu0 %v3261_v33  ;;  %1555 = vmatprep.mubr.f32.mxu1 %v3261_v33  ;;  %v1706_v62 = vadd.f32 %v1705_v31, %v1704_v49  ;;  %v1724_v0 = vadd.f32 %v1723_v55, %v1722_v50  ;;  %v1714_v4 = vrot.slane %v1713_v56, 4 }
 0x193   : > { %v1732_v6 = vrot.slane %v1731_v61, 4 }
 0x194   : > { %v1707_v22 = vrot.slane %v1706_v62, 2  ;;  %v1725_v9 = vrot.slane %v1724_v0, 2  ;;  %v1715_v12 = vadd.f32 %v1714_v4, %v1713_v56 }
 0x195   : > { %1467 = vmatmul.mubr.f32.gmra.mxu0 %v3266_v37  ;;  %1556 = vmatmul.mubr.f32.gmra.mxu1 %v3266_v37  ;;  %v1733_v27 = vadd.f32 %v1732_v6, %v1731_v61  ;;  %v1861_v37 = vrot.slane %v3349_v7, %v1860_v10  ;;  %v2170_v6 = vld [vmem:[%s3188_s28] sm:$0xff] }
 0x196   : > { %1472 = vmatprep.mubr.f32.mxu0 %v3271_v40  ;;  %1561 = vmatprep.mubr.f32.mxu1 %v3271_v40  ;;  %v1708_v33 = vadd.f32 %v1707_v22, %v1706_v62  ;;  %v1726_v13 = vadd.f32 %v1725_v9, %v1724_v0  ;;  %v1716_v14 = vrot.slane %v1715_v12, 2  ;;  %v2186_v22 = vld [vmem:[%s3188_s28 + $0x80] sm:$0xff] }
 0x197   : > { %v1734_v20 = vrot.slane %v1733_v27, 2  ;;  %v2202_v9 = vld [vmem:[%s3188_s28 + $0x100] sm:$0xff] }
 0x198   : > { %v1709_v24 = vrot.slane %v1708_v33, 1  ;;  %v1727_v25 = vrot.slane %v1726_v13, 1  ;;  %v1717_v26 = vadd.f32 %v1716_v14, %v1715_v12  ;;  %v2218_v12 = vld [vmem:[%s3188_s28 + $0x180] sm:$0xff] }
 0x199   : > { %1473 = vmatmul.mubr.f32.gmra.mxu0 %v3276_v44  ;;  %1562 = vmatmul.mubr.f32.gmra.mxu1 %v3276_v44  ;;  %v1735_v40 = vadd.f32 %v1734_v20, %v1733_v27 }
 0x19a   : > { %1478 = vmatprep.mubr.f32.mxu0 %v3281_v48  ;;  %1567 = vmatprep.mubr.f32.mxu1 %v3281_v48  ;;  %v1710_v63 = vadd.f32 %v1709_v24, %v1708_v33  ;;  %v1728_v32 = vadd.f32 %v1727_v25, %v1726_v13  ;;  %v1718_v34 = vrot.slane %v1717_v26, 1  ;;  %v2172_v33 = vld [vmem:[%s3188_s28 + $0x10] sm:$0xff] }
 0x19b   : > { %v1736_v8 = vrot.slane %v1735_v40, 1  ;;  %v2188_v25 = vld [vmem:[%s3188_s28 + $0x90] sm:$0xff] }
 0x19c   : > { %v1930_v39 = vadd.f32 %v1853_v19, %v1710_v63  ;;  %v1932_v11 = vadd.f32 %v1861_v37, %v1728_v32  ;;  %v1719_v44 = vadd.f32 %v1718_v34, %v1717_v26  ;;  %v2204_v37 = vld [vmem:[%s3188_s28 + $0x110] sm:$0xff] }
 0x19d   : > { %1479 = vmatmul.mubr.f32.gmra.mxu0 %v3286_v52  ;;  %1568 = vmatmul.mubr.f32.gmra.mxu1 %v3286_v52  ;;  %v1737_v48 = vadd.f32 %v1736_v8, %v1735_v40  ;;  %v2220_v26 = vld [vmem:[%s3188_s28 + $0x190] sm:$0xff] }
 0x19e   : > { %v2534_v41 = vmul.f32 -1.442695, %v1930_v39  ;;  %v2536_v42 = vmul.f32 -1.442695, %v1932_v11  ;;  %v1931_v43 = vadd.f32 %v1857_v36, %v1719_v44 }
 0x19f   : > { %v1933_v18 = vadd.f32 %v1865_v38, %v1737_v48  ;;  %v2171_v48 = vld [vmem:[%s3188_s28 + $0x8] sm:$0xff] }
 0x1a0   : > { %2662 = vpow2.f32 %v2534_v41  ;;  %v2535_v49 = vmul.f32 -1.442695, %v1931_v43  ;;  %v2187_v41 = vld [vmem:[%s3188_s28 + $0x88] sm:$0xff] }
 0x1a1   : > { %2664 = vpow2.f32 %v2536_v42  ;;  %v2537_v50 = vmul.f32 -1.442695, %v1933_v18  ;;  %v2203_v43 = vld [vmem:[%s3188_s28 + $0x108] sm:$0xff] }
 0x1a2   : > { %2666 = vpow2.f32 %v2535_v49  ;;  %v2219_v18 = vld [vmem:[%s3188_s28 + $0x188] sm:$0xff]  ;;  %v2173_v49 = vld [vmem:[%s3188_s28 + $0x18] sm:$0xff] }
 0x1a3   : > { %2668 = vpow2.f32 %v2537_v50 }
 0x1ad   : > { %v2663_v28 = vpop.eup %2662 }
 0x1ae   : > { %v2665_v51 = vpop.eup %2664  ;;  %v1994_v54 = vadd.f32 1.0, %v2663_v28 }
 0x1af   : > { %v2667_v31 = vpop.eup %2666  ;;  %v1996_v52 = vadd.f32 1.0, %v2665_v51 }
 0x1b0   : > { %v2669_v55 = vpop.eup %2668  ;;  %2670 = vrcp.f32 %v1994_v54  ;;  %v1995_v56 = vadd.f32 1.0, %v2667_v31  ;;  %v2189_v31 = vld [vmem:[%s3188_s28 + $0x98] sm:$0xff] }
 0x1b1   : > { %2672 = vrcp.f32 %v1996_v52  ;;  %v1997_v61 = vadd.f32 1.0, %v2669_v55  ;;  %v2205_v52 = vld [vmem:[%s3188_s28 + $0x118] sm:$0xff] }
 0x1b2   : > { %2674 = vrcp.f32 %v1995_v56  ;;  %v2221_v55 = vld [vmem:[%s3188_s28 + $0x198] sm:$0xff] }
 0x1b3   : > { %2676 = vrcp.f32 %v1997_v61 }
 0x1bd   : > { %v2671_v62 = vpop.eup %2670 }
 0x1be   : > { %v2673_v0 = vpop.eup %2672  ;;  %v2045_v4 = vrot.slane %v2671_v62, %v3347_v5 }
 0x1bf   : > { %v2053_v27 = vrot.slane %v2673_v0, %v3347_v5  ;;  %v2675_v13 = vpop.eup %2674 }
 0x1c0   : > { %v2106_v14 = vmul.f32 %v2045_v4, %v3290_v58  ;;  %v2122_v19 = vmul.f32 %v2045_v4, %v3298_v16  ;;  %v2138_v20 = vmul.f32 %v2045_v4, %v3307_v45  ;;  %v2154_v24 = vmul.f32 %v2045_v4, %v3326_v1  ;;  %v2677_v40 = vpop.eup %2676 }
 0x1c1   : > { %v2108_v63 = vmul.f32 %v2053_v27, %v3292_v59  ;;  %v2124_v32 = vmul.f32 %v2053_v27, %v3300_v17  ;;  %v2140_v34 = vmul.f32 %v2053_v27, %v3309_v21  ;;  %v2156_v36 = vmul.f32 %v2053_v27, %v3328_v35  ;;  %v3393_v58 = vpop.f32.mrf.mxu0  ;;  %v3395_v16 = vpop.f32.mrf.mxu1  ;;  %v1594_v27 = vld [vmem:[#allocation7 + $0xa0] sm:$0xff] }
 0x1c2   : > { %v2234_v45 = vmul.f32 %v2170_v6, %v2106_v14  ;;  %v2250_v1 = vmul.f32 %v2186_v22, %v2122_v19  ;;  %v2266_v8 = vmul.f32 %v2202_v9, %v2138_v20  ;;  %v2282_v38 = vmul.f32 %v2218_v12, %v2154_v24  ;;  %v1578_v12 = vld [vmem:[#allocation7 + $0x20] sm:$0xff]  ;;  %v1595_v14 = vld [vmem:[#allocation7 + $0xa8] sm:$0xff]  ;;  %v1597_v19 = vld [vmem:[#allocation7 + $0xb8] sm:$0xff] }
 0x1c3   : > { %v2236_v39 = vmul.f32 %v2172_v33, %v2108_v63  ;;  %v2252_v11 = vmul.f32 %v2188_v25, %v2124_v32  ;;  %v2268_v59 = vmul.f32 %v2204_v37, %v2140_v34  ;;  %v2284_v44 = vmul.f32 %v2220_v26, %v2156_v36  ;;  %v3397_v17 = vpop.f32.mrf.mxu0  ;;  %v3399_v21 = vpop.f32.mrf.mxu1  ;;  %v1596_v33 = vld [vmem:[#allocation7 + $0xb0] sm:$0xff]  ;;  %v1579_v20 = vld [vmem:[#allocation7 + $0x28] sm:$0xff]  ;;  %v1610_v25 = vld [vmem:[#allocation7 + $0x120] sm:$0xff] }
 0x1c4   : > { %2298 = vst [vmem:[%s3403_s24] sm:$0xff] %v2234_v45  ;;  %2314 = vst [vmem:[%s3403_s24 + $0x80] sm:$0xff] %v2250_v1  ;;  %v2049_v35 = vrot.slane %v2675_v13, %v3347_v5  ;;  %v2057_v42 = vrot.slane %v2677_v40, %v3347_v5  ;;  %v1580_v13 = vld [vmem:[#allocation7 + $0x30] sm:$0xff]  ;;  %v1581_v40 = vld [vmem:[#allocation7 + $0x38] sm:$0xff] }
 0x1c5   : > { %2330 = vst [vmem:[%s3403_s24 + $0x100] sm:$0xff] %v2266_v8  ;;  %2346 = vst [vmem:[%s3403_s24 + $0x180] sm:$0xff] %v2282_v38  ;;  %v1612_v26 = vld [vmem:[#allocation7 + $0x130] sm:$0xff]  ;;  %v1611_v34 = vld [vmem:[#allocation7 + $0x128] sm:$0xff] }
 0x1c6   : > { %2300 = vst [vmem:[%s3403_s24 + $0x10] sm:$0xff] %v2236_v39  ;;  %2316 = vst [vmem:[%s3403_s24 + $0x90] sm:$0xff] %v2252_v11  ;;  %v2107_v50 = vmul.f32 %v2049_v35, %v3294_v2  ;;  %v2123_v28 = vmul.f32 %v2049_v35, %v3302_v29  ;;  %v2139_v51 = vmul.f32 %v2049_v35, %v3315_v57  ;;  %v1613_v36 = vld [vmem:[#allocation7 + $0x138] sm:$0xff] }
 0x1c7   : > { %2332 = vst [vmem:[%s3403_s24 + $0x110] sm:$0xff] %v2268_v59  ;;  %2348 = vst [vmem:[%s3403_s24 + $0x190] sm:$0xff] %v2284_v44  ;;  %v2155_v54 = vmul.f32 %v2049_v35, %v3332_v46  ;;  %v2109_v56 = vmul.f32 %v2057_v42, %v3296_v3  ;;  %v2125_v61 = vmul.f32 %v2057_v42, %v3304_v30  ;;  %v3431_v29 = vpop.f32.mrf.mxu0  ;;  %v3433_v57 = vpop.f32.mrf.mxu1 }
 0x1c8   : > { %v2141_v62 = vmul.f32 %v2057_v42, %v3317_v60  ;;  %v2157_v2 = vmul.f32 %v2057_v42, %v3334_v47  ;;  %v2235_v46 = vmul.f32 %v2171_v48, %v2107_v50  ;;  %v2251_v0 = vmul.f32 %v2187_v41, %v2123_v28 }
 0x1c9   : > { %v2267_v3 = vmul.f32 %v2203_v43, %v2139_v51  ;;  %v2283_v4 = vmul.f32 %v2219_v18, %v2155_v54  ;;  %v2237_v30 = vmul.f32 %v2173_v49, %v2109_v56  ;;  %v2253_v6 = vmul.f32 %v2189_v31, %v2125_v61  ;;  %v3435_v9 = vpop.f32.mrf.mxu0  ;;  %v3437_v47 = vpop.f32.mrf.mxu1  ;;  %v1626_v43 = vld [vmem:[#allocation7 + $0x1a0] sm:$0xff]  ;;  %v1628_v18 = vld [vmem:[#allocation7 + $0x1b0] sm:$0xff] }
 0x1ca   : > { %v2269_v22 = vmul.f32 %v2205_v52, %v2141_v62  ;;  %v2285_v60 = vmul.f32 %v2221_v55, %v2157_v2  ;;  %2299 = vst [vmem:[%s3403_s24 + $0x8] sm:$0xff] %v2235_v46  ;;  %2315 = vst [vmem:[%s3403_s24 + $0x88] sm:$0xff] %v2251_v0  ;;  %v1658_v63 = vmul.f32 %v1594_v27, %v3431_v29  ;;  %v1627_v52 = vld [vmem:[#allocation7 + $0x1a8] sm:$0xff]  ;;  %v1629_v55 = vld [vmem:[#allocation7 + $0x1b8] sm:$0xff] }
 0x1cb   : > { %2331 = vst [vmem:[%s3403_s24 + $0x108] sm:$0xff] %v2267_v3  ;;  %2347 = vst [vmem:[%s3403_s24 + $0x188] sm:$0xff] %v2283_v4  ;;  %v1660_v32 = vmul.f32 %v1596_v33, %v3433_v57  ;;  %v1659_v45 = vmul.f32 %v1595_v14, %v3435_v9  ;;  %v1661_v1 = vmul.f32 %v1597_v19, %v3437_v47 }
 0x1cc   : > { %2301 = vst [vmem:[%s3403_s24 + $0x18] sm:$0xff] %v2237_v30  ;;  %2317 = vst [vmem:[%s3403_s24 + $0x98] sm:$0xff] %v2253_v6  ;;  %v1642_v39 = vmul.f32 %v1578_v12, %v3393_v58  ;;  %v1644_v11 = vmul.f32 %v1580_v13, %v3395_v16  ;;  %v1643_v35 = vmul.f32 %v1579_v20, %v3397_v17 }
 0x1cd   : > { %2333 = vst [vmem:[%s3403_s24 + $0x118] sm:$0xff] %v2269_v22  ;;  %2349 = vst [vmem:[%s3403_s24 + $0x198] sm:$0xff] %v2285_v60  ;;  %v3447_v24 = vpop.f32.mrf.mxu0  ;;  %v3449_v37 = vpop.f32.mrf.mxu1  ;;  %v1645_v48 = vmul.f32 %v1581_v40, %v3399_v21  ;;  %v1876_v40 = vsub.s32 6, %v3338_v53 }
 0x1ce   : > { %v1674_v59 = vmul.f32 %v1610_v25, %v3447_v24  ;;  %v1676_v44 = vmul.f32 %v1612_v26, %v3449_v37  ;;  %v1738_v49 = vadd.f32 %v1658_v63, %v1642_v39  ;;  %v1756_v50 = vadd.f32 %v1660_v32, %v1644_v11 }
 0x1cf   : > { %v3455_v8 = vpop.f32.mrf.mxu0  ;;  %v3457_v38 = vpop.f32.mrf.mxu1  ;;  %v1747_v28 = vadd.f32 %v1659_v45, %v1643_v35  ;;  %v1765_v51 = vadd.f32 %v1661_v1, %v1645_v48  ;;  %v1868_v26 = vsub.s32 4, %v3338_v53  ;;  %v1872_v45 = vsub.s32 5, %v3338_v53 }
 0x1d0   : > { %v1675_v41 = vmul.f32 %v1611_v34, %v3455_v8  ;;  %v1677_v42 = vmul.f32 %v1613_v36, %v3457_v38  ;;  %v1739_v56 = vadd.f32 %v1738_v49, %v1674_v59  ;;  %v1757_v61 = vadd.f32 %v1756_v50, %v1676_v44 }
 0x1d1   : > { %v1880_v1 = vsub.s32 7, %v3338_v53  ;;  %v1869_v35 = vrot.slane %v3349_v7, %v1868_v26  ;;  %v1877_v48 = vrot.slane %v3349_v7, %v1876_v40  ;;  %v1873_v49 = vrot.slane %v3349_v7, %v1872_v45 }
 0x1d2   : > { %v1748_v46 = vadd.f32 %v1747_v28, %v1675_v41  ;;  %v1766_v0 = vadd.f32 %v1765_v51, %v1677_v42 }
 0x1d3   : > { %v3467_v54 = vpop.f32.mrf.mxu0  ;;  %v3469_v31 = vpop.f32.mrf.mxu1  ;;  %v1881_v50 = vrot.slane %v3349_v7, %v1880_v1 }
 0x1d4   : > { %v1690_v62 = vmul.f32 %v1626_v43, %v3467_v54  ;;  %v1692_v2 = vmul.f32 %v1628_v18, %v3469_v31 }
 0x1d5   : > { %v3473_v3 = vpop.f32.mrf.mxu0  ;;  %v3475_v4 = vpop.f32.mrf.mxu1 }
 0x1d6   : > { %v1740_v30 = vadd.f32 %v1739_v56, %v1690_v62  ;;  %v1758_v6 = vadd.f32 %v1757_v61, %v1692_v2  ;;  %v1691_v22 = vmul.f32 %v1627_v52, %v3473_v3  ;;  %v1693_v60 = vmul.f32 %v1629_v55, %v3475_v4 }
 0x1d8   : > { %v1741_v12 = vrot.slane %v1740_v30, 4  ;;  %v1759_v27 = vrot.slane %v1758_v6, 4  ;;  %v1749_v33 = vadd.f32 %v1748_v46, %v1691_v22  ;;  %v1767_v13 = vadd.f32 %v1766_v0, %v1693_v60 }
 0x1da   : > { %v1742_v14 = vadd.f32 %v1741_v12, %v1740_v30  ;;  %v1760_v19 = vadd.f32 %v1759_v27, %v1758_v6  ;;  %v1750_v20 = vrot.slane %v1749_v33, 4  ;;  %v1768_v25 = vrot.slane %v1767_v13, 4 }
 0x1dc   : > { %v1743_v63 = vrot.slane %v1742_v14, 2  ;;  %v1761_v32 = vrot.slane %v1760_v19, 2  ;;  %v1751_v34 = vadd.f32 %v1750_v20, %v1749_v33  ;;  %v1769_v36 = vadd.f32 %v1768_v25, %v1767_v13 }
 0x1de   : > { %v1744_v39 = vadd.f32 %v1743_v63, %v1742_v14  ;;  %v1762_v11 = vadd.f32 %v1761_v32, %v1760_v19  ;;  %v1752_v59 = vrot.slane %v1751_v34, 2  ;;  %v1770_v44 = vrot.slane %v1769_v36, 2 }
 0x1e0   : > { %v1745_v41 = vrot.slane %v1744_v39, 1  ;;  %v1763_v42 = vrot.slane %v1762_v11, 1  ;;  %v1753_v43 = vadd.f32 %v1752_v59, %v1751_v34  ;;  %v1771_v18 = vadd.f32 %v1770_v44, %v1769_v36  ;;  %v2174_v34 = vld [vmem:[%s3188_s28 + $0x20] sm:$0xff]  ;;  %v2176_v44 = vld [vmem:[%s3188_s28 + $0x30] sm:$0xff] }
 0x1e1   : > { %v2190_v36 = vld [vmem:[%s3188_s28 + $0xa0] sm:$0xff] }
 0x1e2   : > { %v1746_v28 = vadd.f32 %v1745_v41, %v1744_v39  ;;  %v1764_v51 = vadd.f32 %v1763_v42, %v1762_v11  ;;  %v1754_v52 = vrot.slane %v1753_v43, 1  ;;  %v1772_v55 = vrot.slane %v1771_v18, 1  ;;  %v2206_v39 = vld [vmem:[%s3188_s28 + $0x120] sm:$0xff] }
 0x1e3   : > { %v2222_v11 = vld [vmem:[%s3188_s28 + $0x1a0] sm:$0xff] }
 0x1e4   : > { %v1934_v56 = vadd.f32 %v1869_v35, %v1746_v28  ;;  %v1936_v61 = vadd.f32 %v1877_v48, %v1764_v51  ;;  %v1755_v62 = vadd.f32 %v1754_v52, %v1753_v43  ;;  %v1773_v2 = vadd.f32 %v1772_v55, %v1771_v18  ;;  %v2192_v18 = vld [vmem:[%s3188_s28 + $0xb0] sm:$0xff] }
 0x1e6   : > { %v2538_v46 = vmul.f32 -1.442695, %v1934_v56  ;;  %v2540_v0 = vmul.f32 -1.442695, %v1936_v61  ;;  %v1935_v30 = vadd.f32 %v1873_v49, %v1755_v62  ;;  %v1937_v6 = vadd.f32 %v1881_v50, %v1773_v2  ;;  %v2208_v49 = vld [vmem:[%s3188_s28 + $0x130] sm:$0xff] }
 0x1e7   : > { %v2224_v50 = vld [vmem:[%s3188_s28 + $0x1b0] sm:$0xff] }
 0x1e8   : > { %2678 = vpow2.f32 %v2538_v46  ;;  %v2539_v22 = vmul.f32 -1.442695, %v1935_v30  ;;  %v2541_v60 = vmul.f32 -1.442695, %v1937_v6  ;;  %v2175_v30 = vld [vmem:[%s3188_s28 + $0x28] sm:$0xff] }
 0x1e9   : > { %2680 = vpow2.f32 %v2540_v0  ;;  %v2191_v6 = vld [vmem:[%s3188_s28 + $0xa8] sm:$0xff] }
 0x1ea   : > { %2682 = vpow2.f32 %v2539_v22 }
 0x1eb   : > { %2684 = vpow2.f32 %v2541_v60  ;;  %v2207_v60 = vld [vmem:[%s3188_s28 + $0x128] sm:$0xff] }
 0x1f5   : > { %v2679_v7 = vpop.eup %2678 }
 0x1f6   : > { %v2681_v12 = vpop.eup %2680  ;;  %v1998_v27 = vadd.f32 1.0, %v2679_v7  ;;  %v2223_v7 = vld [vmem:[%s3188_s28 + $0x1a8] sm:$0xff] }
 0x1f7   : > { %v2683_v33 = vpop.eup %2682  ;;  %v2000_v13 = vadd.f32 1.0, %v2681_v12  ;;  %v2177_v12 = vld [vmem:[%s3188_s28 + $0x38] sm:$0xff] }
 0x1f8   : > { %v2685_v14 = vpop.eup %2684  ;;  %2686 = vrcp.f32 %v1998_v27  ;;  %v1999_v19 = vadd.f32 1.0, %v2683_v33 }
 0x1f9   : > { %2688 = vrcp.f32 %v2000_v13  ;;  %v2001_v20 = vadd.f32 1.0, %v2685_v14 }
 0x1fa   : > { %2690 = vrcp.f32 %v1999_v19  ;;  %v2193_v19 = vld [vmem:[%s3188_s28 + $0xb8] sm:$0xff] }
 0x1fb   : > { %2692 = vrcp.f32 %v2001_v20  ;;  %v2209_v20 = vld [vmem:[%s3188_s28 + $0x138] sm:$0xff] }
 0x205   : > { %v2687_v25 = vpop.eup %2686 }
 0x206   : > { %v2689_v63 = vpop.eup %2688  ;;  %v2061_v32 = vrot.slane %v2687_v25, %v3347_v5  ;;  %v2225_v25 = vld [vmem:[%s3188_s28 + $0x1b8] sm:$0xff] }
 0x207   : > { %v2069_v59 = vrot.slane %v2689_v63, %v3347_v5  ;;  %v2691_v35 = vpop.eup %2690 }
 0x208   : > { %v2110_v48 = vmul.f32 %v2061_v32, %v3393_v58  ;;  %v2126_v41 = vmul.f32 %v2061_v32, %v3431_v29  ;;  %v2142_v42 = vmul.f32 %v2061_v32, %v3447_v24  ;;  %v2158_v43 = vmul.f32 %v2061_v32, %v3467_v54  ;;  %v2693_v28 = vpop.eup %2692 }
 0x209   : > { %v2112_v51 = vmul.f32 %v2069_v59, %v3395_v16  ;;  %v2128_v52 = vmul.f32 %v2069_v59, %v3433_v57  ;;  %v2144_v55 = vmul.f32 %v2069_v59, %v3449_v37  ;;  %v2160_v58 = vmul.f32 %v2069_v59, %v3469_v31  ;;  %v3513_v29 = vpop.f32.mrf.mxu0  ;;  %v3515_v24 = vpop.f32.mrf.mxu1 }
 0x20a   : > { %v2238_v54 = vmul.f32 %v2174_v34, %v2110_v48  ;;  %v2254_v56 = vmul.f32 %v2190_v36, %v2126_v41  ;;  %v2270_v61 = vmul.f32 %v2206_v39, %v2142_v42  ;;  %v2286_v16 = vmul.f32 %v2222_v11, %v2158_v43  ;;  %v1598_v48 = vld [vmem:[#allocation7 + $0xc0] sm:$0xff]  ;;  %v1600_v41 = vld [vmem:[#allocation7 + $0xd0] sm:$0xff]  ;;  %v1599_v43 = vld [vmem:[#allocation7 + $0xc8] sm:$0xff] }
 0x20b   : > { %v2240_v57 = vmul.f32 %v2176_v44, %v2112_v51  ;;  %v2256_v62 = vmul.f32 %v2192_v18, %v2128_v52  ;;  %v2272_v37 = vmul.f32 %v2208_v49, %v2144_v55  ;;  %v2288_v31 = vmul.f32 %v2224_v50, %v2160_v58  ;;  %v3517_v2 = vpop.f32.mrf.mxu0  ;;  %v3519_v46 = vpop.f32.mrf.mxu1  ;;  %v1584_v42 = vld [vmem:[#allocation7 + $0x50] sm:$0xff]  ;;  %v1601_v18 = vld [vmem:[#allocation7 + $0xd8] sm:$0xff]  ;;  %v1583_v49 = vld [vmem:[#allocation7 + $0x48] sm:$0xff] }
 0x20c   : > { %2302 = vst [vmem:[%s3403_s24 + $0x20] sm:$0xff] %v2238_v54  ;;  %2318 = vst [vmem:[%s3403_s24 + $0xa0] sm:$0xff] %v2254_v56  ;;  %v2065_v0 = vrot.slane %v2691_v35, %v3347_v5  ;;  %v2073_v22 = vrot.slane %v2693_v28, %v3347_v5  ;;  %v1582_v35 = vld [vmem:[#allocation7 + $0x40] sm:$0xff]  ;;  %v1616_v52 = vld [vmem:[#allocation7 + $0x150] sm:$0xff] }
 0x20d   : > { %2334 = vst [vmem:[%s3403_s24 + $0x120] sm:$0xff] %v2270_v61  ;;  %2350 = vst [vmem:[%s3403_s24 + $0x1a0] sm:$0xff] %v2286_v16  ;;  %v1614_v28 = vld [vmem:[#allocation7 + $0x140] sm:$0xff]  ;;  %v1585_v55 = vld [vmem:[#allocation7 + $0x58] sm:$0xff] }
 0x20e   : > { %2304 = vst [vmem:[%s3403_s24 + $0x30] sm:$0xff] %v2240_v57  ;;  %2320 = vst [vmem:[%s3403_s24 + $0xb0] sm:$0xff] %v2256_v62  ;;  %v2111_v27 = vmul.f32 %v2065_v0, %v3397_v17  ;;  %v2127_v33 = vmul.f32 %v2065_v0, %v3435_v9  ;;  %v2143_v13 = vmul.f32 %v2065_v0, %v3455_v8  ;;  %v1615_v56 = vld [vmem:[#allocation7 + $0x148] sm:$0xff]  ;;  %v1617_v61 = vld [vmem:[#allocation7 + $0x158] sm:$0xff] }
 0x20f   : > { %2336 = vst [vmem:[%s3403_s24 + $0x130] sm:$0xff] %v2272_v37  ;;  %2352 = vst [vmem:[%s3403_s24 + $0x1b0] sm:$0xff] %v2288_v31  ;;  %v2159_v14 = vmul.f32 %v2065_v0, %v3473_v3  ;;  %v2113_v63 = vmul.f32 %v2073_v22, %v3399_v21  ;;  %v2129_v32 = vmul.f32 %v2073_v22, %v3437_v47  ;;  %v3547_v9 = vpop.f32.mrf.mxu0  ;;  %v3549_v8 = vpop.f32.mrf.mxu1 }
 0x210   : > { %v2145_v34 = vmul.f32 %v2073_v22, %v3457_v38  ;;  %v2161_v17 = vmul.f32 %v2073_v22, %v3475_v4  ;;  %v2239_v3 = vmul.f32 %v2175_v30, %v2111_v27  ;;  %v2255_v36 = vmul.f32 %v2191_v6, %v2127_v33  ;;  %v1630_v27 = vld [vmem:[#allocation7 + $0x1c0] sm:$0xff]  ;;  %v1632_v33 = vld [vmem:[#allocation7 + $0x1d0] sm:$0xff] }
 0x211   : > { %v2271_v21 = vmul.f32 %v2207_v60, %v2143_v13  ;;  %v2287_v39 = vmul.f32 %v2223_v7, %v2159_v14  ;;  %v2241_v47 = vmul.f32 %v2177_v12, %v2113_v63  ;;  %v2257_v11 = vmul.f32 %v2193_v19, %v2129_v32  ;;  %v3551_v44 = vpop.f32.mrf.mxu0  ;;  %v3553_v4 = vpop.f32.mrf.mxu1  ;;  %v1631_v32 = vld [vmem:[#allocation7 + $0x1c8] sm:$0xff] }
 0x212   : > { %v2273_v59 = vmul.f32 %v2209_v20, %v2145_v34  ;;  %v2289_v38 = vmul.f32 %v2225_v25, %v2161_v17  ;;  %2303 = vst [vmem:[%s3403_s24 + $0x28] sm:$0xff] %v2239_v3  ;;  %2319 = vst [vmem:[%s3403_s24 + $0xa8] sm:$0xff] %v2255_v36  ;;  %v1662_v58 = vmul.f32 %v1598_v48, %v3547_v9  ;;  %v1633_v34 = vld [vmem:[#allocation7 + $0x1d8] sm:$0xff] }
 0x213   : > { %2335 = vst [vmem:[%s3403_s24 + $0x128] sm:$0xff] %v2271_v21  ;;  %2351 = vst [vmem:[%s3403_s24 + $0x1a8] sm:$0xff] %v2287_v39  ;;  %v1664_v54 = vmul.f32 %v1600_v41, %v3549_v8  ;;  %v1663_v16 = vmul.f32 %v1599_v43, %v3551_v44  ;;  %v1665_v57 = vmul.f32 %v1601_v18, %v3553_v4 }
 0x214   : > { %2305 = vst [vmem:[%s3403_s24 + $0x38] sm:$0xff] %v2241_v47  ;;  %2321 = vst [vmem:[%s3403_s24 + $0xb8] sm:$0xff] %v2257_v11  ;;  %v1646_v31 = vmul.f32 %v1582_v35, %v3513_v29  ;;  %v1648_v0 = vmul.f32 %v1584_v42, %v3515_v24  ;;  %v1647_v22 = vmul.f32 %v1583_v49, %v3517_v2 }
 0x215   : > { %2337 = vst [vmem:[%s3403_s24 + $0x138] sm:$0xff] %v2273_v59  ;;  %2353 = vst [vmem:[%s3403_s24 + $0x1b8] sm:$0xff] %v2289_v38  ;;  %v3563_v50 = vpop.f32.mrf.mxu0  ;;  %v3565_v51 = vpop.f32.mrf.mxu1  ;;  %v1649_v60 = vmul.f32 %v1585_v55, %v3519_v46 }
 0x216   : > { %v1678_v30 = vmul.f32 %v1614_v28, %v3563_v50  ;;  %v1680_v6 = vmul.f32 %v1616_v52, %v3565_v51  ;;  %v1774_v13 = vadd.f32 %v1662_v58, %v1646_v31  ;;  %v1792_v14 = vadd.f32 %v1664_v54, %v1648_v0 }
 0x217   : > { %v3571_v62 = vpop.f32.mrf.mxu0  ;;  %v3573_v37 = vpop.f32.mrf.mxu1  ;;  %v1783_v19 = vadd.f32 %v1663_v16, %v1647_v22  ;;  %v1801_v20 = vadd.f32 %v1665_v57, %v1649_v60 }
 0x218   : > { %v1679_v7 = vmul.f32 %v1615_v56, %v3571_v62  ;;  %v1681_v12 = vmul.f32 %v1617_v61, %v3573_v37  ;;  %v1775_v17 = vadd.f32 %v1774_v13, %v1678_v30  ;;  %v1793_v3 = vadd.f32 %v1792_v14, %v1680_v6  ;;  %v3595_v56 = vld [vmem:[#allocation8 + $0x8] sm:$0xff] }
 0x219   : > { %v1885_v22 = vrot.slane %v3595_v56, %v3347_v5  ;;  %v1893_v60 = vrot.slane %v3595_v56, %v1860_v10  ;;  %v1889_v13 = vrot.slane %v3595_v56, %v1856_v15  ;;  %v1897_v14 = vrot.slane %v3595_v56, %v1864_v23 }
 0x21a   : > { %v1784_v39 = vadd.f32 %v1783_v19, %v1679_v7  ;;  %v1802_v47 = vadd.f32 %v1801_v20, %v1681_v12 }
 0x21b   : > { %v3583_v25 = vpop.f32.mrf.mxu0  ;;  %v3585_v63 = vpop.f32.mrf.mxu1 }
 0x21c   : > { %v1694_v36 = vmul.f32 %v1630_v27, %v3583_v25  ;;  %v1696_v21 = vmul.f32 %v1632_v33, %v3585_v63 }
 0x21d   : > { %v3589_v11 = vpop.f32.mrf.mxu0  ;;  %v3591_v59 = vpop.f32.mrf.mxu1 }
 0x21e   : > { %v1776_v38 = vadd.f32 %v1775_v17, %v1694_v36  ;;  %v1794_v35 = vadd.f32 %v1793_v3, %v1696_v21  ;;  %v1695_v48 = vmul.f32 %v1631_v32, %v3589_v11  ;;  %v1697_v41 = vmul.f32 %v1633_v34, %v3591_v59 }
 0x220   : > { %v1777_v42 = vrot.slane %v1776_v38, 4  ;;  %v1795_v43 = vrot.slane %v1794_v35, 4  ;;  %v1785_v18 = vadd.f32 %v1784_v39, %v1695_v48  ;;  %v1803_v49 = vadd.f32 %v1802_v47, %v1697_v41 }
 0x222   : > { %v1778_v28 = vadd.f32 %v1777_v42, %v1776_v38  ;;  %v1796_v52 = vadd.f32 %v1795_v43, %v1794_v35  ;;  %v1786_v55 = vrot.slane %v1785_v18, 4  ;;  %v1804_v58 = vrot.slane %v1803_v49, 4 }
 0x224   : > { %v1779_v54 = vrot.slane %v1778_v28, 2  ;;  %v1797_v61 = vrot.slane %v1796_v52, 2  ;;  %v1787_v16 = vadd.f32 %v1786_v55, %v1785_v18  ;;  %v1805_v57 = vadd.f32 %v1804_v58, %v1803_v49 }
 0x226   : > { %v1780_v31 = vadd.f32 %v1779_v54, %v1778_v28  ;;  %v1798_v0 = vadd.f32 %v1797_v61, %v1796_v52  ;;  %v1788_v30 = vrot.slane %v1787_v16, 2  ;;  %v1806_v6 = vrot.slane %v1805_v57, 2  ;;  %v2178_v54 = vld [vmem:[%s3188_s28 + $0x40] sm:$0xff] }
 0x227   : > { %v2194_v61 = vld [vmem:[%s3188_s28 + $0xc0] sm:$0xff] }
 0x228   : > { %v1781_v7 = vrot.slane %v1780_v31, 1  ;;  %v1799_v12 = vrot.slane %v1798_v0, 1  ;;  %v1789_v27 = vadd.f32 %v1788_v30, %v1787_v16  ;;  %v1807_v33 = vadd.f32 %v1806_v6, %v1805_v57  ;;  %v2210_v16 = vld [vmem:[%s3188_s28 + $0x140] sm:$0xff] }
 0x229   : > { %v2226_v57 = vld [vmem:[%s3188_s28 + $0x1c0] sm:$0xff] }
 0x22a   : > { %v1782_v19 = vadd.f32 %v1781_v7, %v1780_v31  ;;  %v1800_v20 = vadd.f32 %v1799_v12, %v1798_v0  ;;  %v1790_v32 = vrot.slane %v1789_v27, 1  ;;  %v1808_v34 = vrot.slane %v1807_v33, 1  ;;  %v2180_v0 = vld [vmem:[%s3188_s28 + $0x50] sm:$0xff] }
 0x22b   : > { %v2196_v12 = vld [vmem:[%s3188_s28 + $0xd0] sm:$0xff] }
 0x22c   : > { %v1938_v17 = vadd.f32 %v1885_v22, %v1782_v19  ;;  %v1940_v3 = vadd.f32 %v1893_v60, %v1800_v20  ;;  %v1791_v36 = vadd.f32 %v1790_v32, %v1789_v27  ;;  %v1809_v10 = vadd.f32 %v1808_v34, %v1807_v33  ;;  %v2212_v27 = vld [vmem:[%s3188_s28 + $0x150] sm:$0xff] }
 0x22d   : > { %v2228_v33 = vld [vmem:[%s3188_s28 + $0x1d0] sm:$0xff] }
 0x22e   : > { %v2542_v21 = vmul.f32 -1.442695, %v1938_v17  ;;  %v2544_v39 = vmul.f32 -1.442695, %v1940_v3  ;;  %v1939_v47 = vadd.f32 %v1889_v13, %v1791_v36  ;;  %v1941_v38 = vadd.f32 %v1897_v14, %v1809_v10  ;;  %v1588_v17 = vld [vmem:[#allocation7 + $0x70] sm:$0xff] }
 0x230   : > { %2694 = vpow2.f32 %v2542_v21  ;;  %v2543_v35 = vmul.f32 -1.442695, %v1939_v47  ;;  %v2545_v48 = vmul.f32 -1.442695, %v1941_v38  ;;  %v2179_v47 = vld [vmem:[%s3188_s28 + $0x48] sm:$0xff] }
 0x231   : > { %2696 = vpow2.f32 %v2544_v39  ;;  %v2195_v38 = vld [vmem:[%s3188_s28 + $0xc8] sm:$0xff] }
 0x232   : > { %2698 = vpow2.f32 %v2543_v35  ;;  %v2211_v35 = vld [vmem:[%s3188_s28 + $0x148] sm:$0xff] }
 0x233   : > { %2700 = vpow2.f32 %v2545_v48 }
 0x23d   : > { %v2695_v15 = vpop.eup %2694 }
 0x23e   : > { %v2697_v23 = vpop.eup %2696  ;;  %v2002_v41 = vadd.f32 1.0, %v2695_v15  ;;  %v2227_v15 = vld [vmem:[%s3188_s28 + $0x1c8] sm:$0xff] }
 0x23f   : > { %v2699_v42 = vpop.eup %2698  ;;  %v2004_v43 = vadd.f32 1.0, %v2697_v23  ;;  %v2181_v23 = vld [vmem:[%s3188_s28 + $0x58] sm:$0xff] }
 0x240   : > { %v2701_v18 = vpop.eup %2700  ;;  %2702 = vrcp.f32 %v2002_v41  ;;  %v2003_v49 = vadd.f32 1.0, %v2699_v42  ;;  %v2197_v41 = vld [vmem:[%s3188_s28 + $0xd8] sm:$0xff] }
 0x241   : > { %2704 = vrcp.f32 %v2004_v43  ;;  %v2005_v28 = vadd.f32 1.0, %v2701_v18 }
 0x242   : > { %2706 = vrcp.f32 %v2003_v49 }
 0x243   : > { %2708 = vrcp.f32 %v2005_v28 }
 0x24d   : > { %v2703_v52 = vpop.eup %2702 }
 0x24e   : > { %v2705_v55 = vpop.eup %2704  ;;  %v2077_v58 = vrot.slane %v2703_v52, %v3347_v5 }
 0x24f   : > { %v2085_v31 = vrot.slane %v2705_v55, %v3347_v5  ;;  %v2707_v30 = vpop.eup %2706 }
 0x250   : > { %v2114_v6 = vmul.f32 %v2077_v58, %v3513_v29  ;;  %v2130_v22 = vmul.f32 %v2077_v58, %v3547_v9  ;;  %v2146_v60 = vmul.f32 %v2077_v58, %v3563_v50  ;;  %v2162_v7 = vmul.f32 %v2077_v58, %v3583_v25  ;;  %v2709_v13 = vpop.eup %2708 }
 0x251   : > { %v2116_v14 = vmul.f32 %v2085_v31, %v3515_v24  ;;  %v2132_v19 = vmul.f32 %v2085_v31, %v3549_v8  ;;  %v2148_v20 = vmul.f32 %v2085_v31, %v3565_v51  ;;  %v2164_v32 = vmul.f32 %v2085_v31, %v3585_v63  ;;  %v3626_v29 = vpop.f32.mrf.mxu0  ;;  %v3628_v9 = vpop.f32.mrf.mxu1  ;;  %v1586_v8 = vld [vmem:[#allocation7 + $0x60] sm:$0xff] }
 0x252   : > { %v2242_v50 = vmul.f32 %v2178_v54, %v2114_v6  ;;  %v2258_v25 = vmul.f32 %v2194_v61, %v2130_v22  ;;  %v2274_v34 = vmul.f32 %v2210_v16, %v2146_v60  ;;  %v2290_v24 = vmul.f32 %v2226_v57, %v2162_v7  ;;  %v2213_v54 = vld [vmem:[%s3188_s28 + $0x158] sm:$0xff]  ;;  %v1602_v57 = vld [vmem:[#allocation7 + $0xe0] sm:$0xff]  ;;  %v1604_v22 = vld [vmem:[#allocation7 + $0xf0] sm:$0xff] }
 0x253   : > { %v2244_v51 = vmul.f32 %v2180_v0, %v2116_v14  ;;  %v2260_v63 = vmul.f32 %v2196_v12, %v2132_v19  ;;  %v2276_v3 = vmul.f32 %v2212_v27, %v2148_v20  ;;  %v2292_v36 = vmul.f32 %v2228_v33, %v2164_v32  ;;  %v3630_v10 = vpop.f32.mrf.mxu0  ;;  %v3632_v21 = vpop.f32.mrf.mxu1  ;;  %v2229_v61 = vld [vmem:[%s3188_s28 + $0x1d8] sm:$0xff]  ;;  %v1618_v27 = vld [vmem:[#allocation7 + $0x160] sm:$0xff] }
 0x254   : > { %2306 = vst [vmem:[%s3403_s24 + $0x40] sm:$0xff] %v2242_v50  ;;  %2322 = vst [vmem:[%s3403_s24 + $0xc0] sm:$0xff] %v2258_v25  ;;  %v2081_v39 = vrot.slane %v2707_v30, %v3347_v5  ;;  %v2089_v48 = vrot.slane %v2709_v13, %v3347_v5  ;;  %v1650_v42 = vmul.f32 %v1586_v8, %v3626_v29  ;;  %v1587_v16 = vld [vmem:[#allocation7 + $0x68] sm:$0xff]  ;;  %v1621_v8 = vld [vmem:[#allocation7 + $0x178] sm:$0xff] }
 0x255   : > { %2338 = vst [vmem:[%s3403_s24 + $0x140] sm:$0xff] %v2274_v34  ;;  %2354 = vst [vmem:[%s3403_s24 + $0x1c0] sm:$0xff] %v2290_v24  ;;  %v1652_v43 = vmul.f32 %v1588_v17, %v3628_v9  ;;  %v3652_v18 = vpop.f32.mrf.mxu0  ;;  %v3654_v49 = vpop.f32.mrf.mxu1  ;;  %v1619_v24 = vld [vmem:[#allocation7 + $0x168] sm:$0xff]  ;;  %v1651_v17 = vmul.f32 %v1587_v16, %v3630_v10 }
 0x256   : > { %2308 = vst [vmem:[%s3403_s24 + $0x50] sm:$0xff] %v2244_v51  ;;  %2324 = vst [vmem:[%s3403_s24 + $0xd0] sm:$0xff] %v2260_v63  ;;  %v2115_v28 = vmul.f32 %v2081_v39, %v3517_v2  ;;  %v2131_v52 = vmul.f32 %v2081_v39, %v3551_v44  ;;  %v2147_v55 = vmul.f32 %v2081_v39, %v3571_v62  ;;  %v1603_v44 = vld [vmem:[#allocation7 + $0xe8] sm:$0xff] }
 0x257   : > { %2340 = vst [vmem:[%s3403_s24 + $0x150] sm:$0xff] %v2276_v3  ;;  %2356 = vst [vmem:[%s3403_s24 + $0x1d0] sm:$0xff] %v2292_v36  ;;  %v2163_v58 = vmul.f32 %v2081_v39, %v3589_v11  ;;  %v2117_v31 = vmul.f32 %v2089_v48, %v3519_v46  ;;  %v2133_v0 = vmul.f32 %v2089_v48, %v3553_v4  ;;  %v3666_v2 = vpop.f32.mrf.mxu0  ;;  %v3668_v62 = vpop.f32.mrf.mxu1  ;;  %v1605_v11 = vld [vmem:[#allocation7 + $0xf8] sm:$0xff] }
 0x258   : > { %v2149_v30 = vmul.f32 %v2089_v48, %v3573_v37  ;;  %v2165_v6 = vmul.f32 %v2089_v48, %v3591_v59  ;;  %v2243_v60 = vmul.f32 %v2179_v47, %v2115_v28  ;;  %v2259_v7 = vmul.f32 %v2195_v38, %v2131_v52  ;;  %v1589_v4 = vld [vmem:[#allocation7 + $0x78] sm:$0xff]  ;;  %v1620_v37 = vld [vmem:[#allocation7 + $0x170] sm:$0xff]  ;;  %v1634_v47 = vld [vmem:[#allocation7 + $0x1e0] sm:$0xff] }
 0x259   : > { %v2275_v46 = vmul.f32 %v2211_v35, %v2147_v55  ;;  %v2291_v12 = vmul.f32 %v2227_v15, %v2163_v58  ;;  %v2245_v33 = vmul.f32 %v2181_v23, %v2117_v31  ;;  %v2261_v59 = vmul.f32 %v2197_v41, %v2133_v0  ;;  %v3670_v19 = vpop.f32.mrf.mxu0  ;;  %v3672_v20 = vpop.f32.mrf.mxu1  ;;  %v1636_v38 = vld [vmem:[#allocation7 + $0x1f0] sm:$0xff]  ;;  %v1635_v58 = vld [vmem:[#allocation7 + $0x1e8] sm:$0xff] }
 0x25a   : > { %v2277_v13 = vmul.f32 %v2213_v54, %v2149_v30  ;;  %v2293_v14 = vmul.f32 %v2229_v61, %v2165_v6  ;;  %2307 = vst [vmem:[%s3403_s24 + $0x48] sm:$0xff] %v2243_v60  ;;  %2323 = vst [vmem:[%s3403_s24 + $0xc8] sm:$0xff] %v2259_v7  ;;  %v1666_v32 = vmul.f32 %v1602_v57, %v3652_v18  ;;  %v1637_v54 = vld [vmem:[#allocation7 + $0x1f8] sm:$0xff] }
 0x25b   : > { %2339 = vst [vmem:[%s3403_s24 + $0x148] sm:$0xff] %v2275_v46  ;;  %2355 = vst [vmem:[%s3403_s24 + $0x1c8] sm:$0xff] %v2291_v12  ;;  %v1668_v50 = vmul.f32 %v1604_v22, %v3654_v49  ;;  %v1667_v25 = vmul.f32 %v1603_v44, %v3666_v2  ;;  %v1669_v34 = vmul.f32 %v1605_v11, %v3668_v62  ;;  %v3690_v36 = vpop.f32.mrf.mxu0  ;;  %v3692_v39 = vpop.f32.mrf.mxu1 }
 0x25c   : > { %2309 = vst [vmem:[%s3403_s24 + $0x58] sm:$0xff] %v2245_v33  ;;  %2325 = vst [vmem:[%s3403_s24 + $0xd8] sm:$0xff] %v2261_v59  ;;  %v1653_v51 = vmul.f32 %v1589_v4, %v3632_v21  ;;  %v1682_v63 = vmul.f32 %v1618_v27, %v3670_v19  ;;  %v1684_v3 = vmul.f32 %v1620_v37, %v3672_v20 }
 0x25d   : > { %2341 = vst [vmem:[%s3403_s24 + $0x158] sm:$0xff] %v2277_v13  ;;  %2357 = vst [vmem:[%s3403_s24 + $0x1d8] sm:$0xff] %v2293_v14  ;;  %v1810_v35 = vadd.f32 %v1666_v32, %v1650_v42  ;;  %v1828_v48 = vadd.f32 %v1668_v50, %v1652_v43  ;;  %v1819_v15 = vadd.f32 %v1667_v25, %v1651_v17  ;;  %v3696_v52 = vpop.f32.mrf.mxu0  ;;  %v3698_v55 = vpop.f32.mrf.mxu1 }
 0x25e   : > { %v1837_v23 = vadd.f32 %v1669_v34, %v1653_v51  ;;  %v1683_v41 = vmul.f32 %v1619_v24, %v3690_v36  ;;  %v1685_v28 = vmul.f32 %v1621_v8, %v3692_v39  ;;  %v1698_v57 = vmul.f32 %v1634_v47, %v3696_v52 }
 0x25f   : > { %v1811_v61 = vadd.f32 %v1810_v35, %v1682_v63  ;;  %v1829_v16 = vadd.f32 %v1828_v48, %v1684_v3  ;;  %v1700_v31 = vmul.f32 %v1636_v38, %v3698_v55  ;;  %v3702_v0 = vpop.f32.mrf.mxu0  ;;  %v3704_v30 = vpop.f32.mrf.mxu1  ;;  %v1901_v8 = vrot.slane %v3595_v56, %v1868_v26 }
 0x260   : > { %v1820_v42 = vadd.f32 %v1819_v15, %v1683_v41  ;;  %v1838_v43 = vadd.f32 %v1837_v23, %v1685_v28  ;;  %v1699_v44 = vmul.f32 %v1635_v58, %v3702_v0  ;;  %v1701_v11 = vmul.f32 %v1637_v54, %v3704_v30 }
 0x261   : > { %v1812_v6 = vadd.f32 %v1811_v61, %v1698_v57  ;;  %v1830_v22 = vadd.f32 %v1829_v16, %v1700_v31  ;;  %v1909_v17 = vrot.slane %v3595_v56, %v1876_v40  ;;  %v1905_v38 = vrot.slane %v3595_v56, %v1872_v45 }
 0x262   : > { %v1821_v46 = vadd.f32 %v1820_v42, %v1699_v44  ;;  %v1839_v12 = vadd.f32 %v1838_v43, %v1701_v11  ;;  %v1913_v35 = vrot.slane %v3595_v56, %v1880_v1 }
 0x263   : > { %v1813_v60 = vrot.slane %v1812_v6, 4  ;;  %v1831_v7 = vrot.slane %v1830_v22, 4 }
 0x264   : > { %v1822_v37 = vrot.slane %v1821_v46, 4  ;;  %v1840_v33 = vrot.slane %v1839_v12, 4 }
 0x265   : > { %v1814_v4 = vadd.f32 %v1813_v60, %v1812_v6  ;;  %v1832_v27 = vadd.f32 %v1831_v7, %v1830_v22 }
 0x266   : > { %v1823_v14 = vadd.f32 %v1822_v37, %v1821_v46  ;;  %v1841_v32 = vadd.f32 %v1840_v33, %v1839_v12  ;;  %v2182_v46 = vld [vmem:[%s3188_s28 + $0x60] sm:$0xff]  ;;  %v2184_v33 = vld [vmem:[%s3188_s28 + $0x70] sm:$0xff] }
 0x267   : > { %v1815_v59 = vrot.slane %v1814_v4, 2  ;;  %v1833_v13 = vrot.slane %v1832_v27, 2  ;;  %v2198_v12 = vld [vmem:[%s3188_s28 + $0xe0] sm:$0xff] }
 0x268   : > { %v1824_v34 = vrot.slane %v1823_v14, 2  ;;  %v1842_v24 = vrot.slane %v1841_v32, 2 }
 0x269   : > { %v1816_v50 = vadd.f32 %v1815_v59, %v1814_v4  ;;  %v1834_v25 = vadd.f32 %v1833_v13, %v1832_v27  ;;  %v2214_v4 = vld [vmem:[%s3188_s28 + $0x160] sm:$0xff] }
 0x26a   : > { %v1825_v3 = vadd.f32 %v1824_v34, %v1823_v14  ;;  %v1843_v47 = vadd.f32 %v1842_v24, %v1841_v32  ;;  %v2230_v27 = vld [vmem:[%s3188_s28 + $0x1e0] sm:$0xff]  ;;  %v2216_v34 = vld [vmem:[%s3188_s28 + $0x170] sm:$0xff] }
 0x26b   : > { %v1817_v51 = vrot.slane %v1816_v50, 1  ;;  %v1835_v63 = vrot.slane %v1834_v25, 1  ;;  %v2232_v24 = vld [vmem:[%s3188_s28 + $0x1f0] sm:$0xff] }
 0x26c   : > { %v1826_v23 = vrot.slane %v1825_v3, 1  ;;  %v1844_v26 = vrot.slane %v1843_v47, 1 }
 0x26d   : > { %v1818_v48 = vadd.f32 %v1817_v51, %v1816_v50  ;;  %v1836_v15 = vadd.f32 %v1835_v63, %v1834_v25  ;;  %v2200_v25 = vld [vmem:[%s3188_s28 + $0xf0] sm:$0xff] }
 0x26e   : > { %v1827_v58 = vadd.f32 %v1826_v23, %v1825_v3  ;;  %v1845_v40 = vadd.f32 %v1844_v26, %v1843_v47  ;;  %v2231_v23 = vld [vmem:[%s3188_s28 + $0x1e8] sm:$0xff]  ;;  %v2185_v26 = vld [vmem:[%s3188_s28 + $0x78] sm:$0xff] }
 0x26f   : > { %v1942_v41 = vadd.f32 %v1901_v8, %v1818_v48  ;;  %v1944_v28 = vadd.f32 %v1909_v17, %v1836_v15  ;;  %v2215_v15 = vld [vmem:[%s3188_s28 + $0x168] sm:$0xff] }
 0x270   : > { %v1943_v16 = vadd.f32 %v1905_v38, %v1827_v58  ;;  %v1945_v57 = vadd.f32 %v1913_v35, %v1845_v40  ;;  %v2199_v35 = vld [vmem:[%s3188_s28 + $0xe8] sm:$0xff] }
 0x271   : > { %v2546_v54 = vmul.f32 -1.442695, %v1942_v41  ;;  %v2548_v61 = vmul.f32 -1.442695, %v1944_v28 }
 0x272   : > { %v2547_v31 = vmul.f32 -1.442695, %v1943_v16  ;;  %v2549_v42 = vmul.f32 -1.442695, %v1945_v57 }
 0x273   : > { %2710 = vpow2.f32 %v2546_v54  ;;  %v2201_v54 = vld [vmem:[%s3188_s28 + $0xf8] sm:$0xff] }
 0x274   : > { %2712 = vpow2.f32 %v2548_v61  ;;  %v2233_v61 = vld [vmem:[%s3188_s28 + $0x1f8] sm:$0xff] }
 0x275   : > { %2714 = vpow2.f32 %v2547_v31 }
 0x276   : > { %2716 = vpow2.f32 %v2549_v42 }
 0x280   : > { %v2711_v53 = vpop.eup %2710 }
 0x281   : > { %v2713_v45 = vpop.eup %2712  ;;  %v2006_v1 = vadd.f32 1.0, %v2711_v53 }
 0x282   : > { %v2715_v56 = vpop.eup %2714  ;;  %v2008_v43 = vadd.f32 1.0, %v2713_v45 }
 0x283   : > { %v2717_v6 = vpop.eup %2716  ;;  %2718 = vrcp.f32 %v2006_v1  ;;  %v2007_v22 = vadd.f32 1.0, %v2715_v56 }
 0x284   : > { %2720 = vrcp.f32 %v2008_v43  ;;  %v2009_v44 = vadd.f32 1.0, %v2717_v6 }
 0x285   : > { %2722 = vrcp.f32 %v2007_v22 }
 0x286   : > { %2724 = vrcp.f32 %v2009_v44 }
 0x290   : > { %v2719_v11 = vpop.eup %2718 }
 0x291   : > { %v2721_v60 = vpop.eup %2720  ;;  %v2093_v7 = vrot.slane %v2719_v11, %v3347_v5 }
 0x292   : > { %v2101_v37 = vrot.slane %v2721_v60, %v3347_v5  ;;  %v2723_v59 = vpop.eup %2722 }
 0x293   : > { %v2118_v13 = vmul.f32 %v2093_v7, %v3626_v29  ;;  %v2134_v14 = vmul.f32 %v2093_v7, %v3652_v18  ;;  %v2150_v32 = vmul.f32 %v2093_v7, %v3670_v19  ;;  %v2166_v50 = vmul.f32 %v2093_v7, %v3696_v52  ;;  %v2725_v8 = vpop.eup %2724 }
 0x294   : > { %v2120_v17 = vmul.f32 %v2101_v37, %v3628_v9  ;;  %v2136_v51 = vmul.f32 %v2101_v37, %v3654_v49  ;;  %v2152_v29 = vmul.f32 %v2101_v37, %v3672_v20  ;;  %v2168_v18 = vmul.f32 %v2101_v37, %v3698_v55  ;;  %v2183_v55 = vld [vmem:[%s3188_s28 + $0x68] sm:$0xff] }
 0x295   : > { %v2246_v19 = vmul.f32 %v2182_v46, %v2118_v13  ;;  %v2262_v52 = vmul.f32 %v2198_v12, %v2134_v14  ;;  %v2278_v63 = vmul.f32 %v2214_v4, %v2150_v32  ;;  %v2294_v3 = vmul.f32 %v2230_v27, %v2166_v50 }
 0x296   : > { %v2248_v47 = vmul.f32 %v2184_v33, %v2120_v17  ;;  %v2264_v38 = vmul.f32 %v2200_v25, %v2136_v51  ;;  %v2280_v9 = vmul.f32 %v2216_v34, %v2152_v29  ;;  %v2296_v49 = vmul.f32 %v2232_v24, %v2168_v18 }
 0x297   : > { %2310 = vst [vmem:[%s3403_s24 + $0x60] sm:$0xff] %v2246_v19  ;;  %2326 = vst [vmem:[%s3403_s24 + $0xe0] sm:$0xff] %v2262_v52  ;;  %v2097_v20 = vrot.slane %v2723_v59, %v3347_v5  ;;  %v2105_v48 = vrot.slane %v2725_v8, %v3347_v5  ;;  %v2217_v5 = vld [vmem:[%s3188_s28 + $0x178] sm:$0xff] }
 0x298   : > { %2342 = vst [vmem:[%s3403_s24 + $0x160] sm:$0xff] %v2278_v63  ;;  %2358 = vst [vmem:[%s3403_s24 + $0x1e0] sm:$0xff] %v2294_v3 }
 0x299   : > { %2312 = vst [vmem:[%s3403_s24 + $0x70] sm:$0xff] %v2248_v47  ;;  %2328 = vst [vmem:[%s3403_s24 + $0xf0] sm:$0xff] %v2264_v38  ;;  %v2119_v41 = vmul.f32 %v2097_v20, %v3630_v10  ;;  %v2135_v28 = vmul.f32 %v2097_v20, %v3666_v2  ;;  %v2151_v58 = vmul.f32 %v2097_v20, %v3690_v36 }
 0x29a   : > { %2344 = vst [vmem:[%s3403_s24 + $0x170] sm:$0xff] %v2280_v9  ;;  %2360 = vst [vmem:[%s3403_s24 + $0x1f0] sm:$0xff] %v2296_v49  ;;  %v2167_v40 = vmul.f32 %v2097_v20, %v3702_v0  ;;  %v2121_v16 = vmul.f32 %v2105_v48, %v3632_v21  ;;  %v2137_v57 = vmul.f32 %v2105_v48, %v3668_v62 }
 0x29b   : > { %v2153_v31 = vmul.f32 %v2105_v48, %v3692_v39  ;;  %v2169_v10 = vmul.f32 %v2105_v48, %v3704_v30  ;;  %v2247_v2 = vmul.f32 %v2183_v55, %v2119_v41  ;;  %v2263_v36 = vmul.f32 %v2199_v35, %v2135_v28 }
 0x29c   : > { %v2279_v0 = vmul.f32 %v2215_v15, %v2151_v58  ;;  %v2295_v42 = vmul.f32 %v2231_v23, %v2167_v40  ;;  %v2249_v21 = vmul.f32 %v2185_v26, %v2121_v16  ;;  %v2265_v62 = vmul.f32 %v2201_v54, %v2137_v57 }
 0x29d   : > { %v2281_v39 = vmul.f32 %v2217_v5, %v2153_v31  ;;  %v2297_v30 = vmul.f32 %v2233_v61, %v2169_v10  ;;  %2311 = vst [vmem:[%s3403_s24 + $0x68] sm:$0xff] %v2247_v2  ;;  %2327 = vst [vmem:[%s3403_s24 + $0xe8] sm:$0xff] %v2263_v36 }
 0x29e   : > { %2343 = vst [vmem:[%s3403_s24 + $0x168] sm:$0xff] %v2279_v0  ;;  %2359 = vst [vmem:[%s3403_s24 + $0x1e8] sm:$0xff] %v2295_v42 }
 0x29f   : > { %2313 = vst [vmem:[%s3403_s24 + $0x78] sm:$0xff] %v2249_v21  ;;  %2329 = vst [vmem:[%s3403_s24 + $0xf8] sm:$0xff] %v2265_v62 }
 0x2a0   : > { %2345 = vst [vmem:[%s3403_s24 + $0x178] sm:$0xff] %v2281_v39  ;;  %2361 = vst [vmem:[%s3403_s24 + $0x1f8] sm:$0xff] %v2297_v30 }
 0x2a1   : > { %2881 = shalt.err (!%p2878_p12)
}
 0x2a2   : > { %s2882_s8 = scalar_lea.hbm %s3769_s1, 8192  ;;  %s2886_s12 = scalar_lea.hbm %s3832_s5, 16384 }
 0x2a3   : > { %p2883_p6 = scmp.ne.s32.totalorder %s3769_s1, %s2882_s8  ;;  %p2887_p11 = scmp.lt.s32.totalorder %s3769_s1, %s3832_s5 }
 0x2a4   : > { %p2888_p3 = scmp.lt.s32.totalorder %s2886_s12, %s2882_s8 }
 0x2a5   : > { %p2884_p4 = pnand %p2883_p6, %p3870_p7 }
 0x2a6   : > { %p2889_p2 = por %p2888_p3, %p2887_p11 }
 0x2a7   : > { %p2885_p8 = pneg %p2884_p4 }
 0x2a9   : > { %p2890_p0 = pnand %p2889_p2, %p2885_p8 }
 0x2ab   : > { %2893 = shalt.err (!%p2890_p0)
}
 0x2ac   : > { %s2972_s27 = smov 2048   ;;  %s2973_s28 = smov 128  }
 0x2ad   : > { %2574 = dma.vmem_to_hbm [thread:$0]  (%p3870_p7), %s3771_s7, 8192, %s3769_s1, %s2363_s9, %s2972_s27, %s2972_s27, %s2973_s28  }
 0x2ae PF: > { %s3871_s24 = sld [smem:[#allocation17_spill]]  ;;  %s2393_s26 = sand.u32 1, %s2940_s18  }
 0x2af   : > { %p3873_p5 = scmp.ge.s32.totalorder %s2960_s23, 2  ;;  %s2394_s21 = scalar_lea.sflag [#allocation4], %s2393_s26 }
 0x2b4   : > { %p3872_p13 = scmp.ne.s32.totalorder %s3871_s24, 0 }
 0x2b6   : > { %p2594_p9 = pnand %p3873_p5, %p3872_p13 }
 0x2b8   : > { %p2595_p10 = pneg %p2594_p9 }
 0x2ba   : > { %2935 = dma.done.wait (%p2595_p10), %s2394_s21, 8192  }
 0x2bb   : > { %2937 = vsyncadd (%p2595_p10), %s2394_s21, 4294959104  ;;  %s23_s23 = sadd.s32 1, %s2960_s23   ;;  %s3874_s15 = sld [smem:[#allocation18_spill]] }
 0x2bc   : > { %p20_p1 = scmp.ge.s32.totalorder %s23_s23, 4   ;;  %s3875_s18 = smov %s2944_s19 }
 0x2bd   : > { %s3876_s19 = smov %s2948_s20  ;;  %s3877_s20 = smov %s3103_s29 }
 0x2be   : > { %s3878_s21 = smov %s2956_s22  ;;  %22 = sbr.rel (!%p20_p1) target bundleno = 11 (0xb), region = 108 }
 0x2c1   : > { %s3879_s22 = smov %s3874_s15 }
 0x2c3   :  { %2399 = vsyncpa [#allocation3], 1 }
 0x2c4   :  { %2401 = vsyncpa [#allocation3 + $0x1], 1 }
 0x2c5   :  { %2402 = vsyncpa [#allocation6], 1 }
 0x2c6   :  { %2403 = vsyncpa [#allocation9], 1 }
 0x2c7   :  { %2404 = vsyncpa [#allocation4], 1 }
 0x2c8   :  { %2406 = vsyncpa [#allocation4 + $0x1], 1 }

</bundles_post_ra>
